<compile_context>
chip_gen: v5e
topology: v5e:2x2
jax: 0.10.0
libtpu: 0.0.40
codegen_flags: <defaults>
</compile_context>

<pallas_src>
import functools

import jax
import jax.numpy as jnp
import numpy as np
from jax import lax
from jax.experimental import pallas as pl
from jax.experimental.pallas import tpu as pltpu


# ---------------------------------------------------------------------------
# Fused kernel: heads + fusion + gate for one batch block (B_TILE elements).
# ---------------------------------------------------------------------------
def _gffrm_kernel(ed_ref, de_ref, mask_ref,
                  wh_ref, bh_ref, wdw_ref, bdw_ref, w11_ref, b11_ref,
                  wag_ref, bag_ref, wp_ref, bp_ref,
                  out_ref, patch_ref,
                  *, H, W, b_tile, inc, outc, k):
    HW = H * W
    L = b_tile * HW            # lanes per grid step (batch folded into lanes)
    k1 = k + 2
    p1, p2 = k1 // 2, k // 2
    n1 = k1 * k1               # taps of the (k+2)-head
    tc = p2 * k + p2           # centre tap index of a k x k stencil

    def shifted(x, dh, dw):
        """x spatially shifted by (dh, dw) with zero padding; layout (C, L).

        A single XLU lane rotation (pltpu.roll) realises the shift; lanes that
        wrapped around the image (or across the folded batch boundary) are
        zeroed by a precomputed edge-validity mask, so the result equals a
        zero-padded spatial shift.
        """
        delta = dh * W + dw
        s = (-delta) % L
        r = pltpu.roll(x, shift=s, axis=1) if s else x
        if dh == 0 and dw == 0:
            return r
        t = (dh + p1) * k1 + (dw + p1)
        return r * mask_ref[t:t + 1, :]          # (1, L) edge mask, VPU mul

    ed = ed_ref[...]                              # (inc, L)
    de = de_ref[...]

    # ---- heads, fused: one im2col patch + ONE MXU matmul -> z directly -----
    # wh is a host-precomputed block-diagonal [w1 | 0 ; 0 | w2] in bf16.
    # inc=8 f32 rows keep these writes sublane-tile aligned; the patch stays
    # f32 and is cast to bf16 only at the dot (avoids 16-row bf16 partials).
    for kh in range(k1):
        for kw in range(k1):
            t = kh * k1 + kw
            patch_ref[t * inc:(t + 1) * inc, :] = shifted(ed, kh - p1, kw - p1)
    for kh in range(k):
        for kw in range(k):
            t = n1 + kh * k + kw
            patch_ref[t * inc:(t + 1) * inc, :] = shifted(de, kh - p2, kw - p2)
    z = jnp.dot(wh_ref[...], patch_ref[...].astype(jnp.bfloat16),
                preferred_element_type=jnp.float32) + bh_ref[...]  # (2*inc, L)

    # ---- fusion: depthwise k x k (VPU taps, centre-tap init) + 1x1 (MXU) ---
    acc = z * wdw_ref[tc]
    for kh in range(k):
        for kw in range(k):
            t = kh * k + kw
            if t == tc:
                continue
            acc = acc + shifted(z, kh - p2, kw - p2) * wdw_ref[t]
    acc = acc + bdw_ref[...]
    fusion = jnp.dot(w11_ref[...], acc.astype(jnp.bfloat16),
                     preferred_element_type=jnp.float32) + b11_ref[...]

    # ---- gate: the two depthwise convs share every shifted tap -------------
    ag = fusion * wag_ref[tc]
    pp = fusion * wp_ref[tc]
    for kh in range(k):
        for kw in range(k):
            t = kh * k + kw
            if t == tc:
                continue
            sh = shifted(fusion, kh - p2, kw - p2)
            ag = ag + sh * wag_ref[t]
            pp = pp + sh * wp_ref[t]
    ag = ag + bag_ref[...]
    pp = jax.nn.sigmoid(pp + bp_ref[...])         # EUP; f32 everywhere (v5e)

    out_ref[...] = ag * pp + z                    # lane-dense (outc, L) store


# ---------------------------------------------------------------------------
# Wrapper
# ---------------------------------------------------------------------------
def _full_spec(shape):
    n = len(shape)
    return pl.BlockSpec(tuple(shape), lambda b, _n=n: (0,) * _n)


def _edge_masks(H, W, k1, b_tile):
    """(k1*k1, b_tile*H*W) f32: mask[t, b*HW+h*W+w] = 1 iff shifted px valid."""
    p1 = k1 // 2
    hh, ww = np.meshgrid(np.arange(H), np.arange(W), indexing="ij")
    rows = []
    for t in range(k1 * k1):
        dh, dw = t // k1 - p1, t % k1 - p1
        ok = ((hh + dh >= 0) & (hh + dh < H) &
              (ww + dw >= 0) & (ww + dw < W)).reshape(-1).astype(np.float32)
        rows.append(np.tile(ok, b_tile))
    return jnp.asarray(np.stack(rows, axis=0))


def _pick_b_tile(N, HW, max_lanes=4096):
    """Largest divisor of N keeping >=2 grid steps (feeds both v7x TCs) and a
    bounded lane slab (keeps the fused im2col scratch small)."""
    best = 1
    for d in range(1, N + 1):
        if N % d == 0 and N // d >= 2 and d * HW <= max_lanes:
            best = d
    return best


_PARAM_ORDER = ("w1", "b1", "w2", "b2", "wdw", "bdw", "w11", "b11",
                "wag", "bag", "wp", "bp")


def gffrm_pallas(ed_nchw, de_nchw, params, *, k, b_tile=None):
    N, inc, H, W = ed_nchw.shape
    outc = params["w11"].shape[0]
    assert outc == 2 * inc, "GFFRM is only shape-consistent when outc == 2*inc"
    HW = H * W
    k1 = k + 2
    n1, n2 = k1 * k1, k * k
    C2 = 2 * inc
    if b_tile is None:
        b_tile = _pick_b_tile(N, HW)
    assert N % b_tile == 0
    L = b_tile * HW

    # Channel-major lane-folded layout (C, N*H*W): batch+space in lanes,
    # channels in sublanes.  One transpose per input/output in the wrapper
    # buys B_TILE-wide grid steps (amortized step overhead, bigger DMAs,
    # longer streamed MXU N).
    def to_lanes(x):
        return (x.reshape(N, inc, HW).transpose(1, 0, 2)
                 .reshape(inc, N * HW).astype(jnp.float32))

    ed = to_lanes(ed_nchw)
    de = to_lanes(de_nchw)
    masks = _edge_masks(H, W, k1, b_tile)

    # Fused block-diagonal head weight [w1 | 0 ; 0 | w2] so one MXU matmul
    # yields z = [x ; y] directly; MXU operands bf16, accumulation f32.
    w_heads = jnp.zeros((C2, (n1 + n2) * inc), jnp.float32)
    w_heads = w_heads.at[:inc, :n1 * inc].set(params["w1"])
    w_heads = w_heads.at[inc:, n1 * inc:].set(params["w2"])
    w_heads = w_heads.astype(jnp.bfloat16)
    b_heads = jnp.concatenate([params["b1"], params["b2"]], axis=0)
    w11 = params["w11"].astype(jnp.bfloat16)

    weights = (w_heads, b_heads, params["wdw"], params["bdw"], w11,
               params["b11"], params["wag"], params["bag"], params["wp"],
               params["bp"])

    data_spec = pl.BlockSpec((inc, L), lambda b: (0, b))
    out_spec = pl.BlockSpec((outc, L), lambda b: (0, b))

    # Advisory cost hint so XLA schedules around the call correctly.
    flops = N * HW * (2 * C2 * (n1 + n2) * inc      # fused head matmul
                      + 2 * n2 * C2                 # depthwise fusion taps
                      + 2 * C2 * outc               # 1x1 conv
                      + 4 * n2 * outc               # two gate depthwise convs
                      + 4 * outc)                   # gate combine + residual
    bytes_accessed = 4 * (2 * N * inc * HW + N * outc * HW) + sum(
        int(np.prod(w.shape)) * w.dtype.itemsize for w in weights)
    cost = pl.CostEstimate(flops=flops, transcendentals=N * HW * outc,
                           bytes_accessed=bytes_accessed)

    # Explicit scoped-VMEM budget: actual usage is the fused im2col scratch
    # plus a few double-buffered (C, L) slabs; clamp into [32, 48] MiB so it
    # is valid on v7x (64 MiB physical) and generous on v5e/v6e.
    est = 4 * L * ((n1 + n2) * inc + 4 * inc + 2 * outc + n1)
    vmem_limit = int(min(48 * 1024 * 1024, max(32 * 1024 * 1024, est)))

    out = pl.pallas_call(
        functools.partial(_gffrm_kernel, H=H, W=W, b_tile=b_tile,
                          inc=inc, outc=outc, k=k),
        grid=(N // b_tile,),
        in_specs=[data_spec, data_spec, _full_spec(masks.shape)]
                 + [_full_spec(w.shape) for w in weights],
        out_specs=out_spec,
        out_shape=jax.ShapeDtypeStruct((outc, N * HW), jnp.float32),
        scratch_shapes=[
            # fused im2col patch for BOTH heads (f32; cast to bf16 at the dot)
            pltpu.VMEM(((n1 + n2) * inc, L), jnp.float32),
        ],
        compiler_params=pltpu.CompilerParams(
            dimension_semantics=("parallel",),
            vmem_limit_bytes=vmem_limit),
        cost_estimate=cost,
        # TODO(synk): for production resolutions add a second "parallel" grid
        # axis over spatial row blocks (k1//2 halo rows, per-row-block patch
        # scratch) so the im2col scratch stays fixed under v7x's 64 MiB VMEM.
    )(ed, de, masks, *weights)

    return (out.reshape(outc, N, HW).transpose(1, 0, 2)
               .reshape(N, outc, H, W))             # back to NCHW


# ---------------------------------------------------------------------------
# Deterministic parameter init (kernel-friendly layouts, mirrors module shapes)
# ---------------------------------------------------------------------------
def init_params(key, inc, outc, k):
    assert outc == 2 * inc, "GFFRM is only shape-consistent when outc == 2*inc"
    k1 = k + 2
    C2 = 2 * inc
    keys = jax.random.split(key, 12)

    def w(kk, shape, scale):
        return jax.random.normal(kk, shape, jnp.float32) * scale

    return {
        # x1: Conv2d(inc, inc, k+2); stored (C_out, k1*k1*C_in), tap-major.
        "w1": w(keys[0], (inc, k1 * k1 * inc), 0.08),
        "b1": w(keys[1], (inc, 1), 0.05),
        # x2: Conv2d(inc, inc, k).
        "w2": w(keys[2], (inc, k * k * inc), 0.08),
        "b2": w(keys[3], (inc, 1), 0.05),
        # fusion[0]: depthwise Conv2d(2*inc, outc, k, groups=2*inc); (k*k, C, 1).
        "wdw": w(keys[4], (k * k, C2, 1), 0.2),
        "bdw": w(keys[5], (C2, 1), 0.05),
        # fusion[1]: Conv2d(2*inc, outc, 1); stored (C_out, C_in).
        "w11": w(keys[6], (outc, C2), 0.15),
        "b11": w(keys[7], (outc, 1), 0.05),
        # ag: depthwise Conv2d(outc, outc, k, groups=outc).
        "wag": w(keys[8], (k * k, outc, 1), 0.2),
        "bag": w(keys[9], (outc, 1), 0.05),
        # param[0]: depthwise Conv2d(outc, outc, k, groups=outc) -> sigmoid.
        "wp": w(keys[10], (k * k, outc, 1), 0.2),
        "bp": w(keys[11], (outc, 1), 0.05),
    }


# ---------------------------------------------------------------------------
# Pure-JAX reference (mirrors the PyTorch forward exactly, f32 HIGHEST)
# ---------------------------------------------------------------------------
def _conv_ref(x, w_hwio, b, groups=1):
    kh = w_hwio.shape[0]
    out = lax.conv_general_dilated(
        x, w_hwio, window_strides=(1, 1),
        padding=((kh // 2, kh // 2), (kh // 2, kh // 2)),
        dimension_numbers=("NHWC", "HWIO", "NHWC"),
        feature_group_count=groups,
        precision=lax.Precision.HIGHEST)
    return out + b.reshape(1, 1, 1, -1)


def gffrm_ref(ed_nchw, de_nchw, params, *, k):
    N, inc, H, W = ed_nchw.shape
    outc = params["w11"].shape[0]
    C2 = 2 * inc
    k1 = k + 2
    ed = jnp.transpose(ed_nchw, (0, 2, 3, 1))
    de = jnp.transpose(de_nchw, (0, 2, 3, 1))

    def dense_hwio(wf, kk, cin, cout):
        return wf.reshape(cout, kk, kk, cin).transpose(1, 2, 3, 0)

    def dw_hwio(wt, kk, c):
        return wt[..., 0].reshape(kk, kk, c)[:, :, None, :]

    x = _conv_ref(ed, dense_hwio(params["w1"], k1, inc, inc), params["b1"])
    y = _conv_ref(de, dense_hwio(params["w2"], k, inc, inc), params["b2"])
    z = jnp.concatenate([x, y], axis=-1)
    fd = _conv_ref(z, dw_hwio(params["wdw"], k, C2), params["bdw"], groups=C2)
    fusion = _conv_ref(fd, params["w11"].T.reshape(1, 1, C2, outc), params["b11"])
    ag = _conv_ref(fusion, dw_hwio(params["wag"], k, outc), params["bag"],
                   groups=outc)
    p = jax.nn.sigmoid(_conv_ref(fusion, dw_hwio(params["wp"], k, outc),
                                 params["bp"], groups=outc))
    out = ag * p + z
    return jnp.transpose(out, (0, 3, 1, 2))


if __name__ == "__main__":
    inc, outc, k = 8, 16, 3          # module requires outc == 2 * inc
    N, H, W = 4, 16, 16              # N=4 exercises B_TILE=2 lane folding

    key = jax.random.PRNGKey(0)
    k_ed, k_de, k_par = jax.random.split(key, 3)
    ed = jax.random.normal(k_ed, (N, inc, H, W), jnp.float32)   # NCHW as PyTorch
    de = jax.random.normal(k_de, (N, inc, H, W), jnp.float32)
    params = init_params(k_par, inc, outc, k)

    out = jax.block_until_ready(gffrm_pallas(ed, de, params, k=k))
    assert out.shape == (N, outc, H, W)

    ref = jax.block_until_ready(gffrm_ref(ed, de, params, k=k))
    # Kernel uses bf16 MXU operands (f32 accumulation) by design; reference is
    # f32 HIGHEST, so the tolerance covers the intended bf16 rounding.
    np.testing.assert_allclose(np.asarray(out), np.asarray(ref),
                               rtol=2e-2, atol=2e-2)
    print("KERNEL_OK")
</pallas_src>

<mosaic_0001>
module attributes {stable_mosaic.version = 11 : i64} {
  func.func @_gffrm_kernel(%arg0: i32, %arg1: memref<8x512xf32, #tpu.memory_space<vmem>>, %arg2: memref<8x512xf32, #tpu.memory_space<vmem>>, %arg3: memref<25x512xf32, #tpu.memory_space<vmem>>, %arg4: memref<16x272xbf16, #tpu.memory_space<vmem>>, %arg5: memref<16x1xf32, #tpu.memory_space<vmem>>, %arg6: memref<9x16x1xf32, #tpu.memory_space<vmem>>, %arg7: memref<16x1xf32, #tpu.memory_space<vmem>>, %arg8: memref<16x16xbf16, #tpu.memory_space<vmem>>, %arg9: memref<16x1xf32, #tpu.memory_space<vmem>>, %arg10: memref<9x16x1xf32, #tpu.memory_space<vmem>>, %arg11: memref<16x1xf32, #tpu.memory_space<vmem>>, %arg12: memref<9x16x1xf32, #tpu.memory_space<vmem>>, %arg13: memref<16x1xf32, #tpu.memory_space<vmem>>, %arg14: memref<16x512xf32, #tpu.memory_space<vmem>>, %arg15: memref<272x512xf32, #tpu.memory_space<vmem>>) attributes {dimension_semantics = [#tpu.dimension_semantics<parallel>], iteration_bounds = array<i64: 2>, scalar_prefetch = 0 : i64, scratch_operands = 1 : i64, tpu.core_type = #tpu.core_type<tc>, window_params = [{transform_indices = @transform_0, window_bounds = array<i64: 8, 512>}, {transform_indices = @transform_1, window_bounds = array<i64: 8, 512>}, {pipeline_mode = #tpu.pipeline_mode<synchronous>, transform_indices = @transform_2, window_bounds = array<i64: 25, 512>}, {pipeline_mode = #tpu.pipeline_mode<synchronous>, transform_indices = @transform_3, window_bounds = array<i64: 16, 272>}, {pipeline_mode = #tpu.pipeline_mode<synchronous>, transform_indices = @transform_4, window_bounds = array<i64: 16, 1>}, {pipeline_mode = #tpu.pipeline_mode<synchronous>, transform_indices = @transform_5, window_bounds = array<i64: 9, 16, 1>}, {pipeline_mode = #tpu.pipeline_mode<synchronous>, transform_indices = @transform_6, window_bounds = array<i64: 16, 1>}, {pipeline_mode = #tpu.pipeline_mode<synchronous>, transform_indices = @transform_7, window_bounds = array<i64: 16, 16>}, {pipeline_mode = #tpu.pipeline_mode<synchronous>, transform_indices = @transform_8, window_bounds = array<i64: 16, 1>}, {pipeline_mode = #tpu.pipeline_mode<synchronous>, transform_indices = @transform_9, window_bounds = array<i64: 9, 16, 1>}, {pipeline_mode = #tpu.pipeline_mode<synchronous>, transform_indices = @transform_10, window_bounds = array<i64: 16, 1>}, {pipeline_mode = #tpu.pipeline_mode<synchronous>, transform_indices = @transform_11, window_bounds = array<i64: 9, 16, 1>}, {pipeline_mode = #tpu.pipeline_mode<synchronous>, transform_indices = @transform_12, window_bounds = array<i64: 16, 1>}, {transform_indices = @transform_13, window_bounds = array<i64: 16, 512>}]} {
    %c0 = arith.constant 0 : index
    %c0_0 = arith.constant 0 : index
    %0 = vector.load %arg1[%c0, %c0_0] : memref<8x512xf32, #tpu.memory_space<vmem>>, vector<8x512xf32>
    %c0_1 = arith.constant 0 : index
    %c0_2 = arith.constant 0 : index
    %1 = vector.load %arg2[%c0_1, %c0_2] : memref<8x512xf32, #tpu.memory_space<vmem>>, vector<8x512xf32>
    %c34_i32 = arith.constant 34 : i32
    %2 = tpu.dynamic_rotate %0 by %c34_i32 dim 1 : vector<8x512xf32>, i32 -> vector<8x512xf32>
    %c0_3 = arith.constant 0 : index
    %c0_4 = arith.constant 0 : index
    %3 = vector.load %arg3[%c0_3, %c0_4] : memref<25x512xf32, #tpu.memory_space<vmem>>, vector<1x512xf32>
    %4 = vector.broadcast %3 : vector<1x512xf32> to vector<8x512xf32>
    %5 = arith.mulf %2, %4 : vector<8x512xf32>
    %c0_5 = arith.constant 0 : index
    %c0_6 = arith.constant 0 : index
    %6 = vector.load %arg15[%c0_5, %c0_6] : memref<272x512xf32, #tpu.memory_space<vmem>>, vector<8x512xf32>
    tpu.vector_store %arg15[%c0_5, %c0_6], %5 {strides = array<i32>} : memref<272x512xf32, #tpu.memory_space<vmem>>, vector<8x512xf32>,
    %c33_i32 = arith.constant 33 : i32
    %7 = tpu.dynamic_rotate %0 by %c33_i32 dim 1 : vector<8x512xf32>, i32 -> vector<8x512xf32>
    %c1 = arith.constant 1 : index
    %c0_7 = arith.constant 0 : index
    %8 = vector.load %arg3[%c1, %c0_7] : memref<25x512xf32, #tpu.memory_space<vmem>>, vector<1x512xf32>
    %9 = vector.broadcast %8 : vector<1x512xf32> to vector<8x512xf32>
    %10 = arith.mulf %7, %9 : vector<8x512xf32>
    %c8 = arith.constant 8 : index
    %c0_8 = arith.constant 0 : index
    %11 = vector.load %arg15[%c8, %c0_8] : memref<272x512xf32, #tpu.memory_space<vmem>>, vector<8x512xf32>
    tpu.vector_store %arg15[%c8, %c0_8], %10 {strides = array<i32>} : memref<272x512xf32, #tpu.memory_space<vmem>>, vector<8x512xf32>,
    %c32_i32 = arith.constant 32 : i32
    %12 = tpu.dynamic_rotate %0 by %c32_i32 dim 1 : vector<8x512xf32>, i32 -> vector<8x512xf32>
    %c2 = arith.constant 2 : index
    %c0_9 = arith.constant 0 : index
    %13 = vector.load %arg3[%c2, %c0_9] : memref<25x512xf32, #tpu.memory_space<vmem>>, vector<1x512xf32>
    %14 = vector.broadcast %13 : vector<1x512xf32> to vector<8x512xf32>
    %15 = arith.mulf %12, %14 : vector<8x512xf32>
    %c16 = arith.constant 16 : index
    %c0_10 = arith.constant 0 : index
    %16 = vector.load %arg15[%c16, %c0_10] : memref<272x512xf32, #tpu.memory_space<vmem>>, vector<8x512xf32>
    tpu.vector_store %arg15[%c16, %c0_10], %15 {strides = array<i32>} : memref<272x512xf32, #tpu.memory_space<vmem>>, vector<8x512xf32>,
    %c31_i32 = arith.constant 31 : i32
    %17 = tpu.dynamic_rotate %0 by %c31_i32 dim 1 : vector<8x512xf32>, i32 -> vector<8x512xf32>
    %c3 = arith.constant 3 : index
    %c0_11 = arith.constant 0 : index
    %18 = vector.load %arg3[%c3, %c0_11] : memref<25x512xf32, #tpu.memory_space<vmem>>, vector<1x512xf32>
    %19 = vector.broadcast %18 : vector<1x512xf32> to vector<8x512xf32>
    %20 = arith.mulf %17, %19 : vector<8x512xf32>
    %c24 = arith.constant 24 : index
    %c0_12 = arith.constant 0 : index
    %21 = vector.load %arg15[%c24, %c0_12] : memref<272x512xf32, #tpu.memory_space<vmem>>, vector<8x512xf32>
    tpu.vector_store %arg15[%c24, %c0_12], %20 {strides = array<i32>} : memref<272x512xf32, #tpu.memory_space<vmem>>, vector<8x512xf32>,
    %c30_i32 = arith.constant 30 : i32
    %22 = tpu.dynamic_rotate %0 by %c30_i32 dim 1 : vector<8x512xf32>, i32 -> vector<8x512xf32>
    %c4 = arith.constant 4 : index
    %c0_13 = arith.constant 0 : index
    %23 = vector.load %arg3[%c4, %c0_13] : memref<25x512xf32, #tpu.memory_space<vmem>>, vector<1x512xf32>
    %24 = vector.broadcast %23 : vector<1x512xf32> to vector<8x512xf32>
    %25 = arith.mulf %22, %24 : vector<8x512xf32>
    %c32 = arith.constant 32 : index
    %c0_14 = arith.constant 0 : index
    %26 = vector.load %arg15[%c32, %c0_14] : memref<272x512xf32, #tpu.memory_space<vmem>>, vector<8x512xf32>
    tpu.vector_store %arg15[%c32, %c0_14], %25 {strides = array<i32>} : memref<272x512xf32, #tpu.memory_space<vmem>>, vector<8x512xf32>,
    %c18_i32 = arith.constant 18 : i32
    %27 = tpu.dynamic_rotate %0 by %c18_i32 dim 1 : vector<8x512xf32>, i32 -> vector<8x512xf32>
    %c5 = arith.constant 5 : index
    %c0_15 = arith.constant 0 : index
    %28 = vector.load %arg3[%c5, %c0_15] : memref<25x512xf32, #tpu.memory_space<vmem>>, vector<1x512xf32>
    %29 = vector.broadcast %28 : vector<1x512xf32> to vector<8x512xf32>
    %30 = arith.mulf %27, %29 : vector<8x512xf32>
    %c40 = arith.constant 40 : index
    %c0_16 = arith.constant 0 : index
    %31 = vector.load %arg15[%c40, %c0_16] : memref<272x512xf32, #tpu.memory_space<vmem>>, vector<8x512xf32>
    tpu.vector_store %arg15[%c40, %c0_16], %30 {strides = array<i32>} : memref<272x512xf32, #tpu.memory_space<vmem>>, vector<8x512xf32>,
    %c17_i32 = arith.constant 17 : i32
    %32 = tpu.dynamic_rotate %0 by %c17_i32 dim 1 : vector<8x512xf32>, i32 -> vector<8x512xf32>
    %c6 = arith.constant 6 : index
    %c0_17 = arith.constant 0 : index
    %33 = vector.load %arg3[%c6, %c0_17] : memref<25x512xf32, #tpu.memory_space<vmem>>, vector<1x512xf32>
    %34 = vector.broadcast %33 : vector<1x512xf32> to vector<8x512xf32>
    %35 = arith.mulf %32, %34 : vector<8x512xf32>
    %c48 = arith.constant 48 : index
    %c0_18 = arith.constant 0 : index
    %36 = vector.load %arg15[%c48, %c0_18] : memref<272x512xf32, #tpu.memory_space<vmem>>, vector<8x512xf32>
    tpu.vector_store %arg15[%c48, %c0_18], %35 {strides = array<i32>} : memref<272x512xf32, #tpu.memory_space<vmem>>, vector<8x512xf32>,
    %c16_i32 = arith.constant 16 : i32
    %37 = tpu.dynamic_rotate %0 by %c16_i32 dim 1 : vector<8x512xf32>, i32 -> vector<8x512xf32>
    %c7 = arith.constant 7 : index
    %c0_19 = arith.constant 0 : index
    %38 = vector.load %arg3[%c7, %c0_19] : memref<25x512xf32, #tpu.memory_space<vmem>>, vector<1x512xf32>
    %39 = vector.broadcast %38 : vector<1x512xf32> to vector<8x512xf32>
    %40 = arith.mulf %37, %39 : vector<8x512xf32>
    %c56 = arith.constant 56 : index
    %c0_20 = arith.constant 0 : index
    %41 = vector.load %arg15[%c56, %c0_20] : memref<272x512xf32, #tpu.memory_space<vmem>>, vector<8x512xf32>
    tpu.vector_store %arg15[%c56, %c0_20], %40 {strides = array<i32>} : memref<272x512xf32, #tpu.memory_space<vmem>>, vector<8x512xf32>,
    %c15_i32 = arith.constant 15 : i32
    %42 = tpu.dynamic_rotate %0 by %c15_i32 dim 1 : vector<8x512xf32>, i32 -> vector<8x512xf32>
    %c8_21 = arith.constant 8 : index
    %c0_22 = arith.constant 0 : index
    %43 = vector.load %arg3[%c8_21, %c0_22] : memref<25x512xf32, #tpu.memory_space<vmem>>, vector<1x512xf32>
    %44 = vector.broadcast %43 : vector<1x512xf32> to vector<8x512xf32>
    %45 = arith.mulf %42, %44 : vector<8x512xf32>
    %c64 = arith.constant 64 : index
    %c0_23 = arith.constant 0 : index
    %46 = vector.load %arg15[%c64, %c0_23] : memref<272x512xf32, #tpu.memory_space<vmem>>, vector<8x512xf32>
    tpu.vector_store %arg15[%c64, %c0_23], %45 {strides = array<i32>} : memref<272x512xf32, #tpu.memory_space<vmem>>, vector<8x512xf32>,
    %c14_i32 = arith.constant 14 : i32
    %47 = tpu.dynamic_rotate %0 by %c14_i32 dim 1 : vector<8x512xf32>, i32 -> vector<8x512xf32>
    %c9 = arith.constant 9 : index
    %c0_24 = arith.constant 0 : index
    %48 = vector.load %arg3[%c9, %c0_24] : memref<25x512xf32, #tpu.memory_space<vmem>>, vector<1x512xf32>
    %49 = vector.broadcast %48 : vector<1x512xf32> to vector<8x512xf32>
    %50 = arith.mulf %47, %49 : vector<8x512xf32>
    %c72 = arith.constant 72 : index
    %c0_25 = arith.constant 0 : index
    %51 = vector.load %arg15[%c72, %c0_25] : memref<272x512xf32, #tpu.memory_space<vmem>>, vector<8x512xf32>
    tpu.vector_store %arg15[%c72, %c0_25], %50 {strides = array<i32>} : memref<272x512xf32, #tpu.memory_space<vmem>>, vector<8x512xf32>,
    %c2_i32 = arith.constant 2 : i32
    %52 = tpu.dynamic_rotate %0 by %c2_i32 dim 1 : vector<8x512xf32>, i32 -> vector<8x512xf32>
    %c10 = arith.constant 10 : index
    %c0_26 = arith.constant 0 : index
    %53 = vector.load %arg3[%c10, %c0_26] : memref<25x512xf32, #tpu.memory_space<vmem>>, vector<1x512xf32>
    %54 = vector.broadcast %53 : vector<1x512xf32> to vector<8x512xf32>
    %55 = arith.mulf %52, %54 : vector<8x512xf32>
    %c80 = arith.constant 80 : index
    %c0_27 = arith.constant 0 : index
    %56 = vector.load %arg15[%c80, %c0_27] : memref<272x512xf32, #tpu.memory_space<vmem>>, vector<8x512xf32>
    tpu.vector_store %arg15[%c80, %c0_27], %55 {strides = array<i32>} : memref<272x512xf32, #tpu.memory_space<vmem>>, vector<8x512xf32>,
    %c1_i32 = arith.constant 1 : i32
    %57 = tpu.dynamic_rotate %0 by %c1_i32 dim 1 : vector<8x512xf32>, i32 -> vector<8x512xf32>
    %c11 = arith.constant 11 : index
    %c0_28 = arith.constant 0 : index
    %58 = vector.load %arg3[%c11, %c0_28] : memref<25x512xf32, #tpu.memory_space<vmem>>, vector<1x512xf32>
    %59 = vector.broadcast %58 : vector<1x512xf32> to vector<8x512xf32>
    %60 = arith.mulf %57, %59 : vector<8x512xf32>
    %c88 = arith.constant 88 : index
    %c0_29 = arith.constant 0 : index
    %61 = vector.load %arg15[%c88, %c0_29] : memref<272x512xf32, #tpu.memory_space<vmem>>, vector<8x512xf32>
    tpu.vector_store %arg15[%c88, %c0_29], %60 {strides = array<i32>} : memref<272x512xf32, #tpu.memory_space<vmem>>, vector<8x512xf32>,
    %c96 = arith.constant 96 : index
    %c0_30 = arith.constant 0 : index
    %62 = vector.load %arg15[%c96, %c0_30] : memref<272x512xf32, #tpu.memory_space<vmem>>, vector<8x512xf32>
    tpu.vector_store %arg15[%c96, %c0_30], %0 {strides = array<i32>} : memref<272x512xf32, #tpu.memory_space<vmem>>, vector<8x512xf32>,
    %c511_i32 = arith.constant 511 : i32
    %63 = tpu.dynamic_rotate %0 by %c511_i32 dim 1 : vector<8x512xf32>, i32 -> vector<8x512xf32>
    %c13 = arith.constant 13 : index
    %c0_31 = arith.constant 0 : index
    %64 = vector.load %arg3[%c13, %c0_31] : memref<25x512xf32, #tpu.memory_space<vmem>>, vector<1x512xf32>
    %65 = vector.broadcast %64 : vector<1x512xf32> to vector<8x512xf32>
    %66 = arith.mulf %63, %65 : vector<8x512xf32>
    %c104 = arith.constant 104 : index
    %c0_32 = arith.constant 0 : index
    %67 = vector.load %arg15[%c104, %c0_32] : memref<272x512xf32, #tpu.memory_space<vmem>>, vector<8x512xf32>
    tpu.vector_store %arg15[%c104, %c0_32], %66 {strides = array<i32>} : memref<272x512xf32, #tpu.memory_space<vmem>>, vector<8x512xf32>,
    %c510_i32 = arith.constant 510 : i32
    %68 = tpu.dynamic_rotate %0 by %c510_i32 dim 1 : vector<8x512xf32>, i32 -> vector<8x512xf32>
    %c14 = arith.constant 14 : index
    %c0_33 = arith.constant 0 : index
    %69 = vector.load %arg3[%c14, %c0_33] : memref<25x512xf32, #tpu.memory_space<vmem>>, vector<1x512xf32>
    %70 = vector.broadcast %69 : vector<1x512xf32> to vector<8x512xf32>
    %71 = arith.mulf %68, %70 : vector<8x512xf32>
    %c112 = arith.constant 112 : index
    %c0_34 = arith.constant 0 : index
    %72 = vector.load %arg15[%c112, %c0_34] : memref<272x512xf32, #tpu.memory_space<vmem>>, vector<8x512xf32>
    tpu.vector_store %arg15[%c112, %c0_34], %71 {strides = array<i32>} : memref<272x512xf32, #tpu.memory_space<vmem>>, vector<8x512xf32>,
    %c498_i32 = arith.constant 498 : i32
    %73 = tpu.dynamic_rotate %0 by %c498_i32 dim 1 : vector<8x512xf32>, i32 -> vector<8x512xf32>
    %c15 = arith.constant 15 : index
    %c0_35 = arith.constant 0 : index
    %74 = vector.load %arg3[%c15, %c0_35] : memref<25x512xf32, #tpu.memory_space<vmem>>, vector<1x512xf32>
    %75 = vector.broadcast %74 : vector<1x512xf32> to vector<8x512xf32>
    %76 = arith.mulf %73, %75 : vector<8x512xf32>
    %c120 = arith.constant 120 : index
    %c0_36 = arith.constant 0 : index
    %77 = vector.load %arg15[%c120, %c0_36] : memref<272x512xf32, #tpu.memory_space<vmem>>, vector<8x512xf32>
    tpu.vector_store %arg15[%c120, %c0_36], %76 {strides = array<i32>} : memref<272x512xf32, #tpu.memory_space<vmem>>, vector<8x512xf32>,
    %c497_i32 = arith.constant 497 : i32
    %78 = tpu.dynamic_rotate %0 by %c497_i32 dim 1 : vector<8x512xf32>, i32 -> vector<8x512xf32>
    %c16_37 = arith.constant 16 : index
    %c0_38 = arith.constant 0 : index
    %79 = vector.load %arg3[%c16_37, %c0_38] : memref<25x512xf32, #tpu.memory_space<vmem>>, vector<1x512xf32>
    %80 = vector.broadcast %79 : vector<1x512xf32> to vector<8x512xf32>
    %81 = arith.mulf %78, %80 : vector<8x512xf32>
    %c128 = arith.constant 128 : index
    %c0_39 = arith.constant 0 : index
    %82 = vector.load %arg15[%c128, %c0_39] : memref<272x512xf32, #tpu.memory_space<vmem>>, vector<8x512xf32>
    tpu.vector_store %arg15[%c128, %c0_39], %81 {strides = array<i32>} : memref<272x512xf32, #tpu.memory_space<vmem>>, vector<8x512xf32>,
    %c496_i32 = arith.constant 496 : i32
    %83 = tpu.dynamic_rotate %0 by %c496_i32 dim 1 : vector<8x512xf32>, i32 -> vector<8x512xf32>
    %c17 = arith.constant 17 : index
    %c0_40 = arith.constant 0 : index
    %84 = vector.load %arg3[%c17, %c0_40] : memref<25x512xf32, #tpu.memory_space<vmem>>, vector<1x512xf32>
    %85 = vector.broadcast %84 : vector<1x512xf32> to vector<8x512xf32>
    %86 = arith.mulf %83, %85 : vector<8x512xf32>
    %c136 = arith.constant 136 : index
    %c0_41 = arith.constant 0 : index
    %87 = vector.load %arg15[%c136, %c0_41] : memref<272x512xf32, #tpu.memory_space<vmem>>, vector<8x512xf32>
    tpu.vector_store %arg15[%c136, %c0_41], %86 {strides = array<i32>} : memref<272x512xf32, #tpu.memory_space<vmem>>, vector<8x512xf32>,
    %c495_i32 = arith.constant 495 : i32
    %88 = tpu.dynamic_rotate %0 by %c495_i32 dim 1 : vector<8x512xf32>, i32 -> vector<8x512xf32>
    %c18 = arith.constant 18 : index
    %c0_42 = arith.constant 0 : index
    %89 = vector.load %arg3[%c18, %c0_42] : memref<25x512xf32, #tpu.memory_space<vmem>>, vector<1x512xf32>
    %90 = vector.broadcast %89 : vector<1x512xf32> to vector<8x512xf32>
    %91 = arith.mulf %88, %90 : vector<8x512xf32>
    %c144 = arith.constant 144 : index
    %c0_43 = arith.constant 0 : index
    %92 = vector.load %arg15[%c144, %c0_43] : memref<272x512xf32, #tpu.memory_space<vmem>>, vector<8x512xf32>
    tpu.vector_store %arg15[%c144, %c0_43], %91 {strides = array<i32>} : memref<272x512xf32, #tpu.memory_space<vmem>>, vector<8x512xf32>,
    %c494_i32 = arith.constant 494 : i32
    %93 = tpu.dynamic_rotate %0 by %c494_i32 dim 1 : vector<8x512xf32>, i32 -> vector<8x512xf32>
    %c19 = arith.constant 19 : index
    %c0_44 = arith.constant 0 : index
    %94 = vector.load %arg3[%c19, %c0_44] : memref<25x512xf32, #tpu.memory_space<vmem>>, vector<1x512xf32>
    %95 = vector.broadcast %94 : vector<1x512xf32> to vector<8x512xf32>
    %96 = arith.mulf %93, %95 : vector<8x512xf32>
    %c152 = arith.constant 152 : index
    %c0_45 = arith.constant 0 : index
    %97 = vector.load %arg15[%c152, %c0_45] : memref<272x512xf32, #tpu.memory_space<vmem>>, vector<8x512xf32>
    tpu.vector_store %arg15[%c152, %c0_45], %96 {strides = array<i32>} : memref<272x512xf32, #tpu.memory_space<vmem>>, vector<8x512xf32>,
    %c482_i32 = arith.constant 482 : i32
    %98 = tpu.dynamic_rotate %0 by %c482_i32 dim 1 : vector<8x512xf32>, i32 -> vector<8x512xf32>
    %c20 = arith.constant 20 : index
    %c0_46 = arith.constant 0 : index
    %99 = vector.load %arg3[%c20, %c0_46] : memref<25x512xf32, #tpu.memory_space<vmem>>, vector<1x512xf32>
    %100 = vector.broadcast %99 : vector<1x512xf32> to vector<8x512xf32>
    %101 = arith.mulf %98, %100 : vector<8x512xf32>
    %c160 = arith.constant 160 : index
    %c0_47 = arith.constant 0 : index
    %102 = vector.load %arg15[%c160, %c0_47] : memref<272x512xf32, #tpu.memory_space<vmem>>, vector<8x512xf32>
    tpu.vector_store %arg15[%c160, %c0_47], %101 {strides = array<i32>} : memref<272x512xf32, #tpu.memory_space<vmem>>, vector<8x512xf32>,
    %c481_i32 = arith.constant 481 : i32
    %103 = tpu.dynamic_rotate %0 by %c481_i32 dim 1 : vector<8x512xf32>, i32 -> vector<8x512xf32>
    %c21 = arith.constant 21 : index
    %c0_48 = arith.constant 0 : index
    %104 = vector.load %arg3[%c21, %c0_48] : memref<25x512xf32, #tpu.memory_space<vmem>>, vector<1x512xf32>
    %105 = vector.broadcast %104 : vector<1x512xf32> to vector<8x512xf32>
    %106 = arith.mulf %103, %105 : vector<8x512xf32>
    %c168 = arith.constant 168 : index
    %c0_49 = arith.constant 0 : index
    %107 = vector.load %arg15[%c168, %c0_49] : memref<272x512xf32, #tpu.memory_space<vmem>>, vector<8x512xf32>
    tpu.vector_store %arg15[%c168, %c0_49], %106 {strides = array<i32>} : memref<272x512xf32, #tpu.memory_space<vmem>>, vector<8x512xf32>,
    %c480_i32 = arith.constant 480 : i32
    %108 = tpu.dynamic_rotate %0 by %c480_i32 dim 1 : vector<8x512xf32>, i32 -> vector<8x512xf32>
    %c22 = arith.constant 22 : index
    %c0_50 = arith.constant 0 : index
    %109 = vector.load %arg3[%c22, %c0_50] : memref<25x512xf32, #tpu.memory_space<vmem>>, vector<1x512xf32>
    %110 = vector.broadcast %109 : vector<1x512xf32> to vector<8x512xf32>
    %111 = arith.mulf %108, %110 : vector<8x512xf32>
    %c176 = arith.constant 176 : index
    %c0_51 = arith.constant 0 : index
    %112 = vector.load %arg15[%c176, %c0_51] : memref<272x512xf32, #tpu.memory_space<vmem>>, vector<8x512xf32>
    tpu.vector_store %arg15[%c176, %c0_51], %111 {strides = array<i32>} : memref<272x512xf32, #tpu.memory_space<vmem>>, vector<8x512xf32>,
    %c479_i32 = arith.constant 479 : i32
    %113 = tpu.dynamic_rotate %0 by %c479_i32 dim 1 : vector<8x512xf32>, i32 -> vector<8x512xf32>
    %c23 = arith.constant 23 : index
    %c0_52 = arith.constant 0 : index
    %114 = vector.load %arg3[%c23, %c0_52] : memref<25x512xf32, #tpu.memory_space<vmem>>, vector<1x512xf32>
    %115 = vector.broadcast %114 : vector<1x512xf32> to vector<8x512xf32>
    %116 = arith.mulf %113, %115 : vector<8x512xf32>
    %c184 = arith.constant 184 : index
    %c0_53 = arith.constant 0 : index
    %117 = vector.load %arg15[%c184, %c0_53] : memref<272x512xf32, #tpu.memory_space<vmem>>, vector<8x512xf32>
    tpu.vector_store %arg15[%c184, %c0_53], %116 {strides = array<i32>} : memref<272x512xf32, #tpu.memory_space<vmem>>, vector<8x512xf32>,
    %c478_i32 = arith.constant 478 : i32
    %118 = tpu.dynamic_rotate %0 by %c478_i32 dim 1 : vector<8x512xf32>, i32 -> vector<8x512xf32>
    %c24_54 = arith.constant 24 : index
    %c0_55 = arith.constant 0 : index
    %119 = vector.load %arg3[%c24_54, %c0_55] : memref<25x512xf32, #tpu.memory_space<vmem>>, vector<1x512xf32>
    %120 = vector.broadcast %119 : vector<1x512xf32> to vector<8x512xf32>
    %121 = arith.mulf %118, %120 : vector<8x512xf32>
    %c192 = arith.constant 192 : index
    %c0_56 = arith.constant 0 : index
    %122 = vector.load %arg15[%c192, %c0_56] : memref<272x512xf32, #tpu.memory_space<vmem>>, vector<8x512xf32>
    tpu.vector_store %arg15[%c192, %c0_56], %121 {strides = array<i32>} : memref<272x512xf32, #tpu.memory_space<vmem>>, vector<8x512xf32>,
    %c17_i32_57 = arith.constant 17 : i32
    %123 = tpu.dynamic_rotate %1 by %c17_i32_57 dim 1 : vector<8x512xf32>, i32 -> vector<8x512xf32>
    %c6_58 = arith.constant 6 : index
    %c0_59 = arith.constant 0 : index
    %124 = vector.load %arg3[%c6_58, %c0_59] : memref<25x512xf32, #tpu.memory_space<vmem>>, vector<1x512xf32>
    %125 = vector.broadcast %124 : vector<1x512xf32> to vector<8x512xf32>
    %126 = arith.mulf %123, %125 : vector<8x512xf32>
    %c200 = arith.constant 200 : index
    %c0_60 = arith.constant 0 : index
    %127 = vector.load %arg15[%c200, %c0_60] : memref<272x512xf32, #tpu.memory_space<vmem>>, vector<8x512xf32>
    tpu.vector_store %arg15[%c200, %c0_60], %126 {strides = array<i32>} : memref<272x512xf32, #tpu.memory_space<vmem>>, vector<8x512xf32>,
    %c16_i32_61 = arith.constant 16 : i32
    %128 = tpu.dynamic_rotate %1 by %c16_i32_61 dim 1 : vector<8x512xf32>, i32 -> vector<8x512xf32>
    %c7_62 = arith.constant 7 : index
    %c0_63 = arith.constant 0 : index
    %129 = vector.load %arg3[%c7_62, %c0_63] : memref<25x512xf32, #tpu.memory_space<vmem>>, vector<1x512xf32>
    %130 = vector.broadcast %129 : vector<1x512xf32> to vector<8x512xf32>
    %131 = arith.mulf %128, %130 : vector<8x512xf32>
    %c208 = arith.constant 208 : index
    %c0_64 = arith.constant 0 : index
    %132 = vector.load %arg15[%c208, %c0_64] : memref<272x512xf32, #tpu.memory_space<vmem>>, vector<8x512xf32>
    tpu.vector_store %arg15[%c208, %c0_64], %131 {strides = array<i32>} : memref<272x512xf32, #tpu.memory_space<vmem>>, vector<8x512xf32>,
    %c15_i32_65 = arith.constant 15 : i32
    %133 = tpu.dynamic_rotate %1 by %c15_i32_65 dim 1 : vector<8x512xf32>, i32 -> vector<8x512xf32>
    %c8_66 = arith.constant 8 : index
    %c0_67 = arith.constant 0 : index
    %134 = vector.load %arg3[%c8_66, %c0_67] : memref<25x512xf32, #tpu.memory_space<vmem>>, vector<1x512xf32>
    %135 = vector.broadcast %134 : vector<1x512xf32> to vector<8x512xf32>
    %136 = arith.mulf %133, %135 : vector<8x512xf32>
    %c216 = arith.constant 216 : index
    %c0_68 = arith.constant 0 : index
    %137 = vector.load %arg15[%c216, %c0_68] : memref<272x512xf32, #tpu.memory_space<vmem>>, vector<8x512xf32>
    tpu.vector_store %arg15[%c216, %c0_68], %136 {strides = array<i32>} : memref<272x512xf32, #tpu.memory_space<vmem>>, vector<8x512xf32>,
    %c1_i32_69 = arith.constant 1 : i32
    %138 = tpu.dynamic_rotate %1 by %c1_i32_69 dim 1 : vector<8x512xf32>, i32 -> vector<8x512xf32>
    %c11_70 = arith.constant 11 : index
    %c0_71 = arith.constant 0 : index
    %139 = vector.load %arg3[%c11_70, %c0_71] : memref<25x512xf32, #tpu.memory_space<vmem>>, vector<1x512xf32>
    %140 = vector.broadcast %139 : vector<1x512xf32> to vector<8x512xf32>
    %141 = arith.mulf %138, %140 : vector<8x512xf32>
    %c224 = arith.constant 224 : index
    %c0_72 = arith.constant 0 : index
    %142 = vector.load %arg15[%c224, %c0_72] : memref<272x512xf32, #tpu.memory_space<vmem>>, vector<8x512xf32>
    tpu.vector_store %arg15[%c224, %c0_72], %141 {strides = array<i32>} : memref<272x512xf32, #tpu.memory_space<vmem>>, vector<8x512xf32>,
    %c232 = arith.constant 232 : index
    %c0_73 = arith.constant 0 : index
    %143 = vector.load %arg15[%c232, %c0_73] : memref<272x512xf32, #tpu.memory_space<vmem>>, vector<8x512xf32>
    tpu.vector_store %arg15[%c232, %c0_73], %1 {strides = array<i32>} : memref<272x512xf32, #tpu.memory_space<vmem>>, vector<8x512xf32>,
    %c511_i32_74 = arith.constant 511 : i32
    %144 = tpu.dynamic_rotate %1 by %c511_i32_74 dim 1 : vector<8x512xf32>, i32 -> vector<8x512xf32>
    %c13_75 = arith.constant 13 : index
    %c0_76 = arith.constant 0 : index
    %145 = vector.load %arg3[%c13_75, %c0_76] : memref<25x512xf32, #tpu.memory_space<vmem>>, vector<1x512xf32>
    %146 = vector.broadcast %145 : vector<1x512xf32> to vector<8x512xf32>
    %147 = arith.mulf %144, %146 : vector<8x512xf32>
    %c240 = arith.constant 240 : index
    %c0_77 = arith.constant 0 : index
    %148 = vector.load %arg15[%c240, %c0_77] : memref<272x512xf32, #tpu.memory_space<vmem>>, vector<8x512xf32>
    tpu.vector_store %arg15[%c240, %c0_77], %147 {strides = array<i32>} : memref<272x512xf32, #tpu.memory_space<vmem>>, vector<8x512xf32>,
    %c497_i32_78 = arith.constant 497 : i32
    %149 = tpu.dynamic_rotate %1 by %c497_i32_78 dim 1 : vector<8x512xf32>, i32 -> vector<8x512xf32>
    %c16_79 = arith.constant 16 : index
    %c0_80 = arith.constant 0 : index
    %150 = vector.load %arg3[%c16_79, %c0_80] : memref<25x512xf32, #tpu.memory_space<vmem>>, vector<1x512xf32>
    %151 = vector.broadcast %150 : vector<1x512xf32> to vector<8x512xf32>
    %152 = arith.mulf %149, %151 : vector<8x512xf32>
    %c248 = arith.constant 248 : index
    %c0_81 = arith.constant 0 : index
    %153 = vector.load %arg15[%c248, %c0_81] : memref<272x512xf32, #tpu.memory_space<vmem>>, vector<8x512xf32>
    tpu.vector_store %arg15[%c248, %c0_81], %152 {strides = array<i32>} : memref<272x512xf32, #tpu.memory_space<vmem>>, vector<8x512xf32>,
    %c496_i32_82 = arith.constant 496 : i32
    %154 = tpu.dynamic_rotate %1 by %c496_i32_82 dim 1 : vector<8x512xf32>, i32 -> vector<8x512xf32>
    %c17_83 = arith.constant 17 : index
    %c0_84 = arith.constant 0 : index
    %155 = vector.load %arg3[%c17_83, %c0_84] : memref<25x512xf32, #tpu.memory_space<vmem>>, vector<1x512xf32>
    %156 = vector.broadcast %155 : vector<1x512xf32> to vector<8x512xf32>
    %157 = arith.mulf %154, %156 : vector<8x512xf32>
    %c256 = arith.constant 256 : index
    %c0_85 = arith.constant 0 : index
    %158 = vector.load %arg15[%c256, %c0_85] : memref<272x512xf32, #tpu.memory_space<vmem>>, vector<8x512xf32>
    tpu.vector_store %arg15[%c256, %c0_85], %157 {strides = array<i32>} : memref<272x512xf32, #tpu.memory_space<vmem>>, vector<8x512xf32>,
    %c495_i32_86 = arith.constant 495 : i32
    %159 = tpu.dynamic_rotate %1 by %c495_i32_86 dim 1 : vector<8x512xf32>, i32 -> vector<8x512xf32>
    %c18_87 = arith.constant 18 : index
    %c0_88 = arith.constant 0 : index
    %160 = vector.load %arg3[%c18_87, %c0_88] : memref<25x512xf32, #tpu.memory_space<vmem>>, vector<1x512xf32>
    %161 = vector.broadcast %160 : vector<1x512xf32> to vector<8x512xf32>
    %162 = arith.mulf %159, %161 : vector<8x512xf32>
    %c264 = arith.constant 264 : index
    %c0_89 = arith.constant 0 : index
    %163 = vector.load %arg15[%c264, %c0_89] : memref<272x512xf32, #tpu.memory_space<vmem>>, vector<8x512xf32>
    tpu.vector_store %arg15[%c264, %c0_89], %162 {strides = array<i32>} : memref<272x512xf32, #tpu.memory_space<vmem>>, vector<8x512xf32>,
    %c0_90 = arith.constant 0 : index
    %c0_91 = arith.constant 0 : index
    %164 = vector.load %arg4[%c0_90, %c0_91] : memref<16x272xbf16, #tpu.memory_space<vmem>>, vector<16x272xbf16>
    %c0_92 = arith.constant 0 : index
    %c0_93 = arith.constant 0 : index
    %165 = vector.load %arg15[%c0_92, %c0_93] : memref<272x512xf32, #tpu.memory_space<vmem>>, vector<272x512xf32>
    %166 = arith.truncf %165 : vector<272x512xf32> to vector<272x512xbf16>
    %cst = arith.constant dense<0.000000e+00> : vector<16x512xf32>
    %167 = tpu.matmul %164, %166, %cst {dimension_numbers = #tpu.dot_dimension_numbers<[1], [0], [0], [1], [0, 0, 1, 1], [], []>} : vector<16x272xbf16>, vector<272x512xbf16>, vector<16x512xf32> -> vector<16x512xf32>
    %c0_94 = arith.constant 0 : index
    %c0_95 = arith.constant 0 : index
    %168 = vector.load %arg5[%c0_94, %c0_95] : memref<16x1xf32, #tpu.memory_space<vmem>>, vector<16x1xf32>
    %169 = vector.broadcast %168 : vector<16x1xf32> to vector<16x512xf32>
    %170 = arith.addf %167, %169 : vector<16x512xf32>
    %c4_96 = arith.constant 4 : index
    %c0_97 = arith.constant 0 : index
    %c0_98 = arith.constant 0 : index
    %171 = vector.load %arg6[%c4_96, %c0_97, %c0_98] : memref<9x16x1xf32, #tpu.memory_space<vmem>>, vector<1x16x1xf32>
    %172 = vector.shape_cast %171 : vector<1x16x1xf32> to vector<16x1xf32>
    %173 = vector.broadcast %172 : vector<16x1xf32> to vector<16x512xf32>
    %174 = arith.mulf %170, %173 : vector<16x512xf32>
    %c17_i32_99 = arith.constant 17 : i32
    %175 = tpu.dynamic_rotate %170 by %c17_i32_99 dim 1 : vector<16x512xf32>, i32 -> vector<16x512xf32>
    %c6_100 = arith.constant 6 : index
    %c0_101 = arith.constant 0 : index
    %176 = vector.load %arg3[%c6_100, %c0_101] : memref<25x512xf32, #tpu.memory_space<vmem>>, vector<1x512xf32>
    %177 = vector.broadcast %176 : vector<1x512xf32> to vector<16x512xf32>
    %178 = arith.mulf %175, %177 : vector<16x512xf32>
    %c0_102 = arith.constant 0 : index
    %c0_103 = arith.constant 0 : index
    %c0_104 = arith.constant 0 : index
    %179 = vector.load %arg6[%c0_102, %c0_103, %c0_104] : memref<9x16x1xf32, #tpu.memory_space<vmem>>, vector<1x16x1xf32>
    %180 = vector.shape_cast %179 : vector<1x16x1xf32> to vector<16x1xf32>
    %181 = vector.broadcast %180 : vector<16x1xf32> to vector<16x512xf32>
    %182 = arith.mulf %178, %181 : vector<16x512xf32>
    %183 = arith.addf %174, %182 : vector<16x512xf32>
    %c16_i32_105 = arith.constant 16 : i32
    %184 = tpu.dynamic_rotate %170 by %c16_i32_105 dim 1 : vector<16x512xf32>, i32 -> vector<16x512xf32>
    %c7_106 = arith.constant 7 : index
    %c0_107 = arith.constant 0 : index
    %185 = vector.load %arg3[%c7_106, %c0_107] : memref<25x512xf32, #tpu.memory_space<vmem>>, vector<1x512xf32>
    %186 = vector.broadcast %185 : vector<1x512xf32> to vector<16x512xf32>
    %187 = arith.mulf %184, %186 : vector<16x512xf32>
    %c1_108 = arith.constant 1 : index
    %c0_109 = arith.constant 0 : index
    %c0_110 = arith.constant 0 : index
    %188 = vector.load %arg6[%c1_108, %c0_109, %c0_110] : memref<9x16x1xf32, #tpu.memory_space<vmem>>, vector<1x16x1xf32>
    %189 = vector.shape_cast %188 : vector<1x16x1xf32> to vector<16x1xf32>
    %190 = vector.broadcast %189 : vector<16x1xf32> to vector<16x512xf32>
    %191 = arith.mulf %187, %190 : vector<16x512xf32>
    %192 = arith.addf %183, %191 : vector<16x512xf32>
    %c15_i32_111 = arith.constant 15 : i32
    %193 = tpu.dynamic_rotate %170 by %c15_i32_111 dim 1 : vector<16x512xf32>, i32 -> vector<16x512xf32>
    %c8_112 = arith.constant 8 : index
    %c0_113 = arith.constant 0 : index
    %194 = vector.load %arg3[%c8_112, %c0_113] : memref<25x512xf32, #tpu.memory_space<vmem>>, vector<1x512xf32>
    %195 = vector.broadcast %194 : vector<1x512xf32> to vector<16x512xf32>
    %196 = arith.mulf %193, %195 : vector<16x512xf32>
    %c2_114 = arith.constant 2 : index
    %c0_115 = arith.constant 0 : index
    %c0_116 = arith.constant 0 : index
    %197 = vector.load %arg6[%c2_114, %c0_115, %c0_116] : memref<9x16x1xf32, #tpu.memory_space<vmem>>, vector<1x16x1xf32>
    %198 = vector.shape_cast %197 : vector<1x16x1xf32> to vector<16x1xf32>
    %199 = vector.broadcast %198 : vector<16x1xf32> to vector<16x512xf32>
    %200 = arith.mulf %196, %199 : vector<16x512xf32>
    %201 = arith.addf %192, %200 : vector<16x512xf32>
    %c1_i32_117 = arith.constant 1 : i32
    %202 = tpu.dynamic_rotate %170 by %c1_i32_117 dim 1 : vector<16x512xf32>, i32 -> vector<16x512xf32>
    %c11_118 = arith.constant 11 : index
    %c0_119 = arith.constant 0 : index
    %203 = vector.load %arg3[%c11_118, %c0_119] : memref<25x512xf32, #tpu.memory_space<vmem>>, vector<1x512xf32>
    %204 = vector.broadcast %203 : vector<1x512xf32> to vector<16x512xf32>
    %205 = arith.mulf %202, %204 : vector<16x512xf32>
    %c3_120 = arith.constant 3 : index
    %c0_121 = arith.constant 0 : index
    %c0_122 = arith.constant 0 : index
    %206 = vector.load %arg6[%c3_120, %c0_121, %c0_122] : memref<9x16x1xf32, #tpu.memory_space<vmem>>, vector<1x16x1xf32>
    %207 = vector.shape_cast %206 : vector<1x16x1xf32> to vector<16x1xf32>
    %208 = vector.broadcast %207 : vector<16x1xf32> to vector<16x512xf32>
    %209 = arith.mulf %205, %208 : vector<16x512xf32>
    %210 = arith.addf %201, %209 : vector<16x512xf32>
    %c511_i32_123 = arith.constant 511 : i32
    %211 = tpu.dynamic_rotate %170 by %c511_i32_123 dim 1 : vector<16x512xf32>, i32 -> vector<16x512xf32>
    %c13_124 = arith.constant 13 : index
    %c0_125 = arith.constant 0 : index
    %212 = vector.load %arg3[%c13_124, %c0_125] : memref<25x512xf32, #tpu.memory_space<vmem>>, vector<1x512xf32>
    %213 = vector.broadcast %212 : vector<1x512xf32> to vector<16x512xf32>
    %214 = arith.mulf %211, %213 : vector<16x512xf32>
    %c5_126 = arith.constant 5 : index
    %c0_127 = arith.constant 0 : index
    %c0_128 = arith.constant 0 : index
    %215 = vector.load %arg6[%c5_126, %c0_127, %c0_128] : memref<9x16x1xf32, #tpu.memory_space<vmem>>, vector<1x16x1xf32>
    %216 = vector.shape_cast %215 : vector<1x16x1xf32> to vector<16x1xf32>
    %217 = vector.broadcast %216 : vector<16x1xf32> to vector<16x512xf32>
    %218 = arith.mulf %214, %217 : vector<16x512xf32>
    %219 = arith.addf %210, %218 : vector<16x512xf32>
    %c497_i32_129 = arith.constant 497 : i32
    %220 = tpu.dynamic_rotate %170 by %c497_i32_129 dim 1 : vector<16x512xf32>, i32 -> vector<16x512xf32>
    %c16_130 = arith.constant 16 : index
    %c0_131 = arith.constant 0 : index
    %221 = vector.load %arg3[%c16_130, %c0_131] : memref<25x512xf32, #tpu.memory_space<vmem>>, vector<1x512xf32>
    %222 = vector.broadcast %221 : vector<1x512xf32> to vector<16x512xf32>
    %223 = arith.mulf %220, %222 : vector<16x512xf32>
    %c6_132 = arith.constant 6 : index
    %c0_133 = arith.constant 0 : index
    %c0_134 = arith.constant 0 : index
    %224 = vector.load %arg6[%c6_132, %c0_133, %c0_134] : memref<9x16x1xf32, #tpu.memory_space<vmem>>, vector<1x16x1xf32>
    %225 = vector.shape_cast %224 : vector<1x16x1xf32> to vector<16x1xf32>
    %226 = vector.broadcast %225 : vector<16x1xf32> to vector<16x512xf32>
    %227 = arith.mulf %223, %226 : vector<16x512xf32>
    %228 = arith.addf %219, %227 : vector<16x512xf32>
    %c496_i32_135 = arith.constant 496 : i32
    %229 = tpu.dynamic_rotate %170 by %c496_i32_135 dim 1 : vector<16x512xf32>, i32 -> vector<16x512xf32>
    %c17_136 = arith.constant 17 : index
    %c0_137 = arith.constant 0 : index
    %230 = vector.load %arg3[%c17_136, %c0_137] : memref<25x512xf32, #tpu.memory_space<vmem>>, vector<1x512xf32>
    %231 = vector.broadcast %230 : vector<1x512xf32> to vector<16x512xf32>
    %232 = arith.mulf %229, %231 : vector<16x512xf32>
    %c7_138 = arith.constant 7 : index
    %c0_139 = arith.constant 0 : index
    %c0_140 = arith.constant 0 : index
    %233 = vector.load %arg6[%c7_138, %c0_139, %c0_140] : memref<9x16x1xf32, #tpu.memory_space<vmem>>, vector<1x16x1xf32>
    %234 = vector.shape_cast %233 : vector<1x16x1xf32> to vector<16x1xf32>
    %235 = vector.broadcast %234 : vector<16x1xf32> to vector<16x512xf32>
    %236 = arith.mulf %232, %235 : vector<16x512xf32>
    %237 = arith.addf %228, %236 : vector<16x512xf32>
    %c495_i32_141 = arith.constant 495 : i32
    %238 = tpu.dynamic_rotate %170 by %c495_i32_141 dim 1 : vector<16x512xf32>, i32 -> vector<16x512xf32>
    %c18_142 = arith.constant 18 : index
    %c0_143 = arith.constant 0 : index
    %239 = vector.load %arg3[%c18_142, %c0_143] : memref<25x512xf32, #tpu.memory_space<vmem>>, vector<1x512xf32>
    %240 = vector.broadcast %239 : vector<1x512xf32> to vector<16x512xf32>
    %241 = arith.mulf %238, %240 : vector<16x512xf32>
    %c8_144 = arith.constant 8 : index
    %c0_145 = arith.constant 0 : index
    %c0_146 = arith.constant 0 : index
    %242 = vector.load %arg6[%c8_144, %c0_145, %c0_146] : memref<9x16x1xf32, #tpu.memory_space<vmem>>, vector<1x16x1xf32>
    %243 = vector.shape_cast %242 : vector<1x16x1xf32> to vector<16x1xf32>
    %244 = vector.broadcast %243 : vector<16x1xf32> to vector<16x512xf32>
    %245 = arith.mulf %241, %244 : vector<16x512xf32>
    %246 = arith.addf %237, %245 : vector<16x512xf32>
    %c0_147 = arith.constant 0 : index
    %c0_148 = arith.constant 0 : index
    %247 = vector.load %arg7[%c0_147, %c0_148] : memref<16x1xf32, #tpu.memory_space<vmem>>, vector<16x1xf32>
    %248 = vector.broadcast %247 : vector<16x1xf32> to vector<16x512xf32>
    %249 = arith.addf %246, %248 : vector<16x512xf32>
    %c0_149 = arith.constant 0 : index
    %c0_150 = arith.constant 0 : index
    %250 = vector.load %arg8[%c0_149, %c0_150] : memref<16x16xbf16, #tpu.memory_space<vmem>>, vector<16x16xbf16>
    %251 = arith.truncf %249 : vector<16x512xf32> to vector<16x512xbf16>
    %cst_151 = arith.constant dense<0.000000e+00> : vector<16x512xf32>
    %252 = tpu.matmul %250, %251, %cst_151 {dimension_numbers = #tpu.dot_dimension_numbers<[1], [0], [0], [1], [0, 0, 1, 1], [], []>} : vector<16x16xbf16>, vector<16x512xbf16>, vector<16x512xf32> -> vector<16x512xf32>
    %c0_152 = arith.constant 0 : index
    %c0_153 = arith.constant 0 : index
    %253 = vector.load %arg9[%c0_152, %c0_153] : memref<16x1xf32, #tpu.memory_space<vmem>>, vector<16x1xf32>
    %254 = vector.broadcast %253 : vector<16x1xf32> to vector<16x512xf32>
    %255 = arith.addf %252, %254 : vector<16x512xf32>
    %c4_154 = arith.constant 4 : index
    %c0_155 = arith.constant 0 : index
    %c0_156 = arith.constant 0 : index
    %256 = vector.load %arg10[%c4_154, %c0_155, %c0_156] : memref<9x16x1xf32, #tpu.memory_space<vmem>>, vector<1x16x1xf32>
    %257 = vector.shape_cast %256 : vector<1x16x1xf32> to vector<16x1xf32>
    %258 = vector.broadcast %257 : vector<16x1xf32> to vector<16x512xf32>
    %259 = arith.mulf %255, %258 : vector<16x512xf32>
    %c4_157 = arith.constant 4 : index
    %c0_158 = arith.constant 0 : index
    %c0_159 = arith.constant 0 : index
    %260 = vector.load %arg12[%c4_157, %c0_158, %c0_159] : memref<9x16x1xf32, #tpu.memory_space<vmem>>, vector<1x16x1xf32>
    %261 = vector.shape_cast %260 : vector<1x16x1xf32> to vector<16x1xf32>
    %262 = vector.broadcast %261 : vector<16x1xf32> to vector<16x512xf32>
    %263 = arith.mulf %255, %262 : vector<16x512xf32>
    %c17_i32_160 = arith.constant 17 : i32
    %264 = tpu.dynamic_rotate %255 by %c17_i32_160 dim 1 : vector<16x512xf32>, i32 -> vector<16x512xf32>
    %c6_161 = arith.constant 6 : index
    %c0_162 = arith.constant 0 : index
    %265 = vector.load %arg3[%c6_161, %c0_162] : memref<25x512xf32, #tpu.memory_space<vmem>>, vector<1x512xf32>
    %266 = vector.broadcast %265 : vector<1x512xf32> to vector<16x512xf32>
    %267 = arith.mulf %264, %266 : vector<16x512xf32>
    %c0_163 = arith.constant 0 : index
    %c0_164 = arith.constant 0 : index
    %c0_165 = arith.constant 0 : index
    %268 = vector.load %arg10[%c0_163, %c0_164, %c0_165] : memref<9x16x1xf32, #tpu.memory_space<vmem>>, vector<1x16x1xf32>
    %269 = vector.shape_cast %268 : vector<1x16x1xf32> to vector<16x1xf32>
    %270 = vector.broadcast %269 : vector<16x1xf32> to vector<16x512xf32>
    %271 = arith.mulf %267, %270 : vector<16x512xf32>
    %272 = arith.addf %259, %271 : vector<16x512xf32>
    %c0_166 = arith.constant 0 : index
    %c0_167 = arith.constant 0 : index
    %c0_168 = arith.constant 0 : index
    %273 = vector.load %arg12[%c0_166, %c0_167, %c0_168] : memref<9x16x1xf32, #tpu.memory_space<vmem>>, vector<1x16x1xf32>
    %274 = vector.shape_cast %273 : vector<1x16x1xf32> to vector<16x1xf32>
    %275 = vector.broadcast %274 : vector<16x1xf32> to vector<16x512xf32>
    %276 = arith.mulf %267, %275 : vector<16x512xf32>
    %277 = arith.addf %263, %276 : vector<16x512xf32>
    %c16_i32_169 = arith.constant 16 : i32
    %278 = tpu.dynamic_rotate %255 by %c16_i32_169 dim 1 : vector<16x512xf32>, i32 -> vector<16x512xf32>
    %c7_170 = arith.constant 7 : index
    %c0_171 = arith.constant 0 : index
    %279 = vector.load %arg3[%c7_170, %c0_171] : memref<25x512xf32, #tpu.memory_space<vmem>>, vector<1x512xf32>
    %280 = vector.broadcast %279 : vector<1x512xf32> to vector<16x512xf32>
    %281 = arith.mulf %278, %280 : vector<16x512xf32>
    %c1_172 = arith.constant 1 : index
    %c0_173 = arith.constant 0 : index
    %c0_174 = arith.constant 0 : index
    %282 = vector.load %arg10[%c1_172, %c0_173, %c0_174] : memref<9x16x1xf32, #tpu.memory_space<vmem>>, vector<1x16x1xf32>
    %283 = vector.shape_cast %282 : vector<1x16x1xf32> to vector<16x1xf32>
    %284 = vector.broadcast %283 : vector<16x1xf32> to vector<16x512xf32>
    %285 = arith.mulf %281, %284 : vector<16x512xf32>
    %286 = arith.addf %272, %285 : vector<16x512xf32>
    %c1_175 = arith.constant 1 : index
    %c0_176 = arith.constant 0 : index
    %c0_177 = arith.constant 0 : index
    %287 = vector.load %arg12[%c1_175, %c0_176, %c0_177] : memref<9x16x1xf32, #tpu.memory_space<vmem>>, vector<1x16x1xf32>
    %288 = vector.shape_cast %287 : vector<1x16x1xf32> to vector<16x1xf32>
    %289 = vector.broadcast %288 : vector<16x1xf32> to vector<16x512xf32>
    %290 = arith.mulf %281, %289 : vector<16x512xf32>
    %291 = arith.addf %277, %290 : vector<16x512xf32>
    %c15_i32_178 = arith.constant 15 : i32
    %292 = tpu.dynamic_rotate %255 by %c15_i32_178 dim 1 : vector<16x512xf32>, i32 -> vector<16x512xf32>
    %c8_179 = arith.constant 8 : index
    %c0_180 = arith.constant 0 : index
    %293 = vector.load %arg3[%c8_179, %c0_180] : memref<25x512xf32, #tpu.memory_space<vmem>>, vector<1x512xf32>
    %294 = vector.broadcast %293 : vector<1x512xf32> to vector<16x512xf32>
    %295 = arith.mulf %292, %294 : vector<16x512xf32>
    %c2_181 = arith.constant 2 : index
    %c0_182 = arith.constant 0 : index
    %c0_183 = arith.constant 0 : index
    %296 = vector.load %arg10[%c2_181, %c0_182, %c0_183] : memref<9x16x1xf32, #tpu.memory_space<vmem>>, vector<1x16x1xf32>
    %297 = vector.shape_cast %296 : vector<1x16x1xf32> to vector<16x1xf32>
    %298 = vector.broadcast %297 : vector<16x1xf32> to vector<16x512xf32>
    %299 = arith.mulf %295, %298 : vector<16x512xf32>
    %300 = arith.addf %286, %299 : vector<16x512xf32>
    %c2_184 = arith.constant 2 : index
    %c0_185 = arith.constant 0 : index
    %c0_186 = arith.constant 0 : index
    %301 = vector.load %arg12[%c2_184, %c0_185, %c0_186] : memref<9x16x1xf32, #tpu.memory_space<vmem>>, vector<1x16x1xf32>
    %302 = vector.shape_cast %301 : vector<1x16x1xf32> to vector<16x1xf32>
    %303 = vector.broadcast %302 : vector<16x1xf32> to vector<16x512xf32>
    %304 = arith.mulf %295, %303 : vector<16x512xf32>
    %305 = arith.addf %291, %304 : vector<16x512xf32>
    %c1_i32_187 = arith.constant 1 : i32
    %306 = tpu.dynamic_rotate %255 by %c1_i32_187 dim 1 : vector<16x512xf32>, i32 -> vector<16x512xf32>
    %c11_188 = arith.constant 11 : index
    %c0_189 = arith.constant 0 : index
    %307 = vector.load %arg3[%c11_188, %c0_189] : memref<25x512xf32, #tpu.memory_space<vmem>>, vector<1x512xf32>
    %308 = vector.broadcast %307 : vector<1x512xf32> to vector<16x512xf32>
    %309 = arith.mulf %306, %308 : vector<16x512xf32>
    %c3_190 = arith.constant 3 : index
    %c0_191 = arith.constant 0 : index
    %c0_192 = arith.constant 0 : index
    %310 = vector.load %arg10[%c3_190, %c0_191, %c0_192] : memref<9x16x1xf32, #tpu.memory_space<vmem>>, vector<1x16x1xf32>
    %311 = vector.shape_cast %310 : vector<1x16x1xf32> to vector<16x1xf32>
    %312 = vector.broadcast %311 : vector<16x1xf32> to vector<16x512xf32>
    %313 = arith.mulf %309, %312 : vector<16x512xf32>
    %314 = arith.addf %300, %313 : vector<16x512xf32>
    %c3_193 = arith.constant 3 : index
    %c0_194 = arith.constant 0 : index
    %c0_195 = arith.constant 0 : index
    %315 = vector.load %arg12[%c3_193, %c0_194, %c0_195] : memref<9x16x1xf32, #tpu.memory_space<vmem>>, vector<1x16x1xf32>
    %316 = vector.shape_cast %315 : vector<1x16x1xf32> to vector<16x1xf32>
    %317 = vector.broadcast %316 : vector<16x1xf32> to vector<16x512xf32>
    %318 = arith.mulf %309, %317 : vector<16x512xf32>
    %319 = arith.addf %305, %318 : vector<16x512xf32>
    %c511_i32_196 = arith.constant 511 : i32
    %320 = tpu.dynamic_rotate %255 by %c511_i32_196 dim 1 : vector<16x512xf32>, i32 -> vector<16x512xf32>
    %c13_197 = arith.constant 13 : index
    %c0_198 = arith.constant 0 : index
    %321 = vector.load %arg3[%c13_197, %c0_198] : memref<25x512xf32, #tpu.memory_space<vmem>>, vector<1x512xf32>
    %322 = vector.broadcast %321 : vector<1x512xf32> to vector<16x512xf32>
    %323 = arith.mulf %320, %322 : vector<16x512xf32>
    %c5_199 = arith.constant 5 : index
    %c0_200 = arith.constant 0 : index
    %c0_201 = arith.constant 0 : index
    %324 = vector.load %arg10[%c5_199, %c0_200, %c0_201] : memref<9x16x1xf32, #tpu.memory_space<vmem>>, vector<1x16x1xf32>
    %325 = vector.shape_cast %324 : vector<1x16x1xf32> to vector<16x1xf32>
    %326 = vector.broadcast %325 : vector<16x1xf32> to vector<16x512xf32>
    %327 = arith.mulf %323, %326 : vector<16x512xf32>
    %328 = arith.addf %314, %327 : vector<16x512xf32>
    %c5_202 = arith.constant 5 : index
    %c0_203 = arith.constant 0 : index
    %c0_204 = arith.constant 0 : index
    %329 = vector.load %arg12[%c5_202, %c0_203, %c0_204] : memref<9x16x1xf32, #tpu.memory_space<vmem>>, vector<1x16x1xf32>
    %330 = vector.shape_cast %329 : vector<1x16x1xf32> to vector<16x1xf32>
    %331 = vector.broadcast %330 : vector<16x1xf32> to vector<16x512xf32>
    %332 = arith.mulf %323, %331 : vector<16x512xf32>
    %333 = arith.addf %319, %332 : vector<16x512xf32>
    %c497_i32_205 = arith.constant 497 : i32
    %334 = tpu.dynamic_rotate %255 by %c497_i32_205 dim 1 : vector<16x512xf32>, i32 -> vector<16x512xf32>
    %c16_206 = arith.constant 16 : index
    %c0_207 = arith.constant 0 : index
    %335 = vector.load %arg3[%c16_206, %c0_207] : memref<25x512xf32, #tpu.memory_space<vmem>>, vector<1x512xf32>
    %336 = vector.broadcast %335 : vector<1x512xf32> to vector<16x512xf32>
    %337 = arith.mulf %334, %336 : vector<16x512xf32>
    %c6_208 = arith.constant 6 : index
    %c0_209 = arith.constant 0 : index
    %c0_210 = arith.constant 0 : index
    %338 = vector.load %arg10[%c6_208, %c0_209, %c0_210] : memref<9x16x1xf32, #tpu.memory_space<vmem>>, vector<1x16x1xf32>
    %339 = vector.shape_cast %338 : vector<1x16x1xf32> to vector<16x1xf32>
    %340 = vector.broadcast %339 : vector<16x1xf32> to vector<16x512xf32>
    %341 = arith.mulf %337, %340 : vector<16x512xf32>
    %342 = arith.addf %328, %341 : vector<16x512xf32>
    %c6_211 = arith.constant 6 : index
    %c0_212 = arith.constant 0 : index
    %c0_213 = arith.constant 0 : index
    %343 = vector.load %arg12[%c6_211, %c0_212, %c0_213] : memref<9x16x1xf32, #tpu.memory_space<vmem>>, vector<1x16x1xf32>
    %344 = vector.shape_cast %343 : vector<1x16x1xf32> to vector<16x1xf32>
    %345 = vector.broadcast %344 : vector<16x1xf32> to vector<16x512xf32>
    %346 = arith.mulf %337, %345 : vector<16x512xf32>
    %347 = arith.addf %333, %346 : vector<16x512xf32>
    %c496_i32_214 = arith.constant 496 : i32
    %348 = tpu.dynamic_rotate %255 by %c496_i32_214 dim 1 : vector<16x512xf32>, i32 -> vector<16x512xf32>
    %c17_215 = arith.constant 17 : index
    %c0_216 = arith.constant 0 : index
    %349 = vector.load %arg3[%c17_215, %c0_216] : memref<25x512xf32, #tpu.memory_space<vmem>>, vector<1x512xf32>
    %350 = vector.broadcast %349 : vector<1x512xf32> to vector<16x512xf32>
    %351 = arith.mulf %348, %350 : vector<16x512xf32>
    %c7_217 = arith.constant 7 : index
    %c0_218 = arith.constant 0 : index
    %c0_219 = arith.constant 0 : index
    %352 = vector.load %arg10[%c7_217, %c0_218, %c0_219] : memref<9x16x1xf32, #tpu.memory_space<vmem>>, vector<1x16x1xf32>
    %353 = vector.shape_cast %352 : vector<1x16x1xf32> to vector<16x1xf32>
    %354 = vector.broadcast %353 : vector<16x1xf32> to vector<16x512xf32>
    %355 = arith.mulf %351, %354 : vector<16x512xf32>
    %356 = arith.addf %342, %355 : vector<16x512xf32>
    %c7_220 = arith.constant 7 : index
    %c0_221 = arith.constant 0 : index
    %c0_222 = arith.constant 0 : index
    %357 = vector.load %arg12[%c7_220, %c0_221, %c0_222] : memref<9x16x1xf32, #tpu.memory_space<vmem>>, vector<1x16x1xf32>
    %358 = vector.shape_cast %357 : vector<1x16x1xf32> to vector<16x1xf32>
    %359 = vector.broadcast %358 : vector<16x1xf32> to vector<16x512xf32>
    %360 = arith.mulf %351, %359 : vector<16x512xf32>
    %361 = arith.addf %347, %360 : vector<16x512xf32>
    %c495_i32_223 = arith.constant 495 : i32
    %362 = tpu.dynamic_rotate %255 by %c495_i32_223 dim 1 : vector<16x512xf32>, i32 -> vector<16x512xf32>
    %c18_224 = arith.constant 18 : index
    %c0_225 = arith.constant 0 : index
    %363 = vector.load %arg3[%c18_224, %c0_225] : memref<25x512xf32, #tpu.memory_space<vmem>>, vector<1x512xf32>
    %364 = vector.broadcast %363 : vector<1x512xf32> to vector<16x512xf32>
    %365 = arith.mulf %362, %364 : vector<16x512xf32>
    %c8_226 = arith.constant 8 : index
    %c0_227 = arith.constant 0 : index
    %c0_228 = arith.constant 0 : index
    %366 = vector.load %arg10[%c8_226, %c0_227, %c0_228] : memref<9x16x1xf32, #tpu.memory_space<vmem>>, vector<1x16x1xf32>
    %367 = vector.shape_cast %366 : vector<1x16x1xf32> to vector<16x1xf32>
    %368 = vector.broadcast %367 : vector<16x1xf32> to vector<16x512xf32>
    %369 = arith.mulf %365, %368 : vector<16x512xf32>
    %370 = arith.addf %356, %369 : vector<16x512xf32>
    %c8_229 = arith.constant 8 : index
    %c0_230 = arith.constant 0 : index
    %c0_231 = arith.constant 0 : index
    %371 = vector.load %arg12[%c8_229, %c0_230, %c0_231] : memref<9x16x1xf32, #tpu.memory_space<vmem>>, vector<1x16x1xf32>
    %372 = vector.shape_cast %371 : vector<1x16x1xf32> to vector<16x1xf32>
    %373 = vector.broadcast %372 : vector<16x1xf32> to vector<16x512xf32>
    %374 = arith.mulf %365, %373 : vector<16x512xf32>
    %375 = arith.addf %361, %374 : vector<16x512xf32>
    %c0_232 = arith.constant 0 : index
    %c0_233 = arith.constant 0 : index
    %376 = vector.load %arg11[%c0_232, %c0_233] : memref<16x1xf32, #tpu.memory_space<vmem>>, vector<16x1xf32>
    %377 = vector.broadcast %376 : vector<16x1xf32> to vector<16x512xf32>
    %378 = arith.addf %370, %377 : vector<16x512xf32>
    %c0_234 = arith.constant 0 : index
    %c0_235 = arith.constant 0 : index
    %379 = vector.load %arg13[%c0_234, %c0_235] : memref<16x1xf32, #tpu.memory_space<vmem>>, vector<16x1xf32>
    %380 = vector.broadcast %379 : vector<16x1xf32> to vector<16x512xf32>
    %381 = arith.addf %375, %380 : vector<16x512xf32>
    %382 = arith.negf %381 : vector<16x512xf32>
    %383 = math.exp %382 : vector<16x512xf32>
    %cst_236 = arith.constant 1.000000e+00 : f32
    %384 = vector.broadcast %cst_236 : f32 to vector<16x512xf32>
    %385 = arith.addf %384, %383 : vector<16x512xf32>
    %386 = arith.divf %384, %385 : vector<16x512xf32>
    %387 = arith.mulf %378, %386 : vector<16x512xf32>
    %388 = arith.addf %387, %170 : vector<16x512xf32>
    %c0_237 = arith.constant 0 : index
    %c0_238 = arith.constant 0 : index
    %389 = vector.load %arg14[%c0_237, %c0_238] : memref<16x512xf32, #tpu.memory_space<vmem>>, vector<16x512xf32>
    tpu.vector_store %arg14[%c0_237, %c0_238], %388 {strides = array<i32>} : memref<16x512xf32, #tpu.memory_space<vmem>>, vector<16x512xf32>,
    return
  }
  func.func @transform_0(%arg0: i32) -> (i32, i32) {
    %c0_i32 = arith.constant 0 : i32
    %c0_i32_0 = arith.constant 0 : i32
    return %c0_i32, %arg0 : i32, i32
  }
  func.func @transform_1(%arg0: i32) -> (i32, i32) {
    %c0_i32 = arith.constant 0 : i32
    %c0_i32_0 = arith.constant 0 : i32
    return %c0_i32, %arg0 : i32, i32
  }
  func.func @transform_2(%arg0: i32) -> (i32, i32) {
    %c0_i32 = arith.constant 0 : i32
    %c0_i32_0 = arith.constant 0 : i32
    %c0_i32_1 = arith.constant 0 : i32
    return %c0_i32, %c0_i32_0 : i32, i32
  }
  func.func @transform_3(%arg0: i32) -> (i32, i32) {
    %c0_i32 = arith.constant 0 : i32
    %c0_i32_0 = arith.constant 0 : i32
    %c0_i32_1 = arith.constant 0 : i32
    return %c0_i32, %c0_i32_0 : i32, i32
  }
  func.func @transform_4(%arg0: i32) -> (i32, i32) {
    %c0_i32 = arith.constant 0 : i32
    %c0_i32_0 = arith.constant 0 : i32
    %c0_i32_1 = arith.constant 0 : i32
    return %c0_i32, %c0_i32_0 : i32, i32
  }
  func.func @transform_5(%arg0: i32) -> (i32, i32, i32) {
    %c0_i32 = arith.constant 0 : i32
    %c0_i32_0 = arith.constant 0 : i32
    %c0_i32_1 = arith.constant 0 : i32
    %c0_i32_2 = arith.constant 0 : i32
    return %c0_i32, %c0_i32_0, %c0_i32_1 : i32, i32, i32
  }
  func.func @transform_6(%arg0: i32) -> (i32, i32) {
    %c0_i32 = arith.constant 0 : i32
    %c0_i32_0 = arith.constant 0 : i32
    %c0_i32_1 = arith.constant 0 : i32
    return %c0_i32, %c0_i32_0 : i32, i32
  }
  func.func @transform_7(%arg0: i32) -> (i32, i32) {
    %c0_i32 = arith.constant 0 : i32
    %c0_i32_0 = arith.constant 0 : i32
    %c0_i32_1 = arith.constant 0 : i32
    return %c0_i32, %c0_i32_0 : i32, i32
  }
  func.func @transform_8(%arg0: i32) -> (i32, i32) {
    %c0_i32 = arith.constant 0 : i32
    %c0_i32_0 = arith.constant 0 : i32
    %c0_i32_1 = arith.constant 0 : i32
    return %c0_i32, %c0_i32_0 : i32, i32
  }
  func.func @transform_9(%arg0: i32) -> (i32, i32, i32) {
    %c0_i32 = arith.constant 0 : i32
    %c0_i32_0 = arith.constant 0 : i32
    %c0_i32_1 = arith.constant 0 : i32
    %c0_i32_2 = arith.constant 0 : i32
    return %c0_i32, %c0_i32_0, %c0_i32_1 : i32, i32, i32
  }
  func.func @transform_10(%arg0: i32) -> (i32, i32) {
    %c0_i32 = arith.constant 0 : i32
    %c0_i32_0 = arith.constant 0 : i32
    %c0_i32_1 = arith.constant 0 : i32
    return %c0_i32, %c0_i32_0 : i32, i32
  }
  func.func @transform_11(%arg0: i32) -> (i32, i32, i32) {
    %c0_i32 = arith.constant 0 : i32
    %c0_i32_0 = arith.constant 0 : i32
    %c0_i32_1 = arith.constant 0 : i32
    %c0_i32_2 = arith.constant 0 : i32
    return %c0_i32, %c0_i32_0, %c0_i32_1 : i32, i32, i32
  }
  func.func @transform_12(%arg0: i32) -> (i32, i32) {
    %c0_i32 = arith.constant 0 : i32
    %c0_i32_0 = arith.constant 0 : i32
    %c0_i32_1 = arith.constant 0 : i32
    return %c0_i32, %c0_i32_0 : i32, i32
  }
  func.func @transform_13(%arg0: i32) -> (i32, i32) {
    %c0_i32 = arith.constant 0 : i32
    %c0_i32_0 = arith.constant 0 : i32
    return %c0_i32, %arg0 : i32, i32
  }
}

</mosaic_0001>

<bundles_post_ra>
// kernel: tpu_custom_call.1
= control target key start
LH: loop header
LB: loop body
LE: loop exit
PB: predicated region body
PF: predicated region fallthrough
CT: control target
= control target key end

     0   :  { %s7531_s0 = inlined_call_operand.vmem [shape: f32[8,1024], index: 0, kind: input, shape index: {}]   ;;  %s7532_s1 = inlined_call_operand.vmem [shape: f32[8,1024], index: 1, kind: input, shape index: {}]   ;;  %s7533_s2 = inlined_call_operand.vmem [shape: f32[25,512], index: 2, kind: input, shape index: {}]   ;;  %s7534_s3 = inlined_call_operand.vmem [shape: bf16[16,272], index: 3, kind: input, shape index: {}]   ;;  %s7535_s4 = inlined_call_operand.vmem [shape: f32[16,1], index: 4, kind: input, shape index: {}]   ;;  %s7536_s5 = inlined_call_operand.vmem [shape: f32[9,16,1], index: 5, kind: input, shape index: {}]   ;;  %s7537_s6 = inlined_call_operand.vmem [shape: f32[16,1], index: 6, kind: input, shape index: {}]   ;;  %s7538_s7 = inlined_call_operand.vmem [shape: bf16[16,16], index: 7, kind: input, shape index: {}]   ;;  %s7539_s8 = inlined_call_operand.vmem [shape: f32[16,1], index: 8, kind: input, shape index: {}]   ;;  %s7540_s9 = inlined_call_operand.vmem [shape: f32[9,16,1], index: 9, kind: input, shape index: {}]   ;;  %s7541_s10 = inlined_call_operand.vmem [shape: f32[16,1], index: 10, kind: input, shape index: {}]   ;;  %s7542_s11 = inlined_call_operand.vmem [shape: f32[9,16,1], index: 11, kind: input, shape index: {}]   ;;  %s7543_s12 = inlined_call_operand.vmem [shape: f32[16,1], index: 12, kind: input, shape index: {}]   ;;  %s7544_s13 = inlined_call_operand.hbm [shape: f32[16,1024], index: 13, kind: output, shape index: {}]  }
   0x1   :  { %7775 = sst [smem:[#allocation106_spill]] %s7531_s0 }
   0x2   :  { %7776 = sst [smem:[#allocation107_spill]] %s7532_s1 }
   0x3   :  { %18 = vsyncpa [#allocation4], 0 }
   0x4   :  { %20 = vsyncpa [#allocation4 + $0x1], 0  ;;  %s4056_s25 = smov 0   ;;  %s4058_s26 = smov 0  }
   0x5   :  { %s4060_s27 = smov 0   ;;  %s4062_s28 = smov 0  }
   0x6 LB: > { %7777 = sst [smem:[#allocation6_spill]] %s3945_s25  ;;  %s4077_s29 = sadd.s32 4294967295, %s3957_s28   ;;  %s3957_s28 = sphi %s4062_s28, %s8212_s28   ;;  %s3953_s27 = sphi %s4060_s27, %s8217_s27   ;;  %s3949_s26 = sphi %s4058_s26, %s8216_s26   ;;  %s3945_s25 = sphi %s4056_s25, %s8215_s25  }
   0x7   : > { %7778 = sst [smem:[#allocation7_spill]] %s3953_s27  ;;  %s3653_s30 = sadd.s32 4294967294, %s3957_s28  }
   0x8   : > { %7779 = sst [smem:[#allocation8_spill]] %s3957_s28  ;;  %s4081_s14 = sadd.s32 1, %s3957_s28  }
   0x9   : > { %7780 = sst [smem:[#allocation9_spill]] %s4081_s14  ;;  %s316_s15 = sadd.s32 1, %s3953_s27 }
   0xa   : > { %s313_s16 = ssub.s32 %s3957_s28, %s4081_s14  ;;  %p326_p0 = scmp.ne.s32.totalorder %s3953_s27, %s3949_s26 }
   0xb   : > { %p314_p1 = scmp.eq.s32.totalorder %s313_s16, 0  ;;  %p327_p2 = scmp.eq.s32.totalorder %s4077_s29, 1 }
   0xc   : > { %p332_p3 = scmp.ne.s32.totalorder %s3949_s26, %s3945_s25  ;;  %p333_p4 = scmp.eq.s32.totalorder %s3653_s30, 1 }
   0xd   : > { %s4092_s17 = scalar_select %p314_p1, %s3953_s27, %s316_s15  }
   0xe   : > { %p4094_p5 = por %p327_p2, %p326_p0  ;;  %p4098_p6 = por %p333_p4, %p332_p3 }
   0xf   : > { %7781 = sst [smem:[#allocation10_spill]] %s4092_s17  ;;  %p3656_p7 = scmp.ge.s32.totalorder %s3957_s28, 1 }
  0x10   : > { %s7782_s18 = scalar_select %p4094_p5, 1, 0 }
  0x11   : > { %s7784_s19 = scalar_select %p4098_p6, 1, 0 }
  0x12   : > { %7783 = sst [smem:[#allocation11_spill]] %s7782_s18  ;;  %p402_p8 = scmp.lt.s32.totalorder %s3957_s28, 3 }
  0x13   : > { %7785 = sst [smem:[#allocation12_spill]] %s7784_s19 }
  0x14   : > { %p403_p9 = pnand %p3656_p7, %p402_p8 }
  0x16   : > { %406 = sbr.rel (%p403_p9) target bundleno = 1559 (0x617), region = 72 }
  0x1b   : > { %s3658_s20 = sshll.u32 %s4077_s29, 2  ;;  %s7786_s0 = sld [smem:[#allocation106_spill]]  ;;  %v481_v8 = vlaneseq  ;;  %v4202_v11 = vld [vmem:[%s7533_s2] ss:$8 sm:$0xf] }
  0x1c   : > { %p452_p10 = scmp.lt.s32.totalorder %s3658_s20, 7  ;;  %s3959_s30 = smov 34   ;;  %7792 = vst [vmem:[#allocation18_spill] sm:$0xff] %v4202_v11  ;;  %v493_v13 = vperm.slane %v4202_v11, 3  ;;  %v492_v14 = vperm.slane %v4202_v11, 2 }
  0x1d   : > { %s3960_s15 = smov 33   ;;  %s7545_s16 = smov 32   ;;  %v4204_v12 = vand.u32 127, %v481_v8  ;;  %v4232_v22 = vld [vmem:[%s7533_s2 + $0x1] ss:$8 sm:$0xf] }
  0x1e   : > { %s8219_s20 = smov (!%p452_p10, %s3658_s20), 7  ;;  %s3962_s22 = smov 31   ;;  %7797 = vst [vmem:[#allocation23_spill] sm:$0xff] %v4232_v22  ;;  %v525_v23 = vperm.slane %v4232_v22, 3  ;;  %v524_v24 = vperm.slane %v4232_v22, 2 }
  0x1f   : > { %s7566_s21 = sshll.u32 %s8219_s20, 3  ;;  %s3963_s23 = smov 30   ;;  %vm483_vm0 = vcmp.lt.s32.totalorder %v4204_v12, 34  ;;  %vm514_vm1 = vcmp.lt.s32.totalorder %v4204_v12, 33  ;;  %vm546_vm2 = vcmp.lt.s32.totalorder %v4204_v12, 32  ;;  %vm578_vm3 = vcmp.lt.s32.totalorder %v4204_v12, 31 }
  0x20   : > { %v4262_v33 = vld [vmem:[%s7533_s2 + $0x2] ss:$8 sm:$0xf]  ;;  %v4290_v44 = vld [vmem:[%s7533_s2 + $0x3] ss:$8 sm:$0xf] }
  0x21   : > { %s4113_s24 = scalar_lea.vmem %s7786_s0, %s7566_s21  ;;  %7802 = vst [vmem:[#allocation28_spill] sm:$0xff] %v4262_v33  ;;  %v557_v35 = vperm.slane %v4262_v33, 3  ;;  %v556_v36 = vperm.slane %v4262_v33, 2  ;;  %v588_v45 = vperm.slane %v4290_v44, 2  ;;  %v589_v52 = vperm.slane %v4290_v44, 3  ;;  %s7835_s1 = sld [smem:[#allocation107_spill]] }
  0x22   : > { %v4116_v0 = vld [vmem:[%s4113_s24 + $0x10] sm:$0xff]  ;;  %v4119_v1 = vld [vmem:[%s4113_s24] sm:$0xff]  ;;  %v4125_v2 = vld [vmem:[%s4113_s24 + $0x18] sm:$0xff]  ;;  %7806 = vst [vmem:[#allocation32_spill] sm:$0xff] %v4290_v44  ;;  %vm610_vm4 = vcmp.lt.s32.totalorder %v4204_v12, 30  ;;  %vm642_vm5 = vcmp.lt.s32.totalorder %v4204_v12, 18 }
  0x23   : > { %477 = vrot.lane.b32.xlu1 %v4116_v0, %s3959_s30  ;;  %473 = vrot.lane.b32.xlu0 %v4119_v1, %s3959_s30  ;;  %v4128_v3 = vld [vmem:[%s4113_s24 + $0x8] sm:$0xff]  ;;  %vm674_vm6 = vcmp.lt.s32.totalorder %v4204_v12, 17  ;;  %vm706_vm7 = vcmp.lt.s32.totalorder %v4204_v12, 16  ;;  %vm738_vm8 = vcmp.lt.s32.totalorder %v4204_v12, 15  ;;  %vm770_vm9 = vcmp.lt.s32.totalorder %v4204_v12, 14  ;;  %s7887_s0 = smov 112  }
  0x24   : > { %506 = vrot.lane.b32.xlu2 %v4119_v1, %s3960_s15  ;;  %v4328_v59 = vld [vmem:[%s7533_s2 + $0x4] ss:$8 sm:$0xf]  ;;  %vm802_vm10 = vcmp.lt.s32.totalorder %v4204_v12, 2  ;;  %vm834_vm11 = vcmp.lt.s32.totalorder %v4204_v12, 1  ;;  %vm934_vm12 = vcmp.lt.s32.totalorder %v4204_v12, 114 }
  0x25   : > { %v621_v60 = vperm.slane %v4328_v59, 3  ;;  %v620_v61 = vperm.slane %v4328_v59, 2  ;;  %vm902_vm13 = vcmp.lt.s32.totalorder %v4204_v12, 126  ;;  %vm870_vm14 = vcmp.lt.s32.totalorder %v4204_v12, 127 }
  0x26   : > { %v4642_v33 = vld [vmem:[%s7533_s2 + $0x25] ss:$8 sm:$0xf]  ;;  %vm966_vm15 = vcmp.lt.s32.totalorder %v4204_v12, 113 }
  0x27   : > { %7842 = vst [vmem:[#allocation65_spill] sm:$0xff] %v4642_v33 }
  0x2b   : > { %479 = vrot.lane.b32.xlu1 %v4125_v2, %s3959_s30  ;;  %475 = vrot.lane.b32.xlu0 %v4128_v3, %s3959_s30  ;;  %s3964_s30 = smov 18  }
  0x2c   : > { %508 = vrot.lane.b32.xlu2 %v4128_v3, %s3960_s15 }
  0x33   : > { %512 = vrot.lane.b32.xlu1 %v4125_v2, %s3960_s15  ;;  %510 = vrot.lane.b32.xlu0 %v4116_v0, %s3960_s15  ;;  %s7558_s15 = smov 17  }
  0x34   : > { %538 = vrot.lane.b32.xlu2 %v4119_v1, %s7545_s16 }
  0x3b   : > { %542 = vrot.lane.b32.xlu1 %v4116_v0, %s7545_s16  ;;  %540 = vrot.lane.b32.xlu0 %v4128_v3, %s7545_s16 }
  0x3c   : > { %544 = vrot.lane.b32.xlu2 %v4125_v2, %s7545_s16  ;;  %s3969_s16 = smov 2  }
  0x43   : > { %572 = vrot.lane.b32.xlu1 %v4128_v3, %s3962_s22  ;;  %570 = vrot.lane.b32.xlu0 %v4119_v1, %s3962_s22 }
  0x44   : > { %574 = vrot.lane.b32.xlu2 %v4116_v0, %s3962_s22 }
  0x4b   : > { %602 = vrot.lane.b32.xlu1 %v4119_v1, %s3963_s23  ;;  %576 = vrot.lane.b32.xlu0 %v4125_v2, %s3962_s22  ;;  %s7548_s22 = smov 16  }
  0x4c   : > { %604 = vrot.lane.b32.xlu2 %v4128_v3, %s3963_s23 }
  0x53   : > { %608 = vrot.lane.b32.xlu1 %v4125_v2, %s3963_s23  ;;  %606 = vrot.lane.b32.xlu0 %v4116_v0, %s3963_s23  ;;  %s7546_s23 = smov 15  }
  0x54   : > { %634 = vrot.lane.b32.xlu2 %v4119_v1, %s3964_s30 }
  0x5b   : > { %638 = vrot.lane.b32.xlu1 %v4116_v0, %s3964_s30  ;;  %636 = vrot.lane.b32.xlu0 %v4128_v3, %s3964_s30 }
  0x5c   : > { %640 = vrot.lane.b32.xlu2 %v4125_v2, %s3964_s30  ;;  %s3968_s30 = smov 14  }
  0x63   : > { %668 = vrot.lane.b32.xlu1 %v4128_v3, %s7558_s15  ;;  %666 = vrot.lane.b32.xlu0 %v4119_v1, %s7558_s15 }
  0x64   : > { %670 = vrot.lane.b32.xlu2 %v4116_v0, %s7558_s15 }
  0x6b   : > { %698 = vrot.lane.b32.xlu1 %v4119_v1, %s7548_s22  ;;  %672 = vrot.lane.b32.xlu0 %v4125_v2, %s7558_s15  ;;  %s3978_s15 = smov 98  }
  0x6c   : > { %700 = vrot.lane.b32.xlu2 %v4128_v3, %s7548_s22 }
  0x73   : > { %704 = vrot.lane.b32.xlu1 %v4125_v2, %s7548_s22  ;;  %702 = vrot.lane.b32.xlu0 %v4116_v0, %s7548_s22  ;;  %s7560_s22 = smov 111  }
  0x74   : > { %730 = vrot.lane.b32.xlu2 %v4119_v1, %s7546_s23 }
  0x7b   : > { %734 = vrot.lane.b32.xlu1 %v4116_v0, %s7546_s23  ;;  %732 = vrot.lane.b32.xlu0 %v4128_v3, %s7546_s23 }
  0x7c   : > { %736 = vrot.lane.b32.xlu2 %v4125_v2, %s7546_s23  ;;  %s7550_s23 = smov 1  }
  0x7e   : > { %v4179_v4 = vpop.permute.xlu2 %506 }
  0x7f   : > { %7787 = vst [vmem:[#allocation13_spill] sm:$0xff] %v4179_v4 }
  0x83   : > { %764 = vrot.lane.b32.xlu1 %v4128_v3, %s3968_s30  ;;  %762 = vrot.lane.b32.xlu0 %v4119_v1, %s3968_s30 }
  0x84   : > { %766 = vrot.lane.b32.xlu2 %v4116_v0, %s3968_s30 }
  0x86   : > { %v4184_v5 = vpop.permute.xlu2 %508 }
  0x87   : > { %7788 = vst [vmem:[#allocation14_spill] sm:$0xff] %v4184_v5 }
  0x8b   : > { %794 = vrot.lane.b32.xlu1 %v4119_v1, %s3969_s16  ;;  %768 = vrot.lane.b32.xlu0 %v4125_v2, %s3968_s30  ;;  %s7552_s30 = smov 127  }
  0x8c   : > { %796 = vrot.lane.b32.xlu2 %v4128_v3, %s3969_s16 }
  0x8e   : > { %v4189_v6 = vpop.permute.xlu2 %538 }
  0x8f   : > { %7789 = vst [vmem:[#allocation15_spill] sm:$0xff] %v4189_v6 }
  0x93   : > { %800 = vrot.lane.b32.xlu1 %v4125_v2, %s3969_s16  ;;  %798 = vrot.lane.b32.xlu0 %v4116_v0, %s3969_s16  ;;  %s7554_s16 = smov 112  }
  0x94   : > { %826 = vrot.lane.b32.xlu2 %v4119_v1, %s7550_s23 }
  0x95   : > { %v478_v7 = vpop.permute.xlu1 %477  ;;  %v4195_v9 = vpop.permute.xlu0 %473 }
  0x96   : > { %7790 = vst [vmem:[#allocation16_spill] sm:$0xff] %v4195_v9  ;;  %v4197_v10 = vpop.permute.xlu2 %544 }
  0x97   : > { %7791 = vst [vmem:[#allocation17_spill] sm:$0xff] %v4197_v10 }
  0x9b   : > { %830 = vrot.lane.b32.xlu1 %v4116_v0, %s7550_s23  ;;  %828 = vrot.lane.b32.xlu0 %v4128_v3, %s7550_s23 }
  0x9c   : > { %832 = vrot.lane.b32.xlu2 %v4125_v2, %s7550_s23  ;;  %s3972_s23 = smov 126  }
  0x9d   : > { %v4215_v15 = vpop.permute.xlu1 %479  ;;  %v4217_v16 = vpop.permute.xlu0 %475 }
  0x9e   : > { %7793 = vst [vmem:[#allocation19_spill] sm:$0xff] %v4215_v15  ;;  %v484_v17 = vsel %vm483_vm0, %v478_v7, %v4215_v15  ;;  %v485_v18 = vsel %vm483_vm0, %v4217_v16, %v478_v7  ;;  %v575_v19 = vpop.permute.xlu2 %574 }
  0x9f   : > { %7794 = vst [vmem:[#allocation20_spill] sm:$0xff] %v4217_v16  ;;  %v4225_v20 = vmul.f32 %v493_v13, %v484_v17  ;;  %v4227_v21 = vmul.f32 %v492_v14, %v485_v18  ;;  %v4356_v18 = vld [vmem:[%s7533_s2 + $0x5] ss:$8 sm:$0xf] }
  0xa1   : > { %7795 = vst [vmem:[#allocation21_spill] sm:$0xff] %v4225_v20 }
  0xa2   : > { %7796 = vst [vmem:[#allocation22_spill] sm:$0xff] %v4227_v21 }
  0xa3   : > { %864 = vrot.lane.b32.xlu1 %v4128_v3, %s7552_s30  ;;  %862 = vrot.lane.b32.xlu0 %v4119_v1, %s7552_s30 }
  0xa4   : > { %866 = vrot.lane.b32.xlu2 %v4116_v0, %s7552_s30 }
  0xa5   : > { %v4243_v25 = vpop.permute.xlu1 %512  ;;  %v511_v26 = vpop.permute.xlu0 %510 }
  0xa6   : > { %7798 = vst [vmem:[#allocation24_spill] sm:$0xff] %v4243_v25  ;;  %v515_v27 = vsel %vm514_vm1, %v511_v26, %v4243_v25  ;;  %v516_v28 = vsel %vm514_vm1, %v4184_v5, %v511_v26  ;;  %v4251_v29 = vpop.permute.xlu2 %604  ;;  %v4572_v5 = vld [vmem:[%s7533_s2 + $0x27] ss:$8 sm:$0xf] }
  0xa7   : > { %7799 = vst [vmem:[#allocation25_spill] sm:$0xff] %v4251_v29  ;;  %v4253_v30 = vmul.f32 %v525_v23, %v515_v27  ;;  %v4255_v31 = vmul.f32 %v524_v24, %v516_v28  ;;  %v652_v23 = vperm.slane %v4356_v18, 2 }
  0xa9   : > { %7800 = vst [vmem:[#allocation26_spill] sm:$0xff] %v4253_v30 }
  0xaa   : > { %7801 = vst [vmem:[#allocation27_spill] sm:$0xff] %v4255_v31 }
  0xab   : > { %894 = vrot.lane.b32.xlu1 %v4119_v1, %s3972_s23  ;;  %868 = vrot.lane.b32.xlu0 %v4125_v2, %s7552_s30  ;;  %s3973_s30 = smov 114  }
  0xac   : > { %896 = vrot.lane.b32.xlu2 %v4128_v3, %s3972_s23 }
  0xad   : > { %v543_v37 = vpop.permute.xlu1 %542  ;;  %v4273_v38 = vpop.permute.xlu0 %540 }
  0xae   : > { %7803 = vst [vmem:[#allocation29_spill] sm:$0xff] %v4273_v38  ;;  %v547_v39 = vsel %vm546_vm2, %v543_v37, %v4197_v10  ;;  %v548_v40 = vsel %vm546_vm2, %v4273_v38, %v543_v37  ;;  %v4281_v41 = vpop.permute.xlu2 %634 }
  0xaf   : > { %v4283_v42 = vmul.f32 %v557_v35, %v547_v39  ;;  %v4285_v43 = vmul.f32 %v556_v36, %v548_v40 }
  0xb1   : > { %7804 = vst [vmem:[#allocation30_spill] sm:$0xff] %v4283_v42 }
  0xb2   : > { %7805 = vst [vmem:[#allocation31_spill] sm:$0xff] %v4285_v43 }
  0xb3   : > { %900 = vrot.lane.b32.xlu1 %v4125_v2, %s3972_s23  ;;  %898 = vrot.lane.b32.xlu0 %v4116_v0, %s3972_s23  ;;  %s7882_s23 = smov 113  }
  0xb4   : > { %926 = vrot.lane.b32.xlu2 %v4119_v1, %s3973_s30 }
  0xb5   : > { %v4297_v46 = vpop.permute.xlu1 %572  ;;  %v4299_v47 = vpop.permute.xlu0 %570 }
  0xb6   : > { %7807 = vst [vmem:[#allocation33_spill] sm:$0xff] %v4297_v46  ;;  %v580_v48 = vsel %vm578_vm3, %v4297_v46, %v575_v19  ;;  %v4304_v49 = vpop.permute.xlu2 %640 }
  0xb7   : > { %7808 = vst [vmem:[#allocation34_spill] sm:$0xff] %v4299_v47  ;;  %v4306_v50 = vmul.f32 %v588_v45, %v580_v48 }
  0xb9   : > { %7809 = vst [vmem:[#allocation35_spill] sm:$0xff] %v4306_v50 }
  0xbb   : > { %930 = vrot.lane.b32.xlu1 %v4116_v0, %s3973_s30  ;;  %928 = vrot.lane.b32.xlu0 %v4128_v3, %s3973_s30 }
  0xbc   : > { %932 = vrot.lane.b32.xlu2 %v4125_v2, %s3973_s30  ;;  %s7556_s30 = smov 113  }
  0xbd   : > { %v4314_v53 = vpop.permute.xlu1 %602  ;;  %v4316_v54 = vpop.permute.xlu0 %576 }
  0xbe   : > { %7810 = vst [vmem:[#allocation36_spill] sm:$0xff] %v4316_v54  ;;  %v579_v55 = vsel %vm578_vm3, %v575_v19, %v4316_v54  ;;  %v671_v56 = vpop.permute.xlu2 %670  ;;  %v653_v19 = vperm.slane %v4356_v18, 3 }
  0xbf   : > { %v4321_v57 = vmul.f32 %v589_v52, %v579_v55 }
  0xc1   : > { %7811 = vst [vmem:[#allocation37_spill] sm:$0xff] %v4321_v57 }
  0xc3   : > { %960 = vrot.lane.b32.xlu1 %v4128_v3, %s7556_s30  ;;  %958 = vrot.lane.b32.xlu0 %v4119_v1, %s7556_s30 }
  0xc4   : > { %962 = vrot.lane.b32.xlu2 %v4116_v0, %s7556_s30 }
  0xc5   : > { %v4339_v62 = vpop.permute.xlu1 %608  ;;  %v607_v63 = vpop.permute.xlu0 %606 }
  0xc6   : > { %7812 = vst [vmem:[#allocation38_spill] sm:$0xff] %v4339_v62  ;;  %v611_v7 = vsel %vm610_vm4, %v607_v63, %v4339_v62  ;;  %v612_v8 = vsel %vm610_vm4, %v4251_v29, %v607_v63  ;;  %v4347_v13 = vpop.permute.xlu2 %700  ;;  %v4410_v63 = vld [vmem:[%s7533_s2 + $0x6] ss:$8 sm:$0xf] }
  0xc7   : > { %v4349_v14 = vmul.f32 %v621_v60, %v611_v7  ;;  %v4351_v17 = vmul.f32 %v620_v61, %v612_v8  ;;  %v4416_v7 = vld [vmem:[%s7533_s2 + $0x7] ss:$8 sm:$0xf]  ;;  %v685_v8 = vperm.slane %v4410_v63, 3 }
  0xc9   : > { %7813 = vst [vmem:[#allocation39_spill] sm:$0xff] %v4349_v14 }
  0xca   : > { %7814 = vst [vmem:[#allocation40_spill] sm:$0xff] %v4351_v17 }
  0xcb   : > { %990 = vrot.lane.b32.xlu1 %v4119_v1, %s7554_s16  ;;  %964 = vrot.lane.b32.xlu0 %v4125_v2, %s7556_s30  ;;  %s3980_s30 = smov 96  }
  0xcc   : > { %992 = vrot.lane.b32.xlu2 %v4128_v3, %s7554_s16 }
  0xcd   : > { %v639_v24 = vpop.permute.xlu1 %638  ;;  %v4367_v26 = vpop.permute.xlu0 %636 }
  0xce   : > { %7815 = vst [vmem:[#allocation41_spill] sm:$0xff] %v4367_v26  ;;  %v643_v27 = vsel %vm642_vm5, %v639_v24, %v4304_v49  ;;  %v644_v28 = vsel %vm642_vm5, %v4367_v26, %v639_v24  ;;  %v4375_v35 = vpop.permute.xlu2 %730  ;;  %v684_v24 = vperm.slane %v4410_v63, 2 }
  0xcf   : > { %v4377_v36 = vmul.f32 %v653_v19, %v643_v27  ;;  %v4379_v37 = vmul.f32 %v652_v23, %v644_v28  ;;  %v717_v19 = vperm.slane %v4416_v7, 3  ;;  %v716_v27 = vperm.slane %v4416_v7, 2 }
  0xd1   : > { %7816 = vst [vmem:[#allocation42_spill] sm:$0xff] %v4377_v36 }
  0xd2   : > { %7817 = vst [vmem:[#allocation43_spill] sm:$0xff] %v4379_v37 }
  0xd3   : > { %996 = vrot.lane.b32.xlu1 %v4125_v2, %s7554_s16  ;;  %994 = vrot.lane.b32.xlu0 %v4116_v0, %s7554_s16  ;;  %s7834_s16 = sshll.u32 %s8219_s20, 3  ;;  %s7838_s20 = smov 17  }
  0xd4   : > { %1022 = vrot.lane.b32.xlu2 %v4119_v1, %s7560_s22  ;;  %s4600_s21 = scalar_lea.vmem %s7835_s1, %s7834_s16  ;;  %s7876_s16 = smov 127  }
  0xd5   : > { %v4391_v45 = vpop.permute.xlu1 %668  ;;  %v4393_v48 = vpop.permute.xlu0 %666  ;;  %v4632_v38 = vld [vmem:[%s4600_s21 + $0x18] sm:$0xff]  ;;  %s7891_s1 = smov 111  }
  0xd6   : > { %v4395_v52 = vpop.permute.xlu2 %736  ;;  %v676_v28 = vsel %vm674_vm6, %v4391_v45, %v671_v56 }
  0xdb   : > { %1026 = vrot.lane.b32.xlu1 %v4116_v0, %s7560_s22  ;;  %1024 = vrot.lane.b32.xlu0 %v4128_v3, %s7560_s22 }
  0xdc   : > { %1028 = vrot.lane.b32.xlu2 %v4125_v2, %s7560_s22  ;;  %s3977_s22 = smov 110  }
  0xdd   : > { %v4403_v55 = vpop.permute.xlu1 %698  ;;  %v4405_v60 = vpop.permute.xlu0 %672 }
  0xde   : > { %v767_v61 = vpop.permute.xlu2 %766  ;;  %v675_v23 = vsel %vm674_vm6, %v671_v56, %v4405_v60  ;;  %v4446_v56 = vmul.f32 %v684_v24, %v676_v28 }
  0xdf   : > { %v4442_v39 = vmul.f32 %v685_v8, %v675_v23 }
  0xe0   : > { %7820 = vst [vmem:[#allocation46_spill] sm:$0xff] %v4446_v56 }
  0xe1   : > { %7818 = vst [vmem:[#allocation44_spill] sm:$0xff] %v4442_v39 }
  0xe3   : > { %1056 = vrot.lane.b32.xlu1 %v4128_v3, %s3977_s22  ;;  %1054 = vrot.lane.b32.xlu0 %v4119_v1, %s3977_s22 }
  0xe4   : > { %1058 = vrot.lane.b32.xlu2 %v4116_v0, %s3977_s22 }
  0xe5   : > { %v4432_v34 = vpop.permute.xlu1 %704  ;;  %v703_v32 = vpop.permute.xlu0 %702 }
  0xe6   : > { %v707_v51 = vsel %vm706_vm7, %v703_v32, %v4432_v34  ;;  %v708_v58 = vsel %vm706_vm7, %v4347_v13, %v703_v32  ;;  %v4440_v40 = vpop.permute.xlu2 %796 }
  0xe7   : > { %v4444_v21 = vmul.f32 %v717_v19, %v707_v51  ;;  %v4448_v31 = vmul.f32 %v716_v27, %v708_v58  ;;  %v4464_v58 = vld [vmem:[%s7533_s2 + $0x21] ss:$8 sm:$0xf]  ;;  %v4469_v19 = vld [vmem:[%s7533_s2 + $0x20] ss:$8 sm:$0xf] }
  0xe8   : > { %v748_v23 = vperm.slane %v4469_v19, 2  ;;  %v780_v24 = vperm.slane %v4464_v58, 2  ;;  %v749_v17 = vperm.slane %v4469_v19, 3  ;;  %v781_v37 = vperm.slane %v4464_v58, 3 }
  0xe9   : > { %7819 = vst [vmem:[#allocation45_spill] sm:$0xff] %v4444_v21 }
  0xea   : > { %7821 = vst [vmem:[#allocation47_spill] sm:$0xff] %v4448_v31 }
  0xeb   : > { %1086 = vrot.lane.b32.xlu1 %v4119_v1, %s3978_s15  ;;  %1060 = vrot.lane.b32.xlu0 %v4125_v2, %s3977_s22  ;;  %s3979_s22 = smov 97  }
  0xec   : > { %1088 = vrot.lane.b32.xlu2 %v4128_v3, %s3978_s15 }
  0xed   : > { %v735_v32 = vpop.permute.xlu1 %734  ;;  %v4457_v51 = vpop.permute.xlu0 %732 }
  0xee   : > { %v4459_v8 = vpop.permute.xlu2 %826  ;;  %v740_v27 = vsel %vm738_vm8, %v4457_v51, %v735_v32  ;;  %v739_v14 = vsel %vm738_vm8, %v735_v32, %v4395_v52  ;;  %v4522_v32 = vld [vmem:[%s7533_s2 + $0x22] ss:$8 sm:$0xf] }
  0xef   : > { %v4490_v50 = vmul.f32 %v748_v23, %v740_v27  ;;  %v4513_v57 = vmul.f32 %v749_v17, %v739_v14  ;;  %v812_v14 = vperm.slane %v4522_v32, 2 }
  0xf1   : > { %7822 = vst [vmem:[#allocation48_spill] sm:$0xff] %v4490_v50  ;;  %v4547_v50 = vld [vmem:[%s7533_s2 + $0x23] ss:$8 sm:$0xf] }
  0xf2   : > { %7825 = vst [vmem:[#allocation51_spill] sm:$0xff] %v4513_v57 }
  0xf3   : > { %1092 = vrot.lane.b32.xlu1 %v4125_v2, %s3978_s15  ;;  %1090 = vrot.lane.b32.xlu0 %v4116_v0, %s3978_s15  ;;  %s7848_s15 = smov 15  }
  0xf4   : > { %1118 = vrot.lane.b32.xlu2 %v4119_v1, %s3979_s22 }
  0xf5   : > { %v4481_v28 = vpop.permute.xlu1 %764  ;;  %v4483_v30 = vpop.permute.xlu0 %762 }
  0xf6   : > { %v772_v20 = vsel %vm770_vm9, %v4481_v28, %v767_v61  ;;  %v4488_v43 = vpop.permute.xlu2 %832 }
  0xf7   : > { %v4492_v42 = vmul.f32 %v780_v24, %v772_v20 }
  0xf9   : > { %7823 = vst [vmem:[#allocation49_spill] sm:$0xff] %v4492_v42  ;;  %v845_v42 = vperm.slane %v4547_v50, 3 }
  0xfb   : > { %1122 = vrot.lane.b32.xlu1 %v4116_v0, %s3979_s22  ;;  %1120 = vrot.lane.b32.xlu0 %v4128_v3, %s3979_s22 }
  0xfc   : > { %1124 = vrot.lane.b32.xlu2 %v4125_v2, %s3979_s22  ;;  %s3981_s22 = smov 95  }
  0xfd   : > { %v4504_v23 = vpop.permute.xlu1 %794  ;;  %v4506_v20 = vpop.permute.xlu0 %768 }
  0xfe   : > { %v771_v24 = vsel %vm770_vm9, %v767_v61, %v4506_v20  ;;  %v4511_v27 = vpop.permute.xlu2 %866  ;;  %v813_v61 = vperm.slane %v4522_v32, 3 }
  0xff   : > { %7824 = vst [vmem:[#allocation50_spill] sm:$0xff] %v4511_v27  ;;  %v4515_v36 = vmul.f32 %v781_v37, %v771_v24 }
 0x101   : > { %7826 = vst [vmem:[#allocation52_spill] sm:$0xff] %v4515_v36 }
 0x103   : > { %1152 = vrot.lane.b32.xlu1 %v4128_v3, %s3980_s30  ;;  %1150 = vrot.lane.b32.xlu0 %v4119_v1, %s3980_s30 }
 0x104   : > { %1154 = vrot.lane.b32.xlu2 %v4116_v0, %s3980_s30 }
 0x105   : > { %v4530_v17 = vpop.permute.xlu1 %800  ;;  %v799_v37 = vpop.permute.xlu0 %798 }
 0x106   : > { %v803_v24 = vsel %vm802_vm10, %v799_v37, %v4530_v17  ;;  %v804_v56 = vsel %vm802_vm10, %v4440_v40, %v799_v37  ;;  %v4538_v31 = vpop.permute.xlu2 %896  ;;  %v844_v37 = vperm.slane %v4547_v50, 2 }
 0x107   : > { %v4540_v39 = vmul.f32 %v813_v61, %v803_v24  ;;  %v4542_v21 = vmul.f32 %v812_v14, %v804_v56 }
 0x109   : > { %7827 = vst [vmem:[#allocation53_spill] sm:$0xff] %v4540_v39 }
 0x10a   : > { %7828 = vst [vmem:[#allocation54_spill] sm:$0xff] %v4542_v21 }
 0x10b   : > { %1182 = vrot.lane.b32.xlu1 %v4119_v1, %s3981_s22  ;;  %1156 = vrot.lane.b32.xlu0 %v4125_v2, %s3980_s30  ;;  %s3982_s30 = smov 94  }
 0x10c   : > { %1184 = vrot.lane.b32.xlu2 %v4128_v3, %s3981_s22 }
 0x10d   : > { %v831_v56 = vpop.permute.xlu1 %830  ;;  %v4555_v61 = vpop.permute.xlu0 %828 }
 0x10e   : > { %v835_v14 = vsel %vm834_vm11, %v831_v56, %v4488_v43  ;;  %v836_v24 = vsel %vm834_vm11, %v4555_v61, %v831_v56  ;;  %v4563_v57 = vpop.permute.xlu2 %926 }
 0x10f   : > { %v4565_v36 = vmul.f32 %v845_v42, %v835_v14  ;;  %v4567_v15 = vmul.f32 %v844_v37, %v836_v24  ;;  %v945_v42 = vperm.slane %v4572_v5, 3 }
 0x111   : > { %7829 = vst [vmem:[#allocation55_spill] sm:$0xff] %v4565_v36 }
 0x112   : > { %7830 = vst [vmem:[#allocation56_spill] sm:$0xff] %v4567_v15  ;;  %v3674_v15 = vld [vmem:[%s7533_s2 + $0x26] ss:$8 sm:$0xf] }
 0x113   : > { %1188 = vrot.lane.b32.xlu1 %v4125_v2, %s3981_s22  ;;  %1186 = vrot.lane.b32.xlu0 %v4116_v0, %s3981_s22  ;;  %v913_v39 = vperm.slane %v3674_v15, 3  ;;  %v912_v36 = vperm.slane %v3674_v15, 2  ;;  %v910_v54 = vperm.slane %v3674_v15, 0  ;;  %s7843_s22 = smov 16  }
 0x114   : > { %1214 = vrot.lane.b32.xlu2 %v4119_v1, %s3982_s30 }
 0x115   : > { %v865_v37 = vpop.permute.xlu1 %864  ;;  %v4583_v56 = vpop.permute.xlu0 %862 }
 0x116   : > { %7831 = vst [vmem:[#allocation57_spill] sm:$0xff] %v4583_v56  ;;  %v933_v14 = vpop.permute.xlu2 %932  ;;  %v872_v6 = vsel %vm870_vm14, %v865_v37, %v4511_v27 }
 0x117   : > { %v938_v24 = vsel %vm934_vm12, %v933_v14, %v4563_v57 }
 0x118   : > { %v4588_v4 = vmul.f32 %v945_v42, %v938_v24  ;;  %v4605_v24 = vld [vmem:[%s4600_s21 + $0x8] sm:$0xff] }
 0x119   : > { %7837 = vst [vmem:[#allocation61_spill] sm:$0xff] %v4605_v24 }
 0x11a   : > { %7832 = vst [vmem:[#allocation58_spill] sm:$0xff] %v4588_v4 }
 0x11b   : > { %1218 = vrot.lane.b32.xlu1 %v4116_v0, %s3982_s30  ;;  %1216 = vrot.lane.b32.xlu0 %v4128_v3, %s3982_s30  ;;  %v4608_v0 = vld [vmem:[%s4600_s21] sm:$0xff] }
 0x11c   : > { %1220 = vrot.lane.b32.xlu2 %v4125_v2, %s3982_s30  ;;  %v4611_v2 = vld [vmem:[%s4600_s21 + $0x10] sm:$0xff]  ;;  %s7860_s30 = smov 1  }
 0x11d   : > { %v895_v25 = vpop.permute.xlu1 %894  ;;  %v4593_v21 = vpop.permute.xlu0 %868 }
 0x11e   : > { %7833 = vst [vmem:[#allocation59_spill] sm:$0xff] %v4593_v21  ;;  %v4602_v42 = vpop.permute.xlu2 %962 }
 0x11f   : > { %7836 = vst [vmem:[#allocation60_spill] sm:$0xff] %v4602_v42 }
 0x123   : > { %1248 = vrot.lane.b32.xlu1 %v4605_v24, %s7838_s20  ;;  %1246 = vrot.lane.b32.xlu0 %v4608_v0, %s7838_s20 }
 0x124   : > { %1250 = vrot.lane.b32.xlu2 %v4611_v2, %s7838_s20 }
 0x125   : > { %v901_v42 = vpop.permute.xlu1 %900  ;;  %v899_v21 = vpop.permute.xlu0 %898 }
 0x126   : > { %v906_v9 = vsel %vm902_vm13, %v901_v42, %v895_v25  ;;  %v903_v16 = vsel %vm902_vm13, %v899_v21, %v901_v42  ;;  %v4627_v11 = vpop.permute.xlu2 %992  ;;  %v911_v42 = vperm.slane %v3674_v15, 1  ;;  %v904_v15 = vsel %vm902_vm13, %v4538_v31, %v899_v21 }
 0x127   : > { %7839 = vst [vmem:[#allocation62_spill] sm:$0xff] %v4627_v11  ;;  %v4629_v22 = vmul.f32 %v913_v39, %v906_v9  ;;  %v4634_v10 = vmul.f32 %v912_v36, %v903_v16  ;;  %v905_v9 = vsel %vm902_vm13, %v895_v25, %v4538_v31  ;;  %v942_v16 = vperm.slane %v4572_v5, 0 }
 0x128   : > { %v943_v36 = vperm.slane %v4572_v5, 1  ;;  %v944_v39 = vperm.slane %v4572_v5, 2  ;;  %v873_v25 = vsel %vm870_vm14, %v4583_v56, %v865_v37  ;;  %v878_v11 = vperm.slane %v4642_v33, 0 }
 0x129   : > { %7840 = vst [vmem:[#allocation63_spill] sm:$0xff] %v4629_v22  ;;  %v879_v5 = vperm.slane %v4642_v33, 1  ;;  %v918_v31 = vmul.f32 %v910_v54, %v905_v9  ;;  %v919_v56 = vmul.f32 %v911_v42, %v904_v15  ;;  %v810_v33 = vperm.slane %v4522_v32, 0 }
 0x12a   : > { %7841 = vst [vmem:[#allocation64_spill] sm:$0xff] %v4634_v10  ;;  %v842_v54 = vperm.slane %v4547_v50, 0  ;;  %v714_v9 = vperm.slane %v4416_v7, 0  ;;  %v4979_v10 = vld [vmem:[%s7533_s2 + $0x42] ss:$8 sm:$0xf] }
 0x12b   : > { %1276 = vrot.lane.b32.xlu1 %v4608_v0, %s7843_s22  ;;  %1252 = vrot.lane.b32.xlu0 %v4632_v38, %s7838_s20  ;;  %7917 = vst [vmem:[#allocation94_spill] sm:$0xff] %v4979_v10 }
 0x12c   : > { %1278 = vrot.lane.b32.xlu2 %v4605_v24, %s7843_s22 }
 0x12d   : > { %v931_v22 = vpop.permute.xlu1 %930  ;;  %v929_v4 = vpop.permute.xlu0 %928 }
 0x12e   : > { %v935_v21 = vsel %vm934_vm12, %v931_v22, %v933_v14  ;;  %v937_v47 = vsel %vm934_vm12, %v4563_v57, %v929_v4  ;;  %v936_v27 = vsel %vm934_vm12, %v929_v4, %v931_v22  ;;  %v4674_v46 = vpop.permute.xlu2 %1022  ;;  %v838_v4 = vsel %vm834_vm11, %v4488_v43, %v4459_v8  ;;  %v4972_v14 = vld [vmem:[%s7533_s2 + $0x43] ss:$8 sm:$0xf] }
 0x12f   : > { %7844 = vst [vmem:[#allocation66_spill] sm:$0xff] %v4674_v46  ;;  %v950_v37 = vmul.f32 %v942_v16, %v937_v47  ;;  %v951_v44 = vmul.f32 %v943_v36, %v936_v27  ;;  %v4676_v29 = vmul.f32 %v944_v39, %v935_v21  ;;  %v886_v22 = vmul.f32 %v878_v11, %v873_v25 }
 0x130   : > { %v887_v47 = vmul.f32 %v879_v5, %v872_v6  ;;  %v843_v57 = vperm.slane %v4547_v50, 1  ;;  %v806_v27 = vsel %vm802_vm10, %v4530_v17, %v4504_v23  ;;  %v811_v6 = vperm.slane %v4522_v32, 1  ;;  %7916 = vst [vmem:[#allocation93_spill] sm:$0xff] %v4972_v14  ;;  %v7923_v14 = vld [vmem:[#allocation62_spill] sm:$0xff] }
 0x131   : > { %7845 = vst [vmem:[#allocation67_spill] sm:$0xff] %v4676_v29  ;;  %v1658_v26 = vpack.c.bf16 %v950_v37, %v918_v31  ;;  %v1659_v62 = vpack.c.bf16 %v951_v44, %v919_v56  ;;  %v837_v44 = vsel %vm834_vm11, %v4459_v8, %v4555_v61  ;;  %v805_v11 = vsel %vm802_vm10, %v4504_v23, %v4440_v40  ;;  %v5014_v29 = vld [vmem:[%s7533_s2 + $0x25] ss:$8 sm:$0xf] }
 0x132   : > { %v850_v8 = vmul.f32 %v842_v54, %v838_v4  ;;  %v778_v17 = vperm.slane %v4464_v58, 0  ;;  %v779_v61 = vperm.slane %v4464_v58, 1  ;;  %v818_v32 = vmul.f32 %v810_v33, %v806_v27 }
 0x133   : > { %1282 = vrot.lane.b32.xlu1 %v4632_v38, %s7843_s22  ;;  %1280 = vrot.lane.b32.xlu0 %v4611_v2, %s7843_s22  ;;  %v851_v56 = vmul.f32 %v843_v57, %v837_v44  ;;  %v773_v40 = vsel %vm770_vm9, %v4483_v30, %v4481_v28  ;;  %v774_v58 = vsel %vm770_vm9, %v4506_v20, %v4483_v30  ;;  %v715_v30 = vperm.slane %v4416_v7, 1  ;;  %v7855_v44 = vld [vmem:[#allocation25_spill] sm:$0xff] }
 0x134   : > { %1729 = vmatpush.bf16.msra.mxu0 %v1658_v26  ;;  %1771 = vmatpush.bf16.msra.mxu3 %v1659_v62  ;;  %v1654_v62 = vpack.c.bf16 %v886_v22, %v4119_v1  ;;  %v1655_v26 = vpack.c.bf16 %v887_v47, %v4128_v3  ;;  %v819_v23 = vmul.f32 %v811_v6, %v805_v11  ;;  %v746_v1 = vperm.slane %v4469_v19, 0 }
 0x135   : > { %v4704_v43 = vpop.permute.xlu1 %960  ;;  %v4706_v50 = vpop.permute.xlu0 %958  ;;  %1306 = vrot.lane.b32.xlu2 %v4608_v0, %s7848_s15  ;;  %v747_v3 = vperm.slane %v4469_v19, 1  ;;  %v742_v33 = vsel %vm738_vm8, %v4395_v52, %v4375_v35  ;;  %v741_v28 = vsel %vm738_vm8, %v4375_v35, %v4457_v51  ;;  %v1650_v20 = vpack.c.bf16 %v850_v8, %v818_v32  ;;  %v7856_v8 = vld [vmem:[#allocation32_spill] sm:$0xff] }
 0x136   : > { %7846 = vst [vmem:[#allocation68_spill] sm:$0xff] %v4704_v43  ;;  %v4714_v42 = vpop.permute.xlu2 %1028  ;;  %v1651_v16 = vpack.c.bf16 %v851_v56, %v819_v23  ;;  %v786_v36 = vmul.f32 %v778_v17, %v774_v58  ;;  %v787_v39 = vmul.f32 %v779_v61, %v773_v40  ;;  %v709_v19 = vsel %vm706_vm7, %v4403_v55, %v4347_v13  ;;  %v7857_v56 = vld [vmem:[#allocation33_spill] sm:$0xff]  ;;  %v7858_v40 = vld [vmem:[#allocation34_spill] sm:$0xff] }
 0x137   : > { %7847 = vst [vmem:[#allocation69_spill] sm:$0xff] %v4706_v50  ;;  %v710_v52 = vsel %vm706_vm7, %v4432_v34, %v4403_v55  ;;  %v618_v35 = vperm.slane %v4328_v59, 0  ;;  %v650_v7 = vperm.slane %v4356_v18, 0  ;;  %v754_v51 = vmul.f32 %v746_v1, %v742_v33  ;;  %v7861_v1 = vld [vmem:[#allocation28_spill] sm:$0xff] }
 0x138   : > { %7849 = vst [vmem:[#allocation70_spill] sm:$0xff] %v4714_v42  ;;  %1730 = vmatpush.bf16.msra.mxu0 %v1654_v62  ;;  %1772 = vmatpush.bf16.msra.mxu3 %v1655_v26  ;;  %v755_v15 = vmul.f32 %v747_v3, %v741_v28  ;;  %v682_v13 = vperm.slane %v4410_v63, 0  ;;  %v683_v25 = vperm.slane %v4410_v63, 1  ;;  %v646_v34 = vsel %vm642_vm5, %v4304_v49, %v4281_v41  ;;  %v7862_v28 = vld [vmem:[#allocation15_spill] sm:$0xff] }
 0x139   : > { %v677_v55 = vsel %vm674_vm6, %v4393_v48, %v4391_v45  ;;  %v678_v5 = vsel %vm674_vm6, %v4405_v60, %v4393_v48  ;;  %v651_v63 = vperm.slane %v4356_v18, 1  ;;  %v1646_v49 = vpack.c.bf16 %v786_v36, %v754_v51  ;;  %v7853_v45 = vld [vmem:[#allocation38_spill] sm:$0xff]  ;;  %v7854_v60 = vld [vmem:[#allocation41_spill] sm:$0xff] }
 0x13a   : > { %v1647_v37 = vpack.c.bf16 %v787_v39, %v755_v15  ;;  %v722_v54 = vmul.f32 %v714_v9, %v710_v52  ;;  %v723_v4 = vmul.f32 %v715_v30, %v709_v19  ;;  %v614_v48 = vsel %vm610_vm4, %v7853_v45, %v4314_v53  ;;  %v7863_v9 = vld [vmem:[#allocation17_spill] sm:$0xff]  ;;  %v7867_v19 = vld [vmem:[#allocation23_spill] sm:$0xff] }
 0x13b   : > { %1310 = vrot.lane.b32.xlu1 %v4611_v2, %s7848_s15  ;;  %1308 = vrot.lane.b32.xlu0 %v4605_v24, %s7848_s15  ;;  %v645_v47 = vsel %vm642_vm5, %v4281_v41, %v7854_v60  ;;  %v690_v18 = vmul.f32 %v682_v13, %v678_v5  ;;  %v691_v57 = vmul.f32 %v683_v25, %v677_v55  ;;  %v619_v27 = vperm.slane %v4328_v59, 1  ;;  %v7859_v59 = vld [vmem:[#allocation36_spill] sm:$0xff] }
 0x13c   : > { %1731 = vmatpush.bf16.msra.mxu0 %v1650_v20  ;;  %1773 = vmatpush.bf16.msra.mxu3 %v1651_v16  ;;  %v613_v6 = vsel %vm610_vm4, %v4314_v53, %v7855_v44  ;;  %v658_v11 = vmul.f32 %v650_v7, %v646_v34  ;;  %v586_v17 = vperm.slane %v7856_v8, 0  ;;  %v587_v61 = vperm.slane %v7856_v8, 1  ;;  %v7864_v20 = vld [vmem:[#allocation29_spill] sm:$0xff]  ;;  %v7870_v55 = vld [vmem:[#allocation20_spill] sm:$0xff] }
 0x13d   : > { %v4764_v21 = vpop.permute.xlu1 %990  ;;  %v4766_v31 = vpop.permute.xlu0 %964  ;;  %1312 = vrot.lane.b32.xlu2 %v4632_v38, %s7848_s15  ;;  %v1642_v62 = vpack.c.bf16 %v722_v54, %v690_v18  ;;  %v1643_v26 = vpack.c.bf16 %v723_v4, %v691_v57  ;;  %v626_v32 = vmul.f32 %v618_v35, %v614_v48  ;;  %v659_v41 = vmul.f32 %v651_v63, %v645_v47  ;;  %v7868_v35 = vld [vmem:[#allocation18_spill] sm:$0xff]  ;;  %v7871_v5 = vld [vmem:[#allocation16_spill] sm:$0xff]  ;;  %v7875_v57 = vld [vmem:[#allocation19_spill] sm:$0xff] }
 0x13e   : > { %7850 = vst [vmem:[#allocation71_spill] sm:$0xff] %v4764_v21  ;;  %v4771_v22 = vpop.permute.xlu2 %1058  ;;  %v581_v58 = vsel %vm578_vm3, %v7858_v40, %v7857_v56  ;;  %v582_v23 = vsel %vm578_vm3, %v7859_v59, %v7858_v40  ;;  %v627_v53 = vmul.f32 %v619_v27, %v613_v6  ;;  %v554_v3 = vperm.slane %v7861_v1, 0  ;;  %v7874_v47 = vld [vmem:[#allocation14_spill] sm:$0xff] }
 0x13f   : > { %7851 = vst [vmem:[#allocation72_spill] sm:$0xff] %v4766_v31  ;;  %v555_v33 = vperm.slane %v7861_v1, 1  ;;  %v550_v30 = vsel %vm546_vm2, %v7863_v9, %v7862_v28  ;;  %v549_v16 = vsel %vm546_vm2, %v7862_v28, %v7864_v20  ;;  %v522_v52 = vperm.slane %v7867_v19, 0 }
 0x140   : > { %7852 = vst [vmem:[#allocation73_spill] sm:$0xff] %v4771_v22  ;;  %1732 = vmatpush.bf16.msra.mxu0 %v1646_v49  ;;  %1774 = vmatpush.bf16.msra.mxu3 %v1647_v37  ;;  %v491_v7 = vperm.slane %v7868_v35, 1  ;;  %v1638_v51 = vpack.c.bf16 %v658_v11, %v626_v32  ;;  %v1639_v15 = vpack.c.bf16 %v659_v41, %v627_v53  ;;  %v7872_v49 = vld [vmem:[#allocation13_spill] sm:$0xff]  ;;  %v7873_v37 = vld [vmem:[#allocation24_spill] sm:$0xff]  ;;  %v490_v48 = vperm.slane %v7868_v35, 0 }
 0x141   : > { %v594_v13 = vmul.f32 %v586_v17, %v582_v23  ;;  %v595_v25 = vmul.f32 %v587_v61, %v581_v58  ;;  %v486_v63 = vsel %vm483_vm0, %v7871_v5, %v7870_v55  ;;  %v518_v54 = vsel %vm514_vm1, %v7873_v37, %v7872_v49 }
 0x142   : > { %v562_v4 = vmul.f32 %v554_v3, %v550_v30  ;;  %v563_v45 = vmul.f32 %v555_v33, %v549_v16  ;;  %v523_v60 = vperm.slane %v7867_v19, 1  ;;  %v517_v18 = vsel %vm514_vm1, %v7872_v49, %v7874_v47 }
 0x143   : > { %1338 = vrot.lane.b32.xlu1 %v4605_v24, %s7860_s30  ;;  %1336 = vrot.lane.b32.xlu0 %v4608_v0, %s7860_s30  ;;  %v487_v27 = vsel %vm483_vm0, %v7875_v57, %v7871_v5  ;;  %v530_v11 = vmul.f32 %v522_v52, %v518_v54  ;;  %v499_v8 = vmul.f32 %v491_v7, %v486_v63  ;;  %vm998_vm0 = vcmp.lt.s32.totalorder %v4204_v12, 112 }
 0x144   : > { %1733 = vmatpush.bf16.msra.mxu0 %v1642_v62  ;;  %1775 = vmatpush.bf16.msra.mxu3 %v1643_v26  ;;  %v1634_v44 = vpack.c.bf16 %v594_v13, %v562_v4  ;;  %v1635_v6 = vpack.c.bf16 %v595_v25, %v563_v45  ;;  %v498_v17 = vmul.f32 %v490_v48, %v487_v27  ;;  %vm1030_vm1 = vcmp.lt.s32.totalorder %v4204_v12, 111 }
 0x145   : > { %v4810_v36 = vpop.permute.xlu1 %996  ;;  %v4812_v39 = vpop.permute.xlu0 %994  ;;  %1340 = vrot.lane.b32.xlu2 %v4611_v2, %s7860_s30  ;;  %v531_v61 = vmul.f32 %v523_v60, %v517_v18  ;;  %vm1062_vm2 = vcmp.lt.s32.totalorder %v4204_v12, 110  ;;  %vm1094_vm3 = vcmp.lt.s32.totalorder %v4204_v12, 98  ;;  %vm1158_vm4 = vcmp.lt.s32.totalorder %v4204_v12, 96 }
 0x146   : > { %7865 = vst [vmem:[#allocation38_spill] sm:$0xff] %v4810_v36  ;;  %v4818_v34 = vpop.permute.xlu2 %1088  ;;  %v1630_v32 = vpack.c.bf16 %v530_v11, %v498_v17  ;;  %v4961_v17 = vld [vmem:[%s7533_s2 + $0x40] ss:$8 sm:$0xf]  ;;  %vm1190_vm5 = vcmp.lt.s32.totalorder %v4204_v12, 95  ;;  %vm1126_vm9 = vcmp.lt.s32.totalorder %v4204_v12, 97 }
 0x147   : > { %7866 = vst [vmem:[#allocation41_spill] sm:$0xff] %v4812_v39  ;;  %v1631_v41 = vpack.c.bf16 %v531_v61, %v499_v8  ;;  %v4966_v61 = vld [vmem:[%s7533_s2 + $0x41] ss:$8 sm:$0xf]  ;;  %vm1222_vm10 = vcmp.lt.s32.totalorder %v4204_v12, 94  ;;  %vm1725_vm12 = vcmask 130048  }
 0x148   : > { %7869 = vst [vmem:[#allocation25_spill] sm:$0xff] %v4818_v34  ;;  %1734 = vmatpush.bf16.msra.mxu0 %v1638_v51  ;;  %1776 = vmatpush.bf16.msra.mxu3 %v1639_v15 }
 0x149   : > { %7913 = vst [vmem:[#allocation91_spill] sm:$0xff] %v4961_v17 }
 0x14a   : > { %7914 = vst [vmem:[#allocation92_spill] sm:$0xff] %v4966_v61 }
 0x14b   : > { %1370 = vrot.lane.b32.xlu1 %v4608_v0, %s7876_s16  ;;  %1342 = vrot.lane.b32.xlu0 %v4632_v38, %s7860_s30 }
 0x14c   : > { %1735 = vmatpush.bf16.msra.mxu0 %v1634_v44  ;;  %1777 = vmatpush.bf16.msra.mxu3 %v1635_v6 }
 0x14d   : > { %v4842_v62 = vpop.permute.xlu1 %1026  ;;  %v4844_v26 = vpop.permute.xlu0 %1024  ;;  %1372 = vrot.lane.b32.xlu2 %v4605_v24, %s7876_s16 }
 0x14e   : > { %7877 = vst [vmem:[#allocation32_spill] sm:$0xff] %v4842_v62  ;;  %v4848_v56 = vpop.permute.xlu2 %1118  ;;  %v1033_v17 = vsel %vm1030_vm1, %v4674_v46, %v4844_v26  ;;  %v5053_v46 = vld [vmem:[%s7533_s2 + $0x23] ss:$8 sm:$0xf] }
 0x14f   : > { %7878 = vst [vmem:[#allocation33_spill] sm:$0xff] %v4844_v26  ;;  %v5048_v26 = vsel %vm998_vm0, %v4812_v39, %v4810_v36  ;;  %v1384_v36 = vperm.slane %v5014_v29, 0  ;;  %v3787_v39 = vld [vmem:[%s7534_s3 + $0x8] sm:$0xf0] }
 0x150   : > { %7879 = vst [vmem:[#allocation34_spill] sm:$0xff] %v4848_v56  ;;  %1736 = vmatpush.bf16.msra.mxu0 %v1630_v32  ;;  %1778 = vmatpush.bf16.msra.mxu3 %v1631_v41  ;;  %v7915_v32 = vld [vmem:[#allocation65_spill] sm:$0xff] }
 0x151   : > { %v881_v41 = vperm.slane %v7915_v32, 3  ;;  %7927 = vst [vmem:[#allocation99_spill] sm:$0xff] %v5048_v26 }
 0x153   : > { %1376 = vrot.lane.b32.xlu1 %v4632_v38, %s7876_s16  ;;  %1374 = vrot.lane.b32.xlu0 %v4611_v2, %s7876_s16 }
 0x155   : > { %v4854_v40 = vpop.permute.xlu1 %1056  ;;  %v4856_v58 = vpop.permute.xlu0 %1054  ;;  %1400 = vrot.lane.b32.xlu2 %v4608_v0, %s7882_s23 }
 0x156   : > { %7880 = vst [vmem:[#allocation36_spill] sm:$0xff] %v4854_v40  ;;  %v4860_v59 = vpop.permute.xlu2 %1124 }
 0x157   : > { %7881 = vst [vmem:[#allocation28_spill] sm:$0xff] %v4856_v58 }
 0x158   : > { %7883 = vst [vmem:[#allocation15_spill] sm:$0xff] %v4860_v59 }
 0x15b   : > { %1404 = vrot.lane.b32.xlu1 %v4611_v2, %s7882_s23  ;;  %1402 = vrot.lane.b32.xlu0 %v4605_v24, %s7882_s23 }
 0x15d   : > { %v4866_v23 = vpop.permute.xlu1 %1086  ;;  %v4868_v53 = vpop.permute.xlu0 %1060  ;;  %1406 = vrot.lane.b32.xlu2 %v4632_v38, %s7882_s23 }
 0x15e   : > { %7884 = vst [vmem:[#allocation17_spill] sm:$0xff] %v4866_v23  ;;  %v4872_v1 = vpop.permute.xlu2 %1154 }
 0x15f   : > { %7885 = vst [vmem:[#allocation29_spill] sm:$0xff] %v4868_v53 }
 0x160   : > { %7886 = vst [vmem:[#allocation23_spill] sm:$0xff] %v4872_v1 }
 0x163   : > { %1432 = vrot.lane.b32.xlu1 %v4605_v24, %s7887_s0  ;;  %1430 = vrot.lane.b32.xlu0 %v4608_v0, %s7887_s0 }
 0x165   : > { %v4878_v3 = vpop.permute.xlu1 %1092  ;;  %v4880_v33 = vpop.permute.xlu0 %1090  ;;  %1434 = vrot.lane.b32.xlu2 %v4611_v2, %s7887_s0 }
 0x166   : > { %7888 = vst [vmem:[#allocation18_spill] sm:$0xff] %v4878_v3  ;;  %v4884_v28 = vpop.permute.xlu2 %1184 }
 0x167   : > { %7889 = vst [vmem:[#allocation20_spill] sm:$0xff] %v4880_v33 }
 0x168   : > { %7890 = vst [vmem:[#allocation16_spill] sm:$0xff] %v4884_v28 }
 0x16b   : > { %1460 = vrot.lane.b32.xlu1 %v4608_v0, %s7891_s1  ;;  %1436 = vrot.lane.b32.xlu0 %v4632_v38, %s7887_s0 }
 0x16d   : > { %v4890_v9 = vpop.permute.xlu1 %1122  ;;  %v4892_v30 = vpop.permute.xlu0 %1120  ;;  %1462 = vrot.lane.b32.xlu2 %v4605_v24, %s7891_s1  ;;  %v7918_v24 = vld [vmem:[#allocation57_spill] sm:$0xff] }
 0x16e   : > { %7892 = vst [vmem:[#allocation13_spill] sm:$0xff] %v4890_v9  ;;  %v4896_v20 = vpop.permute.xlu2 %1214 }
 0x16f   : > { %7893 = vst [vmem:[#allocation24_spill] sm:$0xff] %v4892_v30 }
 0x170   : > { %7894 = vst [vmem:[#allocation14_spill] sm:$0xff] %v4896_v20 }
 0x173   : > { %1466 = vrot.lane.b32.xlu1 %v4632_v38, %s7891_s1  ;;  %1464 = vrot.lane.b32.xlu0 %v4611_v2, %s7891_s1 }
 0x175   : > { %v4902_v16 = vpop.permute.xlu1 %1152  ;;  %v4904_v19 = vpop.permute.xlu0 %1150 }
 0x176   : > { %7895 = vst [vmem:[#allocation19_spill] sm:$0xff] %v4902_v16  ;;  %v4906_v52 = vpop.permute.xlu2 %1220 }
 0x177   : > { %7896 = vst [vmem:[#allocation74_spill] sm:$0xff] %v4904_v19 }
 0x178   : > { %7897 = vst [vmem:[#allocation75_spill] sm:$0xff] %v4906_v52  ;;  %v5009_v52 = vld [vmem:[%s7533_s2 + $0x45] ss:$8 sm:$0xf] }
 0x17d   : > { %v4908_v35 = vpop.permute.xlu1 %1182  ;;  %v4910_v7 = vpop.permute.xlu0 %1156 }
 0x17e   : > { %7898 = vst [vmem:[#allocation76_spill] sm:$0xff] %v4908_v35  ;;  %v4912_v51 = vpop.permute.xlu2 %1250 }
 0x17f   : > { %7899 = vst [vmem:[#allocation77_spill] sm:$0xff] %v4910_v7 }
 0x180   : > { %7900 = vst [vmem:[#allocation78_spill] sm:$0xff] %v4912_v51 }
 0x185   : > { %v4914_v15 = vpop.permute.xlu1 %1188  ;;  %v4916_v13 = vpop.permute.xlu0 %1186 }
 0x186   : > { %7901 = vst [vmem:[#allocation79_spill] sm:$0xff] %v4914_v15  ;;  %v4918_v38 = vpop.permute.xlu2 %1278  ;;  %v4990_v15 = vld [vmem:[%s7533_s2 + $0x44] ss:$8 sm:$0xf] }
 0x187   : > { %7902 = vst [vmem:[#allocation80_spill] sm:$0xff] %v4916_v13  ;;  %v7919_v13 = vld [vmem:[#allocation59_spill] sm:$0xff] }
 0x188   : > { %v874_v32 = vsel %vm870_vm14, %v7919_v13, %v7918_v24  ;;  %v5021_v13 = vld [vmem:[%s7533_s2 + $0x46] ss:$8 sm:$0xf] }
 0x189   : > { %v5016_v61 = vmul.f32 %v881_v41, %v874_v32  ;;  %v5036_v32 = vsel %vm998_vm0, %v4764_v21, %v7923_v14  ;;  %v7925_v41 = vld [vmem:[#allocation60_spill] sm:$0xff]  ;;  %v3695_v14 = vld [vmem:[%s7534_s3] sm:$0xf] }
 0x18a   : > { %7924 = vst [vmem:[#allocation97_spill] sm:$0xff] %v5036_v32  ;;  %v5042_v24 = vsel %vm966_vm15, %v7925_v41, %v4766_v31  ;;  %v5066_v31 = vsel %vm1030_vm1, %v4842_v62, %v4714_v42  ;;  %v5081_v62 = vor.u32 %v3787_v39, %v3695_v14  ;;  %v1097_v14 = vsel %vm1094_vm3, %v4866_v23, %v4818_v34  ;;  %v5143_v34 = vld [vmem:[%s7533_s2 + $0x47] ss:$8 sm:$0xf] }
 0x18b   : > { %7921 = vst [vmem:[#allocation95_spill] sm:$0xff] %v5016_v61  ;;  %v5106_v39 = vsel %vm1062_vm2, %v4771_v22, %v4868_v53  ;;  %v1350_v23 = vperm.slane %v5053_v46, 0 }
 0x18c   : > { %7926 = vst [vmem:[#allocation98_spill] sm:$0xff] %v5042_v24  ;;  %v1386_v24 = vperm.slane %v5014_v29, 2  ;;  %1737 = vmatmul.bf16.vlgmr.msra.gmra.mxu0 %v5081_v62  ;;  %1779 = vmatmul.bf16.vlgmr.msra.gmra.mxu3 %v5081_v62 }
 0x18d   : > { %v4920_v25 = vpop.permute.xlu1 %1218  ;;  %v4922_v55 = vpop.permute.xlu0 %1216  ;;  %7929 = vst [vmem:[#allocation101_spill] sm:$0xff] %v5066_v31 }
 0x18e   : > { %7903 = vst [vmem:[#allocation81_spill] sm:$0xff] %v4920_v25  ;;  %v1038_v25 = vperm.slane %v4979_v10, 0  ;;  %v5030_v10 = vsel %vm966_vm15, %v4706_v50, %v4704_v43  ;;  %v5058_v50 = vld [vmem:[%s7533_s2 + $0x40] ss:$8 sm:$0xf] }
 0x18f   : > { %v4928_v49 = vpop.permute.xlu2 %1306  ;;  %7922 = vst [vmem:[#allocation96_spill] sm:$0xff] %v5030_v10  ;;  %v1414_v61 = vperm.slane %v5058_v50, 0  ;;  %v1416_v42 = vperm.slane %v5058_v50, 2 }
 0x190   : > { %v5070_v41 = vmul.f32 %v1038_v25, %v1033_v17  ;;  %7931 = vst [vmem:[#allocation103_spill] sm:$0xff] %v5081_v62  ;;  %v5087_v25 = vsel %vm1062_vm2, %v4856_v58, %v4854_v40  ;;  %v5113_v58 = vld [vmem:[%s7533_s2 + $0x20] ss:$8 sm:$0xf] }
 0x191   : > { %7932 = vst [vmem:[#allocation104_spill] sm:$0xff] %v5087_v25  ;;  %v1320_v31 = vperm.slane %v5113_v58, 0  ;;  %v5160_v25 = vld [vmem:[%s7533_s2 + $0x6] ss:$8 sm:$0xf] }
 0x192   : > { %7930 = vst [vmem:[#allocation102_spill] sm:$0xff] %v5070_v41 }
 0x193   : > { %7933 = vst [vmem:[#allocation105_spill] sm:$0xff] %v5106_v39  ;;  %v1322_v39 = vperm.slane %v5113_v58, 2 }
 0x195   : > { %v4924_v5 = vpop.permute.xlu1 %1248  ;;  %v4926_v63 = vpop.permute.xlu0 %1246 }
 0x197   : > { %v4934_v4 = vpop.permute.xlu2 %1312 }
 0x198   : > { %7905 = vst [vmem:[#allocation83_spill] sm:$0xff] %v4934_v4 }
 0x19d   : > { %v4930_v37 = vpop.permute.xlu1 %1276  ;;  %v4932_v54 = vpop.permute.xlu0 %1252 }
 0x19e   : > { %7904 = vst [vmem:[#allocation82_spill] sm:$0xff] %v4932_v54 }
 0x19f   : > { %v4940_v60 = vpop.permute.xlu2 %1340 }
 0x1a0   : > { %7908 = vst [vmem:[#allocation86_spill] sm:$0xff] %v4940_v60 }
 0x1a5   : > { %v4936_v45 = vpop.permute.xlu1 %1282  ;;  %v4938_v48 = vpop.permute.xlu0 %1280 }
 0x1a6   : > { %7906 = vst [vmem:[#allocation84_spill] sm:$0xff] %v4936_v45 }
 0x1a7   : > { %7907 = vst [vmem:[#allocation85_spill] sm:$0xff] %v4938_v48  ;;  %v4946_v57 = vpop.permute.xlu2 %1372 }
 0x1ad   : > { %v4942_v47 = vpop.permute.xlu1 %1310  ;;  %v4944_v18 = vpop.permute.xlu0 %1308 }
 0x1ae   : > { %7909 = vst [vmem:[#allocation87_spill] sm:$0xff] %v4942_v47 }
 0x1af   : > { %v4956_v8 = vpop.permute.xlu2 %1400 }
 0x1b0   : > { %7912 = vst [vmem:[#allocation90_spill] sm:$0xff] %v4956_v8 }
 0x1b5   : > { %v4948_v27 = vpop.permute.xlu1 %1338  ;;  %v4950_v44 = vpop.permute.xlu0 %1336 }
 0x1b6   : > { %v1345_v53 = vsel %vm834_vm11, %v4948_v27, %v4940_v60  ;;  %v5148_v60 = vld [vmem:[%s7533_s2 + $0x7] ss:$8 sm:$0xf] }
 0x1b7   : > { %v5060_v21 = vpop.permute.xlu2 %1406 }
 0x1b8   : > { %7928 = vst [vmem:[#allocation100_spill] sm:$0xff] %v5060_v21 }
 0x1bd   : > { %v4952_v6 = vpop.permute.xlu1 %1370  ;;  %v4954_v11 = vpop.permute.xlu0 %1342 }
 0x1be   : > { %7910 = vst [vmem:[#allocation88_spill] sm:$0xff] %v4952_v6  ;;  %v1380_v43 = vsel %vm870_vm14, %v4952_v6, %v4946_v57  ;;  %v1352_v6 = vperm.slane %v5053_v46, 2  ;;  %v1347_v40 = vsel %vm834_vm11, %v4954_v11, %v4950_v44 }
 0x1bf   : > { %7911 = vst [vmem:[#allocation89_spill] sm:$0xff] %v4954_v11  ;;  %v1392_v11 = vmul.f32 %v1384_v36, %v1380_v43 }
 0x1c5   : > { %v4992_v1 = vpop.permute.xlu1 %1376  ;;  %v4994_v7 = vpop.permute.xlu0 %1374 }
 0x1c6   : > { %7920 = vst [vmem:[#allocation57_spill] sm:$0xff] %v4992_v1  ;;  %v1378_v17 = vsel %vm870_vm14, %v4994_v7, %v4992_v1 }
 0x1c7   : > { %v1394_v41 = vmul.f32 %v1386_v24, %v1378_v17  ;;  %v1315_v24 = vsel %vm738_vm8, %v4944_v18, %v4942_v47  ;;  %v1198_v17 = vperm.slane %v5143_v34, 0 }
 0x1cd   : > { %v5115_v10 = vpop.permute.xlu1 %1404  ;;  %v5117_v1 = vpop.permute.xlu0 %1402 }
 0x1ce   : > { %v1408_v22 = vsel %vm966_vm15, %v5115_v10, %v5060_v21  ;;  %v1410_v62 = vsel %vm966_vm15, %v4956_v8, %v5117_v1  ;;  %v1317_v21 = vsel %vm738_vm8, %v4934_v4, %v4928_v49  ;;  %v1290_v8 = vperm.slane %v5148_v60, 0 }
 0x1cf   : > { %v1422_v26 = vmul.f32 %v1414_v61, %v1410_v62  ;;  %v1424_v32 = vmul.f32 %v1416_v42, %v1408_v22  ;;  %v5162_v62 = vpop.permute.xlu2 %1434  ;;  %v1358_v42 = vmul.f32 %v1350_v23, %v1347_v40  ;;  %v1360_v22 = vmul.f32 %v1352_v6, %v1345_v53 }
 0x1d0   : > { %v1287_v61 = vsel %vm706_vm7, %v4936_v45, %v4930_v37  ;;  %v1168_v4 = vperm.slane %v5021_v13, 2  ;;  %v1292_v40 = vperm.slane %v5148_v60, 2  ;;  %v7934_v23 = vperm.slane %v4990_v15, 0 }
 0x1d1   : > { %v1690_v43 = vpack.c.bf16 %v1422_v26, %v1392_v11  ;;  %v1692_v36 = vpack.c.bf16 %v1424_v32, %v1394_v41  ;;  %v5178_v26 = vsel %vm1094_vm3, %v4880_v33, %v4878_v3  ;;  %v1285_v6 = vsel %vm706_vm7, %v4918_v38, %v4938_v48 }
 0x1d2   : > { %v5184_v53 = vmul.f32 %v7934_v23, %v1097_v14  ;;  %v1328_v11 = vmul.f32 %v1320_v31, %v1317_v21  ;;  %v1260_v32 = vperm.slane %v5160_v25, 0  ;;  %v1262_v41 = vperm.slane %v5160_v25, 2 }
 0x1d3   : > { %1743 = vmatpush.bf16.msra.mxu1 %v1690_v43  ;;  %1827 = vmatpush.bf16.msrb.mxu3 %v1692_v36  ;;  %v5195_v43 = vld [vmem:[%s7533_s2 + $0x60] ss:$8 sm:$0xf]  ;;  %v1686_v14 = vpack.c.bf16 %v4608_v0, %v1358_v42  ;;  %v1688_v23 = vpack.c.bf16 %v4611_v2, %v1360_v22  ;;  %v1298_v45 = vmul.f32 %v1290_v8, %v1287_v61  ;;  %v1200_v33 = vperm.slane %v5143_v34, 2 }
 0x1d4   : > { %v1330_v48 = vmul.f32 %v1322_v39, %v1315_v24  ;;  %v1255_v21 = vsel %vm674_vm6, %v4924_v5, %v4912_v51  ;;  %v1257_v31 = vsel %vm674_vm6, %v4932_v54, %v4926_v63  ;;  %v1230_v47 = vperm.slane %v5195_v43, 0  ;;  %v7935_v24 = vld [vmem:[#allocation75_spill] sm:$0xff] }
 0x1d5   : > { %v5197_v36 = vpop.permute.xlu1 %1432  ;;  %v5199_v3 = vpop.permute.xlu0 %1430  ;;  %v1127_v0 = vsel %vm1126_vm9, %v4890_v9, %v4860_v59  ;;  %v1225_v2 = vsel %vm1222_vm10, %v4896_v20, %v4922_v55  ;;  %v1300_v8 = vmul.f32 %v1292_v40, %v1285_v6  ;;  %v1232_v39 = vperm.slane %v5195_v43, 2  ;;  %v5241_v6 = vld [vmem:[%s7533_s2 + $0x41] ss:$8 sm:$0xf] }
 0x1d6   : > { %v1129_v42 = vsel %vm1126_vm9, %v4848_v56, %v4892_v30  ;;  %v1161_v22 = vsel %vm1158_vm4, %v4904_v19, %v4902_v16  ;;  %v1193_v61 = vsel %vm1190_vm5, %v4908_v35, %v4884_v28  ;;  %v1682_v59 = vpack.c.bf16 %v1328_v11, %v1298_v45  ;;  %v7937_v35 = vld [vmem:[#allocation77_spill] sm:$0xff]  ;;  %v7938_v51 = vld [vmem:[#allocation23_spill] sm:$0xff]  ;;  %v7940_v30 = vld [vmem:[#allocation80_spill] sm:$0xff] }
 0x1d7   : > { %1744 = vmatpush.bf16.msra.mxu1 %v1686_v14  ;;  %1828 = vmatpush.bf16.msrb.mxu3 %v1688_v23  ;;  %v7936_v14 = vld [vmem:[#allocation81_spill] sm:$0xff]  ;;  %v1684_v56 = vpack.c.bf16 %v1330_v48, %v1300_v8  ;;  %v1268_v19 = vmul.f32 %v1260_v32, %v1257_v31  ;;  %v1270_v20 = vmul.f32 %v1262_v41, %v1255_v21  ;;  %v1415_v28 = vperm.slane %v5058_v50, 1  ;;  %v1463_v48 = vpop.permute.xlu2 %1462 }
 0x1d8   : > { %v1223_v40 = vsel %vm1222_vm10, %v7936_v14, %v7935_v24  ;;  %v5246_v23 = vld [vmem:[%s7533_s2 + $0x42] ss:$8 sm:$0xf]  ;;  %v1159_v54 = vsel %vm1158_vm4, %v7938_v51, %v7937_v35  ;;  %v1238_v16 = vmul.f32 %v1230_v47, %v1225_v2  ;;  %v1409_v45 = vsel %vm966_vm15, %v5117_v1, %v5115_v10 }
 0x1d9   : > { %v7939_v24 = vld [vmem:[#allocation79_spill] sm:$0xff]  ;;  %v1240_v11 = vmul.f32 %v1232_v39, %v1223_v40  ;;  %v1444_v32 = vperm.slane %v5241_v6, 0  ;;  %v1474_v41 = vperm.slane %v5246_v23, 0  ;;  %v7941_v21 = vperm.slane %v5021_v13, 0 }
 0x1da   : > { %v1191_v9 = vsel %vm1190_vm5, %v7940_v30, %v7939_v24  ;;  %v1206_v8 = vmul.f32 %v1198_v17, %v1193_v61  ;;  %v1440_v47 = vsel %vm998_vm0, %v5199_v3, %v5197_v36  ;;  %v1385_v2 = vperm.slane %v5014_v29, 1 }
 0x1db   : > { %1745 = vmatpush.bf16.msra.mxu1 %v1682_v59  ;;  %1829 = vmatpush.bf16.msrb.mxu3 %v1684_v56  ;;  %v1174_v31 = vmul.f32 %v7941_v21, %v1161_v22  ;;  %v1379_v10 = vsel %vm870_vm14, %v4946_v57, %v4994_v7  ;;  %v1678_v1 = vpack.c.bf16 %v1268_v19, %v1238_v16  ;;  %v1351_v21 = vperm.slane %v5053_v46, 1 }
 0x1dc   : > { %v1680_v39 = vpack.c.bf16 %v1270_v20, %v1240_v11  ;;  %v1208_v22 = vmul.f32 %v1200_v33, %v1191_v9  ;;  %v1176_v61 = vmul.f32 %v1168_v4, %v1159_v54  ;;  %v1423_v40 = vmul.f32 %v1415_v28, %v1409_v45  ;;  %v3703_v33 = vld [vmem:[%s7534_s3 + $0x8] sm:$0xf]  ;;  %v3788_v9 = vld [vmem:[%s7534_s3 + $0x10] sm:$0xf0]  ;;  %v7942_v28 = vld [vmem:[#allocation93_spill] sm:$0xff] }
 0x1dd   : > { %v5274_v56 = vpop.permute.xlu1 %1460  ;;  %v5276_v59 = vpop.permute.xlu0 %1436  ;;  %v1346_v7 = vsel %vm834_vm11, %v4950_v44, %v4948_v27  ;;  %v1452_v57 = vmul.f32 %v1444_v32, %v1440_v47  ;;  %v1072_v20 = vperm.slane %v7942_v28, 2  ;;  %v1393_v16 = vmul.f32 %v1385_v2, %v1379_v10  ;;  %v7948_v2 = vld [vmem:[#allocation105_spill] sm:$0xff] }
 0x1de   : > { %v1470_v17 = vsel %vm1030_vm1, %v5274_v56, %v1463_v48  ;;  %v7943_v19 = vperm.slane %v5009_v52, 0  ;;  %v7944_v4 = vperm.slane %v4990_v15, 2  ;;  %v7945_v44 = vperm.slane %v5009_v52, 2 }
 0x1df   : > { %1746 = vmatpush.bf16.msra.mxu1 %v1678_v1  ;;  %1830 = vmatpush.bf16.msrb.mxu3 %v1680_v39  ;;  %v1482_v35 = vmul.f32 %v1474_v41, %v1470_v17  ;;  %v1674_v11 = vpack.c.bf16 %v1206_v8, %v1174_v31  ;;  %v1676_v41 = vpack.c.bf16 %v1208_v22, %v1176_v61  ;;  %v1321_v47 = vperm.slane %v5113_v58, 1  ;;  %v7946_v8 = vld [vmem:[#allocation104_spill] sm:$0xff] }
 0x1e0   : > { %v1142_v54 = vmul.f32 %v7943_v19, %v1129_v42  ;;  %v1112_v27 = vmul.f32 %v7944_v4, %v5178_v26  ;;  %v1144_v45 = vmul.f32 %v7945_v44, %v1127_v0  ;;  %v1691_v1 = vpack.c.bf16 %v1423_v40, %v1393_v16  ;;  %v7950_v16 = vld [vmem:[#allocation61_spill] sm:$0xff] }
 0x1e1   : > { %v1694_v32 = vpack.c.bf16 %v1482_v35, %v1452_v57  ;;  %v1359_v39 = vmul.f32 %v1351_v21, %v1346_v7  ;;  %v5301_v17 = vor.u32 %v3788_v9, %v3703_v33  ;;  %v1316_v42 = vsel %vm738_vm8, %v4928_v49, %v4944_v18  ;;  %v1699_v35 = vld [vmem:[%s7535_s4 + $0x8] sm:$0xff]  ;;  %v7949_v7 = vld [vmem:[#allocation92_spill] sm:$0xff]  ;;  %v3709_v9 = vld [vmem:[%s7536_s5 + $0x40] sm:$0xff] }
 0x1e2   : > { %v1445_v26 = vperm.slane %v5241_v6, 1  ;;  %v1475_v0 = vperm.slane %v5246_v23, 1  ;;  %v1439_v31 = vsel %vm998_vm0, %v5197_v36, %v5162_v62  ;;  %v7947_v49 = vperm.slane %v7942_v28, 0 }
 0x1e3   : > { %1747 = vmatpush.bf16.msra.mxu1 %v1674_v11  ;;  %1764 = vmatpush.bf16.msra.mxu2 %v1694_v32  ;;  %v1080_v10 = vmul.f32 %v1072_v20, %v7948_v2  ;;  %v1291_v22 = vperm.slane %v5148_v60, 1  ;;  %v1286_v61 = vsel %vm706_vm7, %v4930_v37, %v4918_v38  ;;  %v1670_v21 = vpack.c.bf16 %v1142_v54, %v5184_v53 }
 0x1e4   : > { %1831 = vmatpush.bf16.msrb.mxu3 %v1676_v41  ;;  %v1078_v18 = vmul.f32 %v7947_v49, %v7946_v8  ;;  %v1672_v36 = vpack.c.bf16 %v1144_v45, %v1112_v27  ;;  %v1008_v57 = vperm.slane %v7949_v7, 2  ;;  %v3983_v33 = vmov 0   ;;  %v7951_v27 = vld [vmem:[#allocation91_spill] sm:$0xff]  ;;  %v7953_v45 = vld [vmem:[#allocation94_spill] sm:$0xff] }
 0x1e5   : > { %v5325_v40 = vpop.permute.xlu0 %1464  ;;  %3858 = vset.pattern.permute.xlu0 %v3983_v33  ;;  %3859 = vset.pattern.permute.xlu1 %v3983_v33  ;;  %v1687_v38 = vpack.c.bf16 %v7950_v16, %v1359_v39  ;;  %v1329_v37 = vmul.f32 %v1321_v47, %v1316_v42  ;;  %v1261_v53 = vperm.slane %v5160_v25, 1  ;;  %v1256_v19 = vsel %vm674_vm6, %v4926_v63, %v4924_v5  ;;  %v7955_v47 = vld [vmem:[#allocation97_spill] sm:$0xff]  ;;  %v7957_v63 = vld [vmem:[#allocation102_spill] sm:$0xff]  ;;  %v7964_v16 = vld [vmem:[#allocation59_spill] sm:$0xff] }
 0x1e6   : > { %v1469_v20 = vsel %vm1030_vm1, %v1463_v48, %v5325_v40  ;;  %3705 = vmatmul.msk.bf16.vlgmr.msra.gmra.mxu2 %vm1725_vm12, %v5301_v17  ;;  %1707 = vperm.xlu0 %3858, %v1699_v35   ;;  %v1453_v54 = vmul.f32 %v1445_v26, %v1439_v31  ;;  %v976_v44 = vperm.slane %v7951_v27, 2  ;;  %v7952_v48 = vld [vmem:[#allocation101_spill] sm:$0xff]  ;;  %v7954_v11 = vperm.slane %v7953_v45, 2  ;;  %v7958_v35 = vld [vmem:[#allocation99_spill] sm:$0xff] }
 0x1e7   : > { %1785 = vmatpush.bf16.msrb.mxu2 %v1691_v1  ;;  %1748 = vmatpush.bf16.msra.mxu1 %v1670_v21  ;;  %v1483_v4 = vmul.f32 %v1475_v0, %v1469_v20  ;;  %v1299_v41 = vmul.f32 %v1291_v22, %v1286_v61  ;;  %v7956_v1 = vperm.slane %v7949_v7, 0  ;;  %v1231_v42 = vperm.slane %v5195_v43, 1  ;;  %v7959_v61 = vld [vmem:[#allocation16_spill] sm:$0xff] }
 0x1e8   : > { %1902 = vperm.xlu1 %3859, %v3709_v9   ;;  %1832 = vmatpush.bf16.msrb.mxu3 %v1672_v36  ;;  %v1048_v32 = vmul.f32 %v7954_v11, %v7952_v48  ;;  %v1224_v5 = vsel %vm1222_vm10, %v4922_v55, %v7936_v14  ;;  %v1666_v26 = vpack.c.bf16 %v1078_v18, %v7957_v63  ;;  %v1199_v22 = vperm.slane %v5143_v34, 1  ;;  %v7960_v36 = vld [vmem:[#allocation96_spill] sm:$0xff]  ;;  %v7962_v18 = vld [vmem:[#allocation98_spill] sm:$0xff] }
 0x1e9   : > { %v1014_v39 = vmul.f32 %v7956_v1, %v7955_v47  ;;  %v1695_v0 = vpack.c.bf16 %v1483_v4, %v1453_v54  ;;  %v1016_v31 = vmul.f32 %v1008_v57, %v7958_v35  ;;  %3857 = vset.pattern.permute.xlu2 %v3983_v33  ;;  %v1683_v49 = vpack.c.bf16 %v1329_v37, %v1299_v41  ;;  %v3697_v57 = vld [vmem:[%s7534_s3 + $0xc] sm:$0xf0]  ;;  %v7963_v33 = vld [vmem:[#allocation65_spill] sm:$0xff]  ;;  %v7967_v4 = vld [vmem:[#allocation58_spill] sm:$0xff] }
 0x1ea   : > { %v1668_v8 = vpack.c.bf16 %v1080_v10, %v1048_v32  ;;  %v1269_v2 = vmul.f32 %v1261_v53, %v1256_v19  ;;  %v1192_v21 = vsel %vm1190_vm5, %v7959_v61, %v7940_v30  ;;  %v7961_v55 = vperm.slane %v7951_v27, 0  ;;  %v3786_v10 = vld [vmem:[%s7534_s3 + $0x4] sm:$0xf]  ;;  %v7965_v30 = vld [vmem:[#allocation50_spill] sm:$0xff]  ;;  %v7966_v19 = vld [vmem:[#allocation19_spill] sm:$0xff] }
 0x1eb   : > { %1786 = vmatpush.bf16.msrb.mxu2 %v1687_v38  ;;  %1749 = vmatpush.bf16.msra.mxu1 %v1666_v26  ;;  %v984_v9 = vmul.f32 %v976_v44, %v7962_v18  ;;  %v880_v20 = vperm.slane %v7963_v33, 2  ;;  %v871_v38 = vsel %vm870_vm14, %v7965_v30, %v7964_v16  ;;  %v1239_v37 = vmul.f32 %v1231_v42, %v1224_v5  ;;  %v7968_v44 = vld [vmem:[#allocation63_spill] sm:$0xff]  ;;  %v7970_v42 = vld [vmem:[#allocation13_spill] sm:$0xff]  ;;  %v7971_v5 = vld [vmem:[#allocation24_spill] sm:$0xff] }
 0x1ec   : > { %1806 = vmatpush.bf16.msrb.mxu0 %v1695_v0  ;;  %v982_v14 = vmul.f32 %v7961_v55, %v7960_v36  ;;  %1833 = vmatpush.bf16.msrb.mxu3 %v1668_v8  ;;  %v1167_v53 = vperm.slane %v5021_v13, 1  ;;  %v1160_v54 = vsel %vm1158_vm4, %v7966_v19, %v7938_v51  ;;  %v7969_v48 = vpack.c.bf16 %v7967_v4, %v7968_v44  ;;  %v3892_v26 = vld [vmem:[%s4113_s24 + $0x18] sm:$0xff]  ;;  %v7972_v0 = vld [vmem:[#allocation95_spill] sm:$0xff]  ;;  %v7983_v4 = vld [vmem:[#allocation53_spill] sm:$0xff] }
 0x1ed   : > { %v1664_v32 = vpack.c.bf16 %v1016_v31, %v984_v9  ;;  %v1679_v41 = vpack.c.bf16 %v1269_v2, %v1239_v37  ;;  %v5385_v47 = vor.u32 %v3786_v10, %v3697_v57  ;;  %v1207_v1 = vmul.f32 %v1199_v22, %v1192_v21  ;;  %v7974_v2 = vld [vmem:[#allocation25_spill] sm:$0xff]  ;;  %v7975_v61 = vld [vmem:[#allocation67_spill] sm:$0xff]  ;;  %v7976_v21 = vld [vmem:[#allocation64_spill] sm:$0xff] }
 0x1ee   : > { %v1662_v11 = vpack.c.bf16 %v1014_v39, %v982_v14  ;;  %v1135_v63 = vperm.slane %v5009_v52, 1  ;;  %v1128_v51 = vsel %vm1126_vm9, %v7971_v5, %v7970_v42  ;;  %v1657_v39 = vpack.c.bf16 %v7972_v0, %v3892_v26  ;;  %v7978_v9 = vld [vmem:[#allocation73_spill] sm:$0xff]  ;;  %v7979_v10 = vld [vmem:[#allocation36_spill] sm:$0xff]  ;;  %v3893_v33 = vld [vmem:[%s4113_s24 + $0x10] sm:$0xff]  ;;  %s448_s24 = sand.u32 1, %s3949_s26  }
 0x1ef   : > { %1787 = vmatpush.bf16.msrb.mxu2 %v1683_v49  ;;  %3706 = vmatmul.msk.bf16.vlgmr.msrb.gmra.mxu0 %vm1725_vm12, %v5301_v17  ;;  %v888_v35 = vmul.f32 %v880_v20, %v871_v38  ;;  %v1175_v31 = vmul.f32 %v1167_v53, %v1160_v54  ;;  %v1103_v8 = vperm.slane %v4990_v15, 1  ;;  %v7973_v49 = vld [vmem:[#allocation20_spill] sm:$0xff]  ;;  %v7977_v36 = vpack.c.bf16 %v7975_v61, %v7976_v21  ;;  %v1698_v38 = vld [vmem:[%s7535_s4] sm:$0xff]  ;;  %v7982_v54 = vld [vmem:[#allocation55_spill] sm:$0xff]  ;;  %s3657_s14 = sshll.u32 %s448_s24, 6  ;;  %s3564_s18 = scalar_lea.sflag [#allocation4], %s448_s24 }
 0x1f0   : > { %1855 = vmatpush.bf16.msra.mxu0 %v7969_v48  ;;  %1750 = vmatpush.bf16.msra.mxu1 %v1662_v11  ;;  %v1096_v22 = vsel %vm1094_vm3, %v7974_v2, %v7973_v49  ;;  %v1143_v14 = vmul.f32 %v1135_v63, %v1128_v51  ;;  %v1071_v18 = vperm.slane %v7942_v28, 1  ;;  %v1064_v57 = vsel %vm1062_vm2, %v7979_v10, %v7978_v9  ;;  %v7980_v37 = vld [vmem:[#allocation32_spill] sm:$0xff]  ;;  %v7981_v53 = vld [vmem:[#allocation33_spill] sm:$0xff]  ;;  %v7990_v49 = vld [vmem:[#allocation54_spill] sm:$0xff] }
 0x1f1   : > { %1834 = vmatpush.bf16.msrb.mxu3 %v1664_v32  ;;  %v1675_v55 = vpack.c.bf16 %v1207_v1, %v1175_v31  ;;  %v1656_v20 = vpack.c.bf16 %v888_v35, %v3893_v33  ;;  %v1111_v16 = vmul.f32 %v1103_v8, %v1096_v22  ;;  %v1039_v30 = vperm.slane %v7953_v45, 1  ;;  %v7985_v11 = vld [vmem:[#allocation41_spill] sm:$0xff]  ;;  %v7986_v32 = vld [vmem:[#allocation62_spill] sm:$0xff]  ;;  %v1467_v1 = vpop.permute.xlu1 %1466  ;;  %1702 = vperm.xlu2 %3857, %v1698_v38   ;;  %v7987_v51 = vld [vmem:[#allocation60_spill] sm:$0xff] }
 0x1f2   : > { %v1032_v19 = vsel %vm1030_vm1, %v7981_v53, %v7980_v37  ;;  %v7984_v44 = vpack.c.bf16 %v7982_v54, %v7983_v4  ;;  %v1007_v48 = vperm.slane %v7949_v7, 1  ;;  %v1079_v42 = vmul.f32 %v1071_v18, %v1064_v57  ;;  %v7988_v26 = vld [vmem:[#allocation68_spill] sm:$0xff]  ;;  %v7993_v61 = vld [vmem:[#allocation51_spill] sm:$0xff]  ;;  %v7996_v57 = vld [vmem:[#allocation57_spill] sm:$0xff] }
 0x1f3   : > { %1788 = vmatpush.bf16.msrb.mxu2 %v1679_v41  ;;  %1751 = vmatmul.bf16.vlgmr.msra.gmra.mxu1 %v5385_v47  ;;  %v1000_v41 = vsel %vm998_vm0, %v7986_v32, %v7985_v11  ;;  %v1671_v63 = vpack.c.bf16 %v1143_v14, %v1111_v16  ;;  %v975_v5 = vperm.slane %v7951_v27, 1  ;;  %v968_v0 = vsel %vm966_vm15, %v7988_v26, %v7987_v51  ;;  %v7989_v8 = vld [vmem:[#allocation56_spill] sm:$0xff]  ;;  %v7997_v33 = vld [vmem:[#allocation90_spill] sm:$0xff]  ;;  %v7999_v38 = vld [vmem:[#allocation49_spill] sm:$0xff] }
 0x1f4   : > { %1813 = vmatpush.bf16.msrb.mxu1 %v7977_v36  ;;  %1856 = vmatpush.bf16.msra.mxu0 %v1657_v39  ;;  %v1476_v39 = vperm.slane %v5246_v23, 2  ;;  %v1047_v35 = vmul.f32 %v1039_v30, %v1032_v19  ;;  %v1468_v31 = vsel %vm1030_vm1, %v5325_v40, %v1467_v1  ;;  %v7991_v2 = vpack.c.bf16 %v7989_v8, %v7990_v49  ;;  %v7992_v22 = vld [vmem:[#allocation52_spill] sm:$0xff]  ;;  %v8002_v19 = vld [vmem:[#allocation45_spill] sm:$0xff]  ;;  %v3710_v51 = vld [vmem:[%s7536_s5 + $0x48] sm:$0xff] }
 0x1f5   : > { %1835 = vmatmul.bf16.vlgmr.msrb.gmra.mxu3 %v5385_v47  ;;  %v7994_v21 = vpack.c.bf16 %v7992_v22, %v7993_v61  ;;  %v1015_v36 = vmul.f32 %v1007_v48, %v1000_v41  ;;  %v1417_v14 = vperm.slane %v5058_v50, 3  ;;  %v1446_v18 = vperm.slane %v5241_v6, 2  ;;  %v7995_v10 = vld [vmem:[#allocation88_spill] sm:$0xff]  ;;  %v8007_v26 = vld [vmem:[#allocation47_spill] sm:$0xff] }
 0x1f6   : > { %v1667_v9 = vpack.c.bf16 %v1079_v42, %v1047_v35  ;;  %v1381_v40 = vsel %vm870_vm14, %v7996_v57, %v7995_v10  ;;  %v983_v30 = vmul.f32 %v975_v5, %v968_v0  ;;  %v1484_v50 = vmul.f32 %v1476_v39, %v1468_v31  ;;  %v8000_v37 = vld [vmem:[#allocation48_spill] sm:$0xff]  ;;  %v8006_v42 = vld [vmem:[#allocation86_spill] sm:$0xff]  ;;  %v8013_v22 = vld [vmem:[#allocation83_spill] sm:$0xff] }
 0x1f7   : > { %1789 = vmatpush.bf16.msrb.mxu2 %v1675_v55  ;;  %v1387_v55 = vperm.slane %v5014_v29, 3  ;;  %v1438_v29 = vsel %vm998_vm0, %v5162_v62, %v5276_v59  ;;  %v8001_v53 = vpack.c.bf16 %v7999_v38, %v8000_v37  ;;  %v8003_v54 = vld [vmem:[#allocation44_spill] sm:$0xff]  ;;  %v1353_v48 = vperm.slane %v5053_v46, 3  ;;  %v8008_v0 = vld [vmem:[#allocation46_spill] sm:$0xff]  ;;  %v8011_v46 = vld [vmem:[#allocation39_spill] sm:$0xff] }
 0x1f8   : > { %1814 = vmatpush.bf16.msrb.mxu1 %v1656_v20  ;;  %1857 = vmatpush.bf16.msra.mxu0 %v7984_v44  ;;  %v7998_v20 = vld [vmem:[#allocation100_spill] sm:$0xff]  ;;  %v8004_v4 = vpack.c.bf16 %v8002_v19, %v8003_v54  ;;  %v1663_v44 = vpack.c.bf16 %v1015_v36, %v983_v30  ;;  %v1454_v41 = vmul.f32 %v1446_v18, %v1438_v29  ;;  %v8010_v35 = vld [vmem:[#allocation42_spill] sm:$0xff]  ;;  %v1323_v8 = vperm.slane %v5113_v58, 3  ;;  %v8014_v61 = vld [vmem:[#allocation87_spill] sm:$0xff] }
 0x1f9   : > { %v1411_v16 = vsel %vm966_vm15, %v7998_v20, %v7997_v33  ;;  %v1395_v11 = vmul.f32 %v1387_v55, %v1381_v40  ;;  %v8009_v39 = vpack.c.bf16 %v8007_v26, %v8008_v0  ;;  %v8012_v31 = vpack.c.bf16 %v8010_v35, %v8011_v46  ;;  %1907 = vperm.xlu2 %3857, %v3710_v51   ;;  %v8016_v18 = vld [vmem:[#allocation85_spill] sm:$0xff]  ;;  %v8017_v10 = vld [vmem:[#allocation43_spill] sm:$0xff]  ;;  %v8018_v57 = vld [vmem:[#allocation40_spill] sm:$0xff] }
 0x1fa   : > { %v1425_v32 = vmul.f32 %v1417_v14, %v1411_v16  ;;  %v1696_v5 = vpack.c.bf16 %v1484_v50, %v1454_v41  ;;  %v1293_v36 = vperm.slane %v5148_v60, 3  ;;  %v1477_v55 = vperm.slane %v5246_v23, 3  ;;  %v8015_v14 = vld [vmem:[#allocation84_spill] sm:$0xff]  ;;  %v8020_v33 = vld [vmem:[#allocation37_spill] sm:$0xff]  ;;  %v8021_v20 = vld [vmem:[#allocation30_spill] sm:$0xff] }
 0x1fb   : > { %1790 = vmatpush.bf16.msrb.mxu2 %v1671_v63  ;;  %v8005_v63 = vld [vmem:[#allocation89_spill] sm:$0xff]  ;;  %v1284_v58 = vsel %vm706_vm7, %v8016_v18, %v8015_v14  ;;  %v8019_v40 = vpack.c.bf16 %v8017_v10, %v8018_v57  ;;  %v8022_v16 = vpack.c.bf16 %v8020_v33, %v8021_v20  ;;  %v1263_v60 = vperm.slane %v5160_v25, 3  ;;  %v3894_v30 = vld [vmem:[%s4600_s21 + $0x18] sm:$0xff]  ;;  %v8023_v38 = vld [vmem:[#allocation82_spill] sm:$0xff]  ;;  %s7452_s21 = scalar_lea.vmem [#allocation3], %s3657_s14 }
 0x1fc   : > { %1815 = vmatpush.bf16.msrb.mxu1 %v7991_v2  ;;  %1858 = vmatpush.bf16.msra.mxu0 %v7994_v21  ;;  %v1344_v62 = vsel %vm834_vm11, %v8006_v42, %v8005_v63  ;;  %v1693_v2 = vpack.c.bf16 %v1425_v32, %v1395_v11  ;;  %v1314_v21 = vsel %vm738_vm8, %v8014_v61, %v8013_v22  ;;  %v1447_v29 = vperm.slane %v5241_v6, 3  ;;  %v8024_v37 = vld [vmem:[#allocation78_spill] sm:$0xff]  ;;  %v8031_v41 = vld [vmem:[#allocation21_spill] sm:$0xff]  ;;  %v8043_v14 = vld [vmem:[#allocation15_spill] sm:$0xff] }
 0x1fd   : > { %v1361_v49 = vmul.f32 %v1353_v48, %v1344_v62  ;;  %v1331_v23 = vmul.f32 %v1323_v8, %v1314_v21  ;;  %v1301_v19 = vmul.f32 %v1293_v36, %v1284_v58  ;;  %v8025_v25 = vld [vmem:[#allocation14_spill] sm:$0xff]  ;;  %v8028_v48 = vld [vmem:[#allocation31_spill] sm:$0xff]  ;;  %v8033_v62 = vld [vmem:[#allocation76_spill] sm:$0xff]  ;;  %v1169_v51 = vperm.slane %v5021_v13, 3 }
 0x1fe   : > { %v8030_v32 = vld [vmem:[#allocation26_spill] sm:$0xff]  ;;  %v8036_v46 = vld [vmem:[#allocation77_spill] sm:$0xff]  ;;  %v8044_v57 = vld [vmem:[#allocation28_spill] sm:$0xff]  ;;  %v1041_v20 = vperm.slane %v7953_v45, 3 }
 0x1ff   : > { %1791 = vmatpush.bf16.msrb.mxu2 %v1667_v9  ;;  %v1471_v9 = vsel %vm1030_vm1, %v1467_v1, %v5274_v56  ;;  %v1689_v50 = vpack.c.bf16 %v3894_v30, %v1361_v49  ;;  %v1254_v56 = vsel %vm674_vm6, %v8024_v37, %v8023_v38  ;;  %v1441_v1 = vsel %vm998_vm0, %v5276_v59, %v5199_v3  ;;  %v8035_v35 = vld [vmem:[#allocation74_spill] sm:$0xff]  ;;  %v8040_v61 = vld [vmem:[#allocation17_spill] sm:$0xff] }
 0x200   : > { %1816 = vmatpush.bf16.msrb.mxu1 %v8001_v53  ;;  %1859 = vmatpush.bf16.msra.mxu0 %v8004_v4  ;;  %v1233_v53 = vperm.slane %v5195_v43, 3  ;;  %v1485_v54 = vmul.f32 %v1477_v55, %v1471_v9  ;;  %v8026_v4 = vld [vmem:[#allocation75_spill] sm:$0xff]  ;;  %v8032_v63 = vpack.c.bf16 %v8030_v32, %v8031_v41  ;;  %v1201_v3 = vperm.slane %v5143_v34, 3  ;;  %v8038_v8 = vld [vmem:[#allocation22_spill] sm:$0xff]  ;;  %v8050_v45 = vld [vmem:[#allocation69_spill] sm:$0xff] }
 0x201   : > { %v1226_v6 = vsel %vm1222_vm10, %v8026_v4, %v8025_v25  ;;  %v1271_v59 = vmul.f32 %v1263_v60, %v1254_v56  ;;  %v1455_v43 = vmul.f32 %v1447_v29, %v1441_v1  ;;  %v1685_v42 = vpack.c.bf16 %v1331_v23, %v1301_v19  ;;  %v8041_v21 = vld [vmem:[#allocation18_spill] sm:$0xff] }
 0x202   : > { %v1241_v26 = vmul.f32 %v1233_v53, %v1226_v6  ;;  %v1162_v34 = vsel %vm1158_vm4, %v8036_v46, %v8035_v35  ;;  %v1098_v36 = vsel %vm1094_vm3, %v8041_v21, %v8040_v61  ;;  %v8042_v55 = vld [vmem:[#allocation34_spill] sm:$0xff]  ;;  %v977_v56 = vperm.slane %v7951_v27, 3  ;;  %v8051_v53 = vld [vmem:[#allocation72_spill] sm:$0xff] }
 0x203   : > { %1792 = vmatpush.bf16.msrb.mxu2 %v1663_v44  ;;  %v8027_v44 = vld [vmem:[#allocation35_spill] sm:$0xff]  ;;  %v1697_v0 = vpack.c.bf16 %v1485_v54, %v1455_v43  ;;  %v1130_v18 = vsel %vm1126_vm9, %v8043_v14, %v8042_v55  ;;  %v1177_v58 = vmul.f32 %v1169_v51, %v1162_v34  ;;  %v8047_v60 = vld [vmem:[#allocation70_spill] sm:$0xff]  ;;  %v970_v19 = vsel %vm966_vm15, %v8051_v53, %v8050_v45 }
 0x204   : > { %1817 = vmatpush.bf16.msrb.mxu1 %v8009_v39  ;;  %1860 = vmatpush.bf16.msra.mxu0 %v8012_v31  ;;  %v8029_v11 = vpack.c.bf16 %v8027_v44, %v8028_v48  ;;  %v8034_v39 = vld [vmem:[#allocation103_spill] sm:$0xff]  ;;  %v1681_v13 = vpack.c.bf16 %v1271_v59, %v1241_v26  ;;  %v8049_v38 = vld [vmem:[#allocation38_spill] sm:$0xff]  ;;  %v985_v4 = vmul.f32 %v977_v56, %v970_v19 }
 0x205   : > { %v8037_v31 = vld [vmem:[#allocation27_spill] sm:$0xff]  ;;  %v3717_v56 = vld [vmem:[%s7536_s5 + $0x28] sm:$0xff] }
 0x206   : > { %1793 = vmatmul.bf16.vlgmr.msrb.gmra.mxu2 %v5385_v47  ;;  %v8039_v49 = vpack.c.bf16 %v8037_v31, %v8038_v8  ;;  %v3719_v53 = vld [vmem:[%s7536_s5 + $0x30] sm:$0xff] }
 0x207   : > { %1848 = vmatpush.bf16.msra.mxu2 %v1696_v5  ;;  %v1194_v5 = vsel %vm1190_vm5, %v7939_v24, %v8033_v62  ;;  %v1137_v24 = vperm.slane %v5009_v52, 3 }
 0x208   : > { %1818 = vmatpush.bf16.msrb.mxu1 %v8019_v40  ;;  %1861 = vmatpush.bf16.msra.mxu0 %v8022_v16  ;;  %v1209_v22 = vmul.f32 %v1201_v3, %v1194_v5  ;;  %v8045_v40 = vld [vmem:[#allocation29_spill] sm:$0xff]  ;;  %v8046_v16 = vld [vmem:[#allocation66_spill] sm:$0xff] }
 0x209   : > { %v1145_v9 = vmul.f32 %v1137_v24, %v1130_v18  ;;  %v1066_v33 = vsel %vm1062_vm2, %v8045_v40, %v8044_v57  ;;  %v1034_v23 = vsel %vm1030_vm1, %v8047_v60, %v8046_v16  ;;  %v1738_v6 = vpop.f32.mrf.mxu0  ;;  %v1960_v40 = vld [vmem:[%s7536_s5] sm:$0xff] }
 0x20a   : > { %v1677_v10 = vpack.c.bf16 %v1209_v22, %v1177_v58  ;;  %v1049_v1 = vmul.f32 %v1041_v20, %v1034_v23 }
 0x20b   : > { %1869 = vmatpush.bf16.msrb.mxu2 %v1693_v2  ;;  %v1105_v2 = vperm.slane %v4990_v15, 3  ;;  %v1073_v15 = vperm.slane %v7942_v28, 3  ;;  %v1009_v28 = vperm.slane %v7949_v7, 3 }
 0x20c   : > { %1819 = vmatpush.bf16.msrb.mxu1 %v8029_v11  ;;  %1862 = vmatpush.bf16.msra.mxu0 %v8032_v63 }
 0x20d   : > { %v1113_v52 = vmul.f32 %v1105_v2, %v1098_v36  ;;  %v1081_v29 = vmul.f32 %v1073_v15, %v1066_v33 }
 0x20f   : > { %1870 = vmatpush.bf16.msrb.mxu2 %v1689_v50  ;;  %1863 = vmatmul.bf16.vlgmr.msra.gmra.mxu0 %v8034_v39  ;;  %v1673_v30 = vpack.c.bf16 %v1145_v9, %v1113_v52  ;;  %v8048_v50 = vld [vmem:[#allocation71_spill] sm:$0xff]  ;;  %v1669_v25 = vpack.c.bf16 %v1081_v29, %v1049_v1  ;;  %v3716_v1 = vld [vmem:[%s7536_s5 + $0x20] sm:$0xff] }
 0x210   : > { %1820 = vmatpush.bf16.msrb.mxu1 %v8039_v49  ;;  %v1002_v37 = vsel %vm998_vm0, %v8049_v38, %v8048_v50  ;;  %v3713_v38 = vld [vmem:[%s7536_s5 + $0x10] sm:$0xff] }
 0x211   : > { %v1017_v54 = vmul.f32 %v1009_v28, %v1002_v37  ;;  %v1740_v41 = vpop.f32.mrf.mxu0  ;;  %v3714_v37 = vld [vmem:[%s7536_s5 + $0x18] sm:$0xff] }
 0x213   : > { %1871 = vmatpush.bf16.msrb.mxu2 %v1685_v42  ;;  %1821 = vmatmul.bf16.vlgmr.msrb.gmra.mxu1 %v8034_v39  ;;  %v1665_v7 = vpack.c.bf16 %v1017_v54, %v985_v4  ;;  %v3720_v54 = vld [vmem:[%s7536_s5 + $0x38] sm:$0xff] }
 0x214   : > { %1890 = vmatpush.bf16.msra.mxu1 %v1697_v0 }
 0x216   : > { %3707 = vmatmul.msk.bf16.vlgmr.msra.gmra.mxu2 %vm1725_vm12, %v5301_v17 }
 0x217   : > { %1872 = vmatpush.bf16.msrb.mxu2 %v1681_v13 }
 0x21b   : > { %1873 = vmatpush.bf16.msrb.mxu2 %v1677_v10 }
 0x21f   : > { %1874 = vmatpush.bf16.msrb.mxu2 %v1673_v30  ;;  %v1961_v30 = vld [vmem:[%s7536_s5 + $0x8] sm:$0xff] }
 0x223   : > { %1875 = vmatpush.bf16.msrb.mxu2 %v1669_v25  ;;  %3708 = vmatmul.msk.bf16.vlgmr.msra.gmra.mxu1 %vm1725_vm12, %v5301_v17 }
 0x227   : > { %1876 = vmatpush.bf16.msrb.mxu2 %v1665_v7 }
 0x22a   : > { %1877 = vmatmul.bf16.vlgmr.msrb.gmra.mxu2 %v5385_v47  ;;  %v1780_v47 = vpop.f32.mrf.mxu3 }
 0x232   : > { %v1782_v51 = vpop.f32.mrf.mxu3 }
 0x24b   : > { %v1703_v27 = vpop.permute.xlu2 %1702 }
 0x24c   : > { %v1739_v44 = vadd.f32 %v1738_v6, %v1703_v27  ;;  %v1781_v5 = vadd.f32 %v1780_v47, %v1703_v27 }
 0x253   : > { %v5663_v45 = vpop.permute.xlu2 %1907 }
 0x254   : > { %8060 = vst [vmem:[#allocation61_spill] sm:$0xff] %v5663_v45 }
 0x258   : > { %v1708_v63 = vpop.permute.xlu0 %1707 }
 0x259   : > { %v1741_v59 = vadd.f32 %v1740_v41, %v1708_v63  ;;  %v1783_v46 = vadd.f32 %v1782_v51, %v1708_v63 }
 0x25a   : > { %v5681_v25 = vpop.permute.xlu1 %1902 }
 0x25b   : > { %8062 = vst [vmem:[#allocation101_spill] sm:$0xff] %v5681_v25 }
 0x269   : > { %v1766_v48 = vpop.f32.mrf.mxu2 }
 0x26c   : > { %v1808_v26 = vpop.f32.mrf.mxu0 }
 0x270   : > { %v1752_v11 = vpop.f32.mrf.mxu1 }
 0x271   : > { %v1753_v32 = vadd.f32 %v1752_v11, %v1739_v44  ;;  %v1768_v62 = vpop.f32.mrf.mxu2 }
 0x273   : > { %v5571_v3 = vadd.f32 %v1766_v48, %v1753_v32  ;;  %v3722_v32 = vld [vmem:[%s7536_s5 + $0x50] sm:$0xff] }
 0x274   : > { %v1810_v2 = vpop.f32.mrf.mxu0 }
 0x275   : > { %8052 = vst [vmem:[#allocation81_spill] sm:$0xff] %v5571_v3  ;;  %1918 = vrot.lane.b32.xlu1 %v5571_v3, %s7838_s20 }
 0x278   : > { %v1754_v43 = vpop.f32.mrf.mxu1  ;;  %v1836_v24 = vpop.f32.mrf.mxu3 }
 0x279   : > { %v1755_v42 = vadd.f32 %v1754_v43, %v1741_v59  ;;  %v3723_v43 = vld [vmem:[%s7536_s5 + $0x58] sm:$0xff] }
 0x27b   : > { %v5575_v17 = vadd.f32 %v1768_v62, %v1755_v42 }
 0x27d   : > { %8053 = vst [vmem:[#allocation23_spill] sm:$0xff] %v5575_v17  ;;  %1920 = vrot.lane.b32.xlu2 %v5575_v17, %s7838_s20 }
 0x280   : > { %v1838_v14 = vpop.f32.mrf.mxu3 }
 0x289   : > { %v1794_v0 = vpop.f32.mrf.mxu2 }
 0x28a   : > { %v1795_v39 = vadd.f32 %v1794_v0, %v1781_v5  ;;  %v3726_v0 = vld [vmem:[%s7536_s5 + $0x68] sm:$0xff] }
 0x28c   : > { %v5579_v35 = vadd.f32 %v1808_v26, %v1795_v39  ;;  %v1864_v52 = vpop.f32.mrf.mxu0 }
 0x28d   : > { %v1865_v9 = vadd.f32 %v1864_v52, %v1703_v27 }
 0x28e   : > { %8054 = vst [vmem:[#allocation79_spill] sm:$0xff] %v5579_v35  ;;  %1922 = vrot.lane.b32.xlu0 %v5579_v35, %s7838_s20 }
 0x290   : > { %v1822_v34 = vpop.f32.mrf.mxu1 }
 0x291   : > { %v1796_v31 = vpop.f32.mrf.mxu2  ;;  %v1823_v49 = vadd.f32 %v1822_v34, %v1703_v27 }
 0x292   : > { %v1797_v8 = vadd.f32 %v1796_v31, %v1783_v46  ;;  %v3725_v31 = vld [vmem:[%s7536_s5 + $0x60] sm:$0xff] }
 0x293   : > { %v1837_v13 = vadd.f32 %v1836_v24, %v1823_v49 }
 0x294   : > { %v5583_v22 = vadd.f32 %v1810_v2, %v1797_v8  ;;  %v1866_v16 = vpop.f32.mrf.mxu0 }
 0x295   : > { %v1867_v60 = vadd.f32 %v1866_v16, %v1708_v63 }
 0x296   : > { %8055 = vst [vmem:[#allocation80_spill] sm:$0xff] %v5583_v22  ;;  %1924 = vrot.lane.b32.xlu1 %v5583_v22, %s7838_s20 }
 0x298   : > { %v1824_v21 = vpop.f32.mrf.mxu1 }
 0x299   : > { %v1850_v61 = vpop.f32.mrf.mxu2  ;;  %v1825_v55 = vadd.f32 %v1824_v21, %v1708_v63  ;;  %v3728_v21 = vld [vmem:[%s7536_s5 + $0x70] sm:$0xff] }
 0x29a   : > { %v5587_v36 = vadd.f32 %v1850_v61, %v1837_v13 }
 0x29b   : > { %v1839_v18 = vadd.f32 %v1838_v14, %v1825_v55 }
 0x29c   : > { %8056 = vst [vmem:[#allocation93_spill] sm:$0xff] %v5587_v36  ;;  %1926 = vrot.lane.b32.xlu2 %v5587_v36, %s7838_s20 }
 0x2a0   : > { %v1892_v10 = vpop.f32.mrf.mxu1 }
 0x2a1   : > { %v1852_v58 = vpop.f32.mrf.mxu2 }
 0x2a2   : > { %v5591_v15 = vadd.f32 %v1852_v58, %v1839_v18  ;;  %v3729_v58 = vld [vmem:[%s7536_s5 + $0x78] sm:$0xff] }
 0x2a4   : > { %8057 = vst [vmem:[#allocation104_spill] sm:$0xff] %v5591_v15  ;;  %1928 = vrot.lane.b32.xlu0 %v5591_v15, %s7838_s20 }
 0x2a8   : > { %v1894_v29 = vpop.f32.mrf.mxu1 }
 0x2ac   : > { %1964 = vperm.xlu0 %3858, %v1960_v40  }
 0x2ad   : > { %v1878_v57 = vpop.f32.mrf.mxu2 }
 0x2ae   : > { %v1879_v33 = vadd.f32 %v1878_v57, %v1865_v9 }
 0x2b0   : > { %v5598_v20 = vadd.f32 %v1892_v10, %v1879_v33 }
 0x2b2   : > { %8058 = vst [vmem:[#allocation105_spill] sm:$0xff] %v5598_v20  ;;  %1930 = vrot.lane.b32.xlu1 %v5598_v20, %s7838_s20 }
 0x2b4   : > { %1990 = vrot.lane.b32.xlu0 %v5575_v17, %s7843_s22 }
 0x2b5   : > { %v1880_v23 = vpop.f32.mrf.mxu2 }
 0x2b6   : > { %v1881_v28 = vadd.f32 %v1880_v23, %v1867_v60 }
 0x2b8   : > { %v5605_v50 = vadd.f32 %v1894_v29, %v1881_v28  ;;  %v2485_v28 = vld [vmem:[%s7537_s6] sm:$0xff] }
 0x2b9   : > { %v3731_v29 = vld [vmem:[%s7536_s5 + $0x80] sm:$0xff] }
 0x2ba   : > { %8059 = vst [vmem:[#allocation92_spill] sm:$0xff] %v5605_v50  ;;  %1969 = vperm.xlu1 %3859, %v1961_v30   ;;  %1932 = vrot.lane.b32.xlu2 %v5605_v50, %s7838_s20 }
 0x2bc   : > { %1996 = vrot.lane.b32.xlu0 %v5587_v36, %s7843_s22 }
 0x2c2   : > { %1992 = vrot.lane.b32.xlu1 %v5579_v35, %s7843_s22  ;;  %1988 = vrot.lane.b32.xlu2 %v5571_v3, %s7843_s22 }
 0x2c4   : > { %2002 = vrot.lane.b32.xlu0 %v5605_v50, %s7843_s22 }
 0x2ca   : > { %1998 = vrot.lane.b32.xlu1 %v5591_v15, %s7843_s22  ;;  %1994 = vrot.lane.b32.xlu2 %v5583_v22, %s7843_s22 }
 0x2cc   : > { %2059 = vrot.lane.b32.xlu0 %v5571_v3, %s7848_s15 }
 0x2d2   : > { %2035 = vperm.xlu1 %3859, %v3713_v38   ;;  %2000 = vrot.lane.b32.xlu2 %v5598_v20, %s7843_s22 }
 0x2d4   : > { %2065 = vrot.lane.b32.xlu0 %v5583_v22, %s7848_s15 }
 0x2d7   : > { %v5672_v19 = vpop.permute.xlu2 %1920 }
 0x2d8   : > { %8061 = vst [vmem:[#allocation91_spill] sm:$0xff] %v5672_v19 }
 0x2da   : > { %2061 = vrot.lane.b32.xlu1 %v5575_v17, %s7848_s15  ;;  %2040 = vperm.xlu2 %3857, %v3714_v37  }
 0x2dc   : > { %2071 = vrot.lane.b32.xlu0 %v5598_v20, %s7848_s15 }
 0x2e2   : > { %2067 = vrot.lane.b32.xlu1 %v5587_v36, %s7848_s15  ;;  %2063 = vrot.lane.b32.xlu2 %v5579_v35, %s7848_s15 }
 0x2e4   : > { %2111 = vperm.xlu0 %3858, %v3717_v56   ;;  %v2512_v56 = vld [vmem:[%s7539_s8 + $0x8] sm:$0xff] }
 0x2e7   : > { %v5693_v6 = vpop.permute.xlu1 %1918 }
 0x2ea   : > { %2073 = vrot.lane.b32.xlu1 %v5605_v50, %s7848_s15  ;;  %2069 = vrot.lane.b32.xlu2 %v5591_v15, %s7848_s15 }
 0x2ec   : > { %2134 = vrot.lane.b32.xlu0 %v5579_v35, %s7860_s30 }
 0x2f2   : > { %2130 = vrot.lane.b32.xlu1 %v5571_v3, %s7860_s30  ;;  %2106 = vperm.xlu2 %3857, %v3716_v1   ;;  %v2486_v1 = vld [vmem:[%s7537_s6 + $0x8] sm:$0xff] }
 0x2f4   : > { %2140 = vrot.lane.b32.xlu0 %v5591_v15, %s7860_s30 }
 0x2f6   : > { %v5683_v4 = vpop.permute.xlu2 %1926 }
 0x2f7   : > { %8063 = vst [vmem:[#allocation94_spill] sm:$0xff] %v5683_v4 }
 0x2fa   : > { %2136 = vrot.lane.b32.xlu1 %v5583_v22, %s7860_s30  ;;  %2132 = vrot.lane.b32.xlu2 %v5575_v17, %s7860_s30 }
 0x2fc   : > { %2177 = vperm.xlu0 %3858, %v3719_v53   ;;  %v3732_v53 = vld [vmem:[%s7536_s5 + $0x88] sm:$0xff] }
 0x300   : > { %v5687_v7 = vpop.permute.xlu0 %1922 }
 0x301   : > { %8064 = vst [vmem:[#allocation97_spill] sm:$0xff] %v5687_v7 }
 0x302   : > { %2142 = vrot.lane.b32.xlu1 %v5598_v20, %s7860_s30  ;;  %2138 = vrot.lane.b32.xlu2 %v5587_v36, %s7860_s30 }
 0x304   : > { %2203 = vrot.lane.b32.xlu0 %v5575_v17, %s7876_s16 }
 0x308   : > { %v5705_v48 = vpop.permute.xlu1 %1924 }
 0x309   : > { %8066 = vst [vmem:[#allocation99_spill] sm:$0xff] %v5705_v48  ;;  %v5917_v48 = vmul.f32 %v5663_v45, %v5575_v17 }
 0x30a   : > { %2182 = vperm.xlu1 %3859, %v3720_v54   ;;  %2144 = vrot.lane.b32.xlu2 %v5605_v50, %s7860_s30 }
 0x30b   : > { %8083 = vst [vmem:[#allocation73_spill] sm:$0xff] %v5917_v48 }
 0x30c   : > { %2209 = vrot.lane.b32.xlu0 %v5587_v36, %s7876_s16 }
 0x312   : > { %2205 = vrot.lane.b32.xlu1 %v5579_v35, %s7876_s16  ;;  %2201 = vrot.lane.b32.xlu2 %v5571_v3, %s7876_s16 }
 0x314   : > { %v5695_v27 = vpop.permute.xlu2 %1932  ;;  %2215 = vrot.lane.b32.xlu0 %v5605_v50, %s7876_s16 }
 0x316   : > { %v5703_v44 = vpop.permute.xlu0 %1928 }
 0x317   : > { %8065 = vst [vmem:[#allocation102_spill] sm:$0xff] %v5703_v44 }
 0x31a   : > { %2211 = vrot.lane.b32.xlu1 %v5591_v15, %s7876_s16  ;;  %2207 = vrot.lane.b32.xlu2 %v5583_v22, %s7876_s16 }
 0x31c   : > { %v5707_v11 = vpop.permute.xlu2 %1988  ;;  %2272 = vrot.lane.b32.xlu0 %v5571_v3, %s7882_s23 }
 0x31e   : > { %v5716_v41 = vpop.permute.xlu0 %1964 }
 0x322   : > { %2248 = vperm.xlu1 %3859, %v3722_v32   ;;  %2213 = vrot.lane.b32.xlu2 %v5598_v20, %s7876_s16 }
 0x324   : > { %v5718_v63 = vpop.permute.xlu1 %1930  ;;  %v5720_v59 = vpop.permute.xlu2 %1994  ;;  %2278 = vrot.lane.b32.xlu0 %v5583_v22, %s7882_s23 }
 0x325   : > { %8067 = vst [vmem:[#allocation16_spill] sm:$0xff] %v5720_v59  ;;  %v1910_v59 = vmul.f32 %v5681_v25, %v5571_v3 }
 0x326   : > { %v5729_v42 = vpop.permute.xlu0 %1990 }
 0x32a   : > { %2274 = vrot.lane.b32.xlu1 %v5575_v17, %s7882_s23  ;;  %2253 = vperm.xlu2 %3857, %v3723_v43   ;;  %v3721_v43 = vld [vmem:[%s7533_s2 + $0x25] ss:$8 sm:$0xf] }
 0x32c   : > { %v5731_v62 = vpop.permute.xlu1 %1969  ;;  %v5733_v47 = vpop.permute.xlu2 %2000  ;;  %2284 = vrot.lane.b32.xlu0 %v5598_v20, %s7882_s23 }
 0x32e   : > { %v5741_v5 = vpop.permute.xlu0 %1996 }
 0x332   : > { %2280 = vrot.lane.b32.xlu1 %v5587_v36, %s7882_s23  ;;  %2276 = vrot.lane.b32.xlu2 %v5579_v35, %s7882_s23 }
 0x334   : > { %v5743_v51 = vpop.permute.xlu1 %1992  ;;  %v5745_v26 = vpop.permute.xlu2 %2040  ;;  %2324 = vperm.xlu0 %3858, %v3726_v0  }
 0x335   : > { %8068 = vst [vmem:[#allocation96_spill] sm:$0xff] %v5745_v26 }
 0x336   : > { %v5754_v39 = vpop.permute.xlu0 %2002 }
 0x33a   : > { %2286 = vrot.lane.b32.xlu1 %v5605_v50, %s7882_s23  ;;  %2282 = vrot.lane.b32.xlu2 %v5591_v15, %s7882_s23 }
 0x33c   : > { %v5756_v46 = vpop.permute.xlu1 %1998  ;;  %v5758_v34 = vpop.permute.xlu2 %2063  ;;  %2347 = vrot.lane.b32.xlu0 %v5579_v35, %s7887_s0 }
 0x33e   : > { %v5767_v8 = vpop.permute.xlu0 %2059 }
 0x342   : > { %2343 = vrot.lane.b32.xlu1 %v5571_v3, %s7887_s0  ;;  %2319 = vperm.xlu2 %3857, %v3725_v31  }
 0x344   : > { %v5769_v49 = vpop.permute.xlu1 %2035  ;;  %v5771_v2 = vpop.permute.xlu2 %2069  ;;  %2353 = vrot.lane.b32.xlu0 %v5591_v15, %s7887_s0 }
 0x345   : > { %8069 = vst [vmem:[#allocation98_spill] sm:$0xff] %v5769_v49 }
 0x346   : > { %8070 = vst [vmem:[#allocation65_spill] sm:$0xff] %v5771_v2  ;;  %v5779_v24 = vpop.permute.xlu0 %2065 }
 0x347   : > { %8071 = vst [vmem:[#allocation59_spill] sm:$0xff] %v5779_v24 }
 0x34a   : > { %2349 = vrot.lane.b32.xlu1 %v5583_v22, %s7887_s0  ;;  %2345 = vrot.lane.b32.xlu2 %v5575_v17, %s7887_s0 }
 0x34c   : > { %v5781_v13 = vpop.permute.xlu1 %2061  ;;  %v5783_v61 = vpop.permute.xlu2 %2106  ;;  %2390 = vperm.xlu0 %3858, %v3728_v21   ;;  %v3743_v21 = vld [vmem:[%s7542_s11 + $0x40] sm:$0xff] }
 0x34e   : > { %v5792_v55 = vpop.permute.xlu0 %2071 }
 0x352   : > { %2355 = vrot.lane.b32.xlu1 %v5598_v20, %s7887_s0  ;;  %2351 = vrot.lane.b32.xlu2 %v5587_v36, %s7887_s0 }
 0x354   : > { %v5794_v14 = vpop.permute.xlu1 %2067  ;;  %v5796_v18 = vpop.permute.xlu2 %2132  ;;  %2416 = vrot.lane.b32.xlu0 %v5575_v17, %s7891_s1  ;;  %v1934_v17 = vsel %vm674_vm6, %v5683_v4, %v5718_v63  ;;  %v5971_v4 = vperm.slane %v3721_v43, 1 }
 0x355   : > { %8072 = vst [vmem:[#allocation50_spill] sm:$0xff] %v5796_v18 }
 0x356   : > { %v5805_v52 = vpop.permute.xlu0 %2111  ;;  %8091 = vst [vmem:[#allocation60_spill] sm:$0xff] %v5971_v4 }
 0x357   : > { %8073 = vst [vmem:[#allocation19_spill] sm:$0xff] %v5805_v52 }
 0x35a   : > { %2395 = vperm.xlu1 %3859, %v3729_v58   ;;  %2357 = vrot.lane.b32.xlu2 %v5605_v50, %s7887_s0  ;;  %v5869_v58 = vperm.slane %v3721_v43, 0 }
 0x35c   : > { %v5807_v9 = vpop.permute.xlu1 %2073  ;;  %v5809_v10 = vpop.permute.xlu2 %2138  ;;  %2422 = vrot.lane.b32.xlu0 %v5587_v36, %s7891_s1  ;;  %8079 = vst [vmem:[#allocation20_spill] sm:$0xff] %v5869_v58 }
 0x35e   : > { %v5817_v57 = vpop.permute.xlu0 %2134 }
 0x362   : > { %2418 = vrot.lane.b32.xlu1 %v5579_v35, %s7891_s1  ;;  %2414 = vrot.lane.b32.xlu2 %v5571_v3, %s7891_s1 }
 0x364   : > { %v5819_v40 = vpop.permute.xlu1 %2130  ;;  %v5821_v33 = vpop.permute.xlu2 %2144  ;;  %2428 = vrot.lane.b32.xlu0 %v5605_v50, %s7891_s1  ;;  %v2081_v50 = vsel %vm738_vm8, %v5792_v55, %v5767_v8 }
 0x365   : > { %8074 = vst [vmem:[#allocation58_spill] sm:$0xff] %v5819_v40 }
 0x366   : > { %8075 = vst [vmem:[#allocation63_spill] sm:$0xff] %v5821_v33  ;;  %v5829_v16 = vpop.permute.xlu0 %2140 }
 0x367   : > { %8076 = vst [vmem:[#allocation13_spill] sm:$0xff] %v5829_v16  ;;  %v5932_v16 = vmul.f32 %v5681_v25, %v5598_v20 }
 0x36a   : > { %2424 = vrot.lane.b32.xlu1 %v5591_v15, %s7891_s1  ;;  %2420 = vrot.lane.b32.xlu2 %v5583_v22, %s7891_s1 }
 0x36c   : > { %v5831_v60 = vpop.permute.xlu1 %2136  ;;  %v5833_v23 = vpop.permute.xlu2 %2201  ;;  %2489 = vperm.xlu0 %3858, %v2485_v28   ;;  %v3741_v28 = vld [vmem:[%s7540_s9 + $0x40] sm:$0xff] }
 0x36d   : > { %8077 = vst [vmem:[#allocation24_spill] sm:$0xff] %v5831_v60 }
 0x36e   : > { %v5843_v30 = vpop.permute.xlu0 %2177 }
 0x372   : > { %2461 = vperm.xlu1 %3859, %v3731_v29   ;;  %2426 = vrot.lane.b32.xlu2 %v5598_v20, %s7891_s1  ;;  %v2511_v29 = vld [vmem:[%s7539_s8] sm:$0xff]  ;;  %v1941_v20 = vsel %vm674_vm6, %v5695_v27, %v5672_v19  ;;  %v5969_v19 = vperm.slane %v3721_v43, 2 }
 0x374   : > { %v5845_v38 = vpop.permute.xlu1 %2142  ;;  %v5847_v37 = vpop.permute.xlu2 %2207  ;;  %2520 = vperm.xlu0 %3858, %v2512_v56   ;;  %v5880_v56 = vld [vmem:[%s7533_s2 + $0x6] ss:$8 sm:$0xf]  ;;  %8090 = vst [vmem:[#allocation62_spill] sm:$0xff] %v5969_v19 }
 0x375   : > { %8080 = vst [vmem:[#allocation25_spill] sm:$0xff] %v5880_v56  ;;  %v5888_v36 = vperm.slane %v5880_v56, 1 }
 0x376   : > { %v2204_v54 = vpop.permute.xlu0 %2203 }
 0x377   : > { %v2222_v32 = vsel %vm870_vm14, %v2204_v54, %v5847_v37  ;;  %8081 = vst [vmem:[#allocation67_spill] sm:$0xff] %v5888_v36 }
 0x37a   : > { %2494 = vperm.xlu1 %3859, %v2486_v1   ;;  %2466 = vperm.xlu2 %3857, %v3732_v53   ;;  %v2239_v53 = vmul.f32 %v5869_v58, %v2222_v32  ;;  %v5901_v32 = vld [vmem:[%s7533_s2 + $0x7] ss:$8 sm:$0xf] }
 0x37b   : > { %v5935_v3 = vperm.slane %v5901_v32, 1  ;;  %v5943_v52 = vperm.slane %v5901_v32, 0 }
 0x37c   : > { %v5864_v0 = vpop.permute.xlu1 %2182  ;;  %v2214_v31 = vpop.permute.xlu2 %2213  ;;  %2613 = vperm.xlu0 %3858, %v3743_v21  }
 0x37d   : > { %8078 = vst [vmem:[#allocation95_spill] sm:$0xff] %v5864_v0  ;;  %v5928_v0 = vperm.slane %v5880_v56, 3 }
 0x37e   : > { %v2210_v1 = vpop.permute.xlu0 %2209  ;;  %8086 = vst [vmem:[#allocation33_spill] sm:$0xff] %v5935_v3 }
 0x37f   : > { %v5885_v60 = vsel %vm870_vm14, %v2210_v1, %v2214_v31  ;;  %8085 = vst [vmem:[#allocation32_spill] sm:$0xff] %v5928_v0  ;;  %v1955_v45 = vmul.f32 %v5928_v0, %v1934_v17 }
 0x380   : > { %8087 = vst [vmem:[#allocation55_spill] sm:$0xff] %v5943_v52 }
 0x382   : > { %2592 = vperm.xlu1 %3859, %v3741_v28   ;;  %2515 = vperm.xlu2 %3857, %v2511_v29   ;;  %v1938_v28 = vsel %vm674_vm6, %v5693_v6, %v5687_v7  ;;  %v1940_v29 = vsel %vm674_vm6, %v5718_v63, %v5693_v6  ;;  %v5920_v7 = vperm.slane %v5880_v56, 0  ;;  %v5924_v6 = vmul.f32 %v5681_v25, %v5579_v35 }
 0x383   : > { %v1935_v63 = vsel %vm674_vm6, %v5703_v44, %v5695_v27 }
 0x384   : > { %v2206_v24 = vpop.permute.xlu1 %2205  ;;  %v2254_v15 = vpop.permute.xlu2 %2253  ;;  %8084 = vst [vmem:[#allocation36_spill] sm:$0xff] %v5920_v7  ;;  %v1952_v35 = vmul.f32 %v5920_v7, %v1940_v29  ;;  %v2010_v29 = vsel %vm706_vm7, %v5733_v47, %v5707_v11 }
 0x385   : > { %v2219_v21 = vsel %vm870_vm14, %v2206_v24, %v2210_v1  ;;  %v5892_v22 = vmul.f32 %v2254_v15, %v2239_v53  ;;  %v3744_v1 = vld [vmem:[%s7542_s11 + $0x48] sm:$0xff]  ;;  %v2022_v26 = vmul.f32 %v5943_v52, %v2010_v29 }
 0x386   : > { %v3742_v53 = vld [vmem:[%s7540_s9 + $0x48] sm:$0xff]  ;;  %v1972_v33 = vmul.f32 %v5716_v41, %v1952_v35  ;;  %v2152_v35 = vsel %vm834_vm11, %v5845_v38, %v5819_v40  ;;  %v6021_v40 = vperm.slane %v5901_v32, 3 }
 0x387   : > { %8082 = vst [vmem:[#allocation64_spill] sm:$0xff] %v5892_v22  ;;  %v1953_v22 = vmul.f32 %v5888_v36, %v1938_v28  ;;  %v5945_v28 = vperm.slane %v3721_v43, 3  ;;  %v2216_v36 = vpop.permute.xlu0 %2215 }
 0x388   : > { %8096 = vst [vmem:[#allocation51_spill] sm:$0xff] %v6021_v40 }
 0x389   : > { %8088 = vst [vmem:[#allocation53_spill] sm:$0xff] %v5945_v28  ;;  %v1973_v48 = vmul.f32 %v5716_v41, %v1953_v22  ;;  %v2236_v22 = vmul.f32 %v5971_v4, %v2219_v21  ;;  %v6049_v21 = vld [vmem:[%s7533_s2 + $0x40] ss:$8 sm:$0xf] }
 0x38a   : > { %2618 = vperm.xlu1 %3859, %v3744_v1   ;;  %2597 = vperm.xlu2 %3857, %v3742_v53   ;;  %v5962_v1 = vld [vmem:[%s7533_s2 + $0x20] ss:$8 sm:$0xf]  ;;  %v2224_v53 = vsel %vm870_vm14, %v2216_v36, %v2204_v54 }
 0x38b   : > { %v5967_v25 = vperm.slane %v5962_v1, 0  ;;  %v2242_v27 = vmul.f32 %v5945_v28, %v2224_v53  ;;  %v5990_v53 = vld [vmem:[%s7533_s2 + $0x23] ss:$8 sm:$0xf] }
 0x38c   : > { %v2212_v44 = vpop.permute.xlu1 %2211  ;;  %v5974_v56 = vpop.permute.xlu2 %2276 }
 0x38d   : > { %8089 = vst [vmem:[#allocation41_spill] sm:$0xff] %v5967_v25  ;;  %v2218_v54 = vsel %vm870_vm14, %v2212_v44, %v2216_v36  ;;  %v2220_v43 = vsel %vm870_vm14, %v5847_v37, %v2212_v44  ;;  %v5992_v17 = vmul.f32 %v2254_v15, %v2242_v27  ;;  %v5998_v36 = vperm.slane %v5990_v53, 0 }
 0x38e   : > { %v2240_v18 = vmul.f32 %v5971_v4, %v2220_v43  ;;  %v2241_v2 = vmul.f32 %v5969_v19, %v2218_v54  ;;  %v2223_v44 = vsel %vm870_vm14, %v2214_v31, %v5833_v23  ;;  %v2093_v37 = vmul.f32 %v5967_v25, %v2081_v50 }
 0x38f   : > { %8092 = vst [vmem:[#allocation68_spill] sm:$0xff] %v5992_v17  ;;  %v2221_v27 = vsel %vm870_vm14, %v5833_v23, %v2206_v24  ;;  %v1956_v43 = vmul.f32 %v5920_v7, %v1941_v20  ;;  %v6017_v17 = vmul.f32 %v5928_v0, %v1935_v63  ;;  %v1975_v50 = vmul.f32 %v5716_v41, %v1955_v45 }
 0x390   : > { %8093 = vst [vmem:[#allocation56_spill] sm:$0xff] %v5998_v36  ;;  %v6011_v54 = vmul.f32 %v2254_v15, %v2240_v18  ;;  %v6013_v29 = vmul.f32 %v2254_v15, %v2241_v2  ;;  %v2043_v31 = vmul.f32 %v5769_v49, %v2022_v26  ;;  %v2164_v24 = vmul.f32 %v5998_v36, %v2152_v35  ;;  %v6027_v15 = vpop.permute.xlu0 %2272 }
 0x391   : > { %v2238_v18 = vmul.f32 %v5945_v28, %v2223_v44  ;;  %v2237_v20 = vmul.f32 %v5969_v19, %v5885_v60  ;;  %v2235_v2 = vmul.f32 %v5869_v58, %v2221_v27  ;;  %v2292_v45 = vsel %vm966_vm15, %v6027_v15, %v5974_v56 }
 0x392   : > { %8094 = vst [vmem:[#allocation54_spill] sm:$0xff] %v6011_v54  ;;  %v1980_v23 = vadd.f32 %v1972_v33, %v1910_v59  ;;  %v2004_v26 = vsel %vm706_vm7, %v5741_v5, %v5733_v47  ;;  %v2008_v60 = vsel %vm706_vm7, %v5707_v11, %v5743_v51  ;;  %v2114_v63 = vmul.f32 %v5783_v61, %v2093_v37 }
 0x393   : > { %8095 = vst [vmem:[#allocation52_spill] sm:$0xff] %v6013_v29  ;;  %v1981_v19 = vadd.f32 %v1973_v48, %v5924_v6  ;;  %v2011_v11 = vsel %vm706_vm7, %v5754_v39, %v5729_v42  ;;  %v6065_v37 = vperm.slane %v5962_v1, 1  ;;  %v6068_v28 = vperm.slane %v5962_v1, 3 }
 0x394   : > { %v2249_v35 = vpop.permute.xlu1 %2248  ;;  %v6051_v44 = vpop.permute.xlu2 %2282  ;;  %v6076_v48 = vperm.slane %v6049_v21, 0  ;;  %v1983_v6 = vadd.f32 %v1975_v50, %v5932_v16  ;;  %v2023_v4 = vmul.f32 %v5935_v3, %v2008_v60  ;;  %v2005_v16 = vsel %vm706_vm7, %v5756_v46, %v5754_v39  ;;  %v8103_v39 = vld [vmem:[#allocation58_spill] sm:$0xff] }
 0x395   : > { %8097 = vst [vmem:[#allocation88_spill] sm:$0xff] %v6051_v44  ;;  %v2256_v59 = vmul.f32 %v2249_v35, %v2235_v2  ;;  %v6053_v33 = vmul.f32 %v2249_v35, %v2236_v22  ;;  %v6055_v27 = vmul.f32 %v2249_v35, %v2237_v20  ;;  %v6057_v47 = vmul.f32 %v2249_v35, %v2238_v18 }
 0x396   : > { %8099 = vst [vmem:[#allocation90_spill] sm:$0xff] %v6065_v37  ;;  %v2051_v2 = vadd.f32 %v2043_v31, %v1980_v23  ;;  %v2075_v18 = vsel %vm738_vm8, %v5794_v14, %v5792_v55  ;;  %v2185_v20 = vmul.f32 %v5843_v30, %v2164_v24  ;;  %v1976_v22 = vmul.f32 %v5731_v62, %v1956_v43 }
 0x397   : > { %8098 = vst [vmem:[#allocation57_spill] sm:$0xff] %v6055_v27  ;;  %v2025_v35 = vmul.f32 %v6021_v40, %v2004_v26  ;;  %v2026_v31 = vmul.f32 %v5943_v52, %v2011_v11  ;;  %v2079_v55 = vsel %vm738_vm8, %v5767_v8, %v5758_v34  ;;  %v2146_v24 = vsel %vm834_vm11, %v5809_v10, %v5845_v38 }
 0x398   : > { %8100 = vst [vmem:[#allocation100_spill] sm:$0xff] %v6068_v28  ;;  %v2122_v23 = vadd.f32 %v2114_v63, %v2051_v2  ;;  %v2044_v43 = vmul.f32 %v5769_v49, %v2023_v4  ;;  %v2096_v50 = vmul.f32 %v6068_v28, %v2075_v18  ;;  %v6098_v26 = vperm.slane %v5990_v53, 3  ;;  %v6100_v60 = vpop.permute.xlu0 %2278 }
 0x399   : > { %8101 = vst [vmem:[#allocation49_spill] sm:$0xff] %v6076_v48  ;;  %v2046_v8 = vmul.f32 %v5769_v49, %v2025_v35  ;;  %v6104_v63 = vperm.slane %v5990_v53, 1  ;;  %v2306_v11 = vmul.f32 %v6076_v48, %v2292_v45  ;;  %v2094_v2 = vmul.f32 %v6065_v37, %v2079_v55  ;;  %v8105_v45 = vld [vmem:[#allocation96_spill] sm:$0xff] }
 0x39a   : > { %8102 = vst [vmem:[#allocation48_spill] sm:$0xff] %v6098_v26  ;;  %v2193_v38 = vadd.f32 %v2185_v20, %v2122_v23  ;;  %v2082_v4 = vsel %vm738_vm8, %v5807_v9, %v5781_v13  ;;  %v2150_v18 = vsel %vm834_vm11, %v8103_v39, %v5817_v57  ;;  %v2167_v35 = vmul.f32 %v6098_v26, %v2146_v24  ;;  %v8104_v20 = vld [vmem:[#allocation73_spill] sm:$0xff] }
 0x39b   : > { %v1984_v23 = vadd.f32 %v1976_v22, %v8104_v20  ;;  %v2047_v0 = vmul.f32 %v8105_v45, %v2026_v31  ;;  %v2029_v27 = vmul.f32 %v6021_v40, %v2005_v16  ;;  %v2052_v29 = vadd.f32 %v2044_v43, %v1981_v19  ;;  %v8106_v22 = vld [vmem:[#allocation65_spill] sm:$0xff]  ;;  %v8107_v31 = vld [vmem:[#allocation50_spill] sm:$0xff]  ;;  %v8110_v43 = vld [vmem:[#allocation92_spill] sm:$0xff] }
 0x39c   : > { %v2275_v58 = vpop.permute.xlu1 %2274  ;;  %v6117_v52 = vpop.permute.xlu2 %2319  ;;  %v2264_v55 = vadd.f32 %v2256_v59, %v2193_v38  ;;  %v2115_v54 = vmul.f32 %v5783_v61, %v2094_v2  ;;  %v2117_v44 = vmul.f32 %v5783_v61, %v2096_v50  ;;  %v2054_v39 = vadd.f32 %v2046_v8, %v1983_v6  ;;  %v8108_v38 = vld [vmem:[#allocation63_spill] sm:$0xff]  ;;  %v8111_v50 = vld [vmem:[#allocation61_spill] sm:$0xff] }
 0x39d   : > { %v2327_v7 = vmul.f32 %v6117_v52, %v2306_v11  ;;  %v2097_v24 = vmul.f32 %v5967_v25, %v2082_v4  ;;  %v2165_v37 = vmul.f32 %v6104_v63, %v2150_v18  ;;  %v2076_v59 = vsel %vm738_vm8, %v8106_v22, %v5807_v9 }
 0x39e   : > { %v2153_v19 = vsel %vm834_vm11, %v8108_v38, %v8107_v31  ;;  %v2188_v16 = vmul.f32 %v5843_v30, %v2167_v35  ;;  %v6139_v6 = vperm.slane %v6049_v21, 3  ;;  %v1917_v8 = vmul.f32 %v8111_v50, %v8110_v43 }
 0x39f   : > { %v6127_v49 = vadd.f32 %v2327_v7, %v2264_v55  ;;  %v2186_v7 = vmul.f32 %v5843_v30, %v2165_v37  ;;  %v1979_v11 = vmul.f32 %v5731_v62, %v6017_v17  ;;  %v2055_v2 = vadd.f32 %v2047_v0, %v1984_v23  ;;  %v8112_v55 = vld [vmem:[#allocation19_spill] sm:$0xff] }
 0x3a0   : > { %8109 = vst [vmem:[#allocation45_spill] sm:$0xff] %v6139_v6  ;;  %v2123_v9 = vadd.f32 %v2115_v54, %v2052_v29  ;;  %v2125_v4 = vadd.f32 %v2117_v44, %v2054_v39  ;;  %v6146_v18 = vpop.permute.xlu0 %2284  ;;  %v2100_v20 = vmul.f32 %v6068_v28, %v2076_v59  ;;  %v2118_v35 = vmul.f32 %v8112_v55, %v2097_v24  ;;  %v8114_v29 = vld [vmem:[#allocation13_spill] sm:$0xff]  ;;  %v8115_v23 = vld [vmem:[#allocation95_spill] sm:$0xff] }
 0x3a1   : > { %v2168_v25 = vmul.f32 %v5998_v36, %v2153_v19  ;;  %v2294_v43 = vsel %vm966_vm15, %v6146_v18, %v6027_v15  ;;  %v2050_v37 = vmul.f32 %v8105_v45, %v2029_v27  ;;  %v6157_v0 = vperm.slane %v6049_v21, 1 }
 0x3a2   : > { %v2196_v40 = vadd.f32 %v2188_v16, %v2125_v4  ;;  %v2309_v17 = vmul.f32 %v6139_v6, %v2294_v43  ;;  %v2147_v44 = vsel %vm834_vm11, %v8114_v29, %v8108_v38  ;;  %v2194_v24 = vadd.f32 %v2186_v7, %v2123_v9 }
 0x3a3   : > { %8113 = vst [vmem:[#allocation44_spill] sm:$0xff] %v6157_v0  ;;  %v2189_v39 = vmul.f32 %v8115_v23, %v2168_v25  ;;  %v2293_v59 = vsel %vm966_vm15, %v2275_v58, %v6100_v60  ;;  %v1987_v43 = vadd.f32 %v1979_v11, %v1917_v8  ;;  %v2121_v38 = vmul.f32 %v8112_v55, %v2100_v20 }
 0x3a4   : > { %v6160_v54 = vpop.permute.xlu1 %2280  ;;  %v2267_v27 = vadd.f32 %v6057_v47, %v2196_v40  ;;  %v2330_v19 = vmul.f32 %v6117_v52, %v2309_v17  ;;  %v2126_v25 = vadd.f32 %v2118_v35, %v2055_v2  ;;  %v2171_v7 = vmul.f32 %v6098_v26, %v2147_v44  ;;  %v8116_v2 = vld [vmem:[#allocation64_spill] sm:$0xff] }
 0x3a5   : > { %v2290_v15 = vsel %vm966_vm15, %v5974_v56, %v6160_v54  ;;  %v2265_v9 = vadd.f32 %v6053_v33, %v2194_v24  ;;  %v6183_v56 = vpop.permute.xlu2 %2345  ;;  %v2310_v36 = vmul.f32 %v6076_v48, %v2293_v59  ;;  %v2058_v17 = vadd.f32 %v2050_v37, %v1987_v43  ;;  %v8117_v59 = vld [vmem:[#allocation68_spill] sm:$0xff] }
 0x3a6   : > { %v2307_v16 = vmul.f32 %v6157_v0, %v2290_v15  ;;  %v6180_v4 = vadd.f32 %v2330_v19, %v2267_v27  ;;  %v2197_v47 = vadd.f32 %v2189_v39, %v2126_v25  ;;  %v2192_v15 = vmul.f32 %v8115_v23, %v2171_v7 }
 0x3a7   : > { %v2129_v35 = vadd.f32 %v2121_v38, %v2058_v17  ;;  %v8119_v17 = vld [vmem:[#allocation94_spill] sm:$0xff] }
 0x3a8   : > { %v2328_v40 = vmul.f32 %v6117_v52, %v2307_v16  ;;  %v6189_v11 = vpop.permute.xlu0 %2324  ;;  %v2268_v20 = vadd.f32 %v8116_v2, %v2197_v47 }
 0x3a9   : > { %v2331_v33 = vmul.f32 %v6189_v11, %v2310_v36  ;;  %v2200_v37 = vadd.f32 %v2192_v15, %v2129_v35  ;;  %v8120_v15 = vld [vmem:[#allocation97_spill] sm:$0xff]  ;;  %v8122_v35 = vld [vmem:[#allocation91_spill] sm:$0xff] }
 0x3aa   : > { %v6187_v8 = vadd.f32 %v2328_v40, %v2265_v9  ;;  %v8118_v40 = vld [vmem:[#allocation25_spill] sm:$0xff]  ;;  %v1936_v2 = vsel %vm674_vm6, %v8120_v15, %v8119_v17  ;;  %v8125_v15 = vld [vmem:[#allocation67_spill] sm:$0xff] }
 0x3ab   : > { %v6195_v24 = vadd.f32 %v2331_v33, %v2268_v20  ;;  %v2271_v19 = vadd.f32 %v8117_v59, %v2200_v37  ;;  %v6218_v47 = vperm.slane %v8118_v40, 2  ;;  %v8121_v33 = vld [vmem:[#allocation99_spill] sm:$0xff]  ;;  %v8123_v37 = vld [vmem:[#allocation102_spill] sm:$0xff]  ;;  %v8124_v59 = vld [vmem:[#allocation16_spill] sm:$0xff] }
 0x3ac   : > { %v6193_v44 = vpop.permute.xlu1 %2286  ;;  %v2007_v17 = vsel %vm706_vm7, %v8124_v59, %v5756_v46  ;;  %v2006_v46 = vsel %vm706_vm7, %v5743_v51, %v5741_v5  ;;  %v6273_v5 = vperm.slane %v5962_v1, 2 }
 0x3ad   : > { %v2295_v39 = vsel %vm966_vm15, %v6193_v44, %v2275_v58  ;;  %v6205_v25 = vpop.permute.xlu2 %2351  ;;  %v1954_v40 = vmul.f32 %v6218_v47, %v1936_v2 }
 0x3ae   : > { %v2313_v27 = vmul.f32 %v6139_v6, %v2295_v39  ;;  %v1939_v39 = vsel %vm674_vm6, %v8122_v35, %v8121_v33  ;;  %v8126_v6 = vld [vmem:[#allocation80_spill] sm:$0xff] }
 0x3af   : > { %v1957_v35 = vmul.f32 %v8125_v15, %v1939_v39  ;;  %v1915_v48 = vmul.f32 %v8111_v50, %v8126_v6  ;;  %v1974_v26 = vmul.f32 %v5716_v41, %v1954_v40  ;;  %v8127_v39 = vld [vmem:[#allocation93_spill] sm:$0xff]  ;;  %v8129_v40 = vld [vmem:[#allocation104_spill] sm:$0xff] }
 0x3b0   : > { %v2334_v16 = vmul.f32 %v6189_v11, %v2313_v27  ;;  %v6207_v36 = vpop.permute.xlu0 %2347  ;;  %v1937_v27 = vsel %vm674_vm6, %v8121_v33, %v8123_v37  ;;  %v6249_v33 = vperm.slane %v5901_v32, 2 }
 0x3b1   : > { %v1977_v6 = vmul.f32 %v5731_v62, %v1957_v35  ;;  %v8130_v35 = vld [vmem:[#allocation59_spill] sm:$0xff] }
 0x3b2   : > { %v6203_v43 = vadd.f32 %v2334_v16, %v2271_v19  ;;  %v2009_v19 = vsel %vm706_vm7, %v5729_v42, %v8124_v59  ;;  %v1958_v42 = vmul.f32 %v6218_v47, %v1937_v27  ;;  %v8128_v59 = vld [vmem:[#allocation101_spill] sm:$0xff]  ;;  %v2028_v32 = vmul.f32 %v6249_v33, %v2007_v17 }
 0x3b3   : > { %v2027_v2 = vmul.f32 %v5935_v3, %v2009_v19  ;;  %v1912_v28 = vmul.f32 %v8128_v59, %v8127_v39  ;;  %v2077_v27 = vsel %vm738_vm8, %v5758_v34, %v5794_v14  ;;  %v1916_v3 = vmul.f32 %v8111_v50, %v8129_v40 }
 0x3b4   : > { %v6209_v38 = vpop.permute.xlu1 %2343  ;;  %v1978_v41 = vmul.f32 %v5731_v62, %v1958_v42  ;;  %v2024_v51 = vmul.f32 %v6249_v33, %v2006_v46  ;;  %v2078_v17 = vsel %vm738_vm8, %v8130_v35, %v8106_v22  ;;  %v2080_v62 = vsel %vm738_vm8, %v5781_v13, %v8130_v35 }
 0x3b5   : > { %v6213_v9 = vpop.permute.xlu2 %2357  ;;  %v2048_v19 = vmul.f32 %v8105_v45, %v2027_v2  ;;  %v6285_v34 = vperm.slane %v5990_v53, 2  ;;  %v1982_v50 = vadd.f32 %v1974_v26, %v1912_v28  ;;  %v2095_v1 = vmul.f32 %v6273_v5, %v2077_v27  ;;  %v8132_v2 = vld [vmem:[#allocation24_spill] sm:$0xff]  ;;  %v8133_v53 = vld [vmem:[#allocation98_spill] sm:$0xff] }
 0x3b6   : > { %v2148_v42 = vsel %vm834_vm11, %v5817_v57, %v5809_v10  ;;  %v2151_v22 = vsel %vm834_vm11, %v8107_v31, %v8132_v2  ;;  %v1985_v46 = vadd.f32 %v1977_v6, %v1915_v48  ;;  %v2049_v13 = vmul.f32 %v8105_v45, %v2028_v32  ;;  %v8134_v57 = vld [vmem:[#allocation90_spill] sm:$0xff] }
 0x3b7   : > { %8131 = vst [vmem:[#allocation89_spill] sm:$0xff] %v6285_v34  ;;  %v2045_v59 = vmul.f32 %v8133_v53, %v2024_v51  ;;  %v2149_v28 = vsel %vm834_vm11, %v8132_v2, %v8114_v29  ;;  %v1986_v27 = vadd.f32 %v1978_v41, %v1916_v3  ;;  %v2099_v10 = vmul.f32 %v6273_v5, %v2078_v17  ;;  %v8136_v2 = vld [vmem:[#allocation88_spill] sm:$0xff] }
 0x3b8   : > { %v6211_v7 = vpop.permute.xlu0 %2353  ;;  %v2098_v35 = vmul.f32 %v8134_v57, %v2080_v62  ;;  %v6309_v40 = vperm.slane %v6049_v21, 2  ;;  %v2056_v48 = vadd.f32 %v2048_v19, %v1985_v46  ;;  %v2166_v45 = vmul.f32 %v6285_v34, %v2148_v42 }
 0x3b9   : > { %v2169_v31 = vmul.f32 %v6104_v63, %v2151_v22  ;;  %v2288_v6 = vsel %vm966_vm15, %v6160_v54, %v6146_v18  ;;  %v2116_v29 = vmul.f32 %v5783_v61, %v2095_v1  ;;  %v2120_v32 = vmul.f32 %v8112_v55, %v2099_v10  ;;  %v8137_v10 = vld [vmem:[#allocation54_spill] sm:$0xff] }
 0x3ba   : > { %8135 = vst [vmem:[#allocation86_spill] sm:$0xff] %v6309_v40  ;;  %v2119_v3 = vmul.f32 %v8112_v55, %v2098_v35  ;;  %v2170_v41 = vmul.f32 %v6285_v34, %v2149_v28  ;;  %v2057_v21 = vadd.f32 %v2049_v13, %v1986_v27  ;;  %v2053_v51 = vadd.f32 %v2045_v59, %v1982_v50  ;;  %v3727_v28 = vld [vmem:[%s7533_s2 + $0x41] ss:$8 sm:$0xf] }
 0x3bb   : > { %v2187_v19 = vmul.f32 %v5843_v30, %v2166_v45  ;;  %v2190_v17 = vmul.f32 %v8115_v23, %v2169_v31  ;;  %v2291_v61 = vsel %vm966_vm15, %v6100_v60, %v8136_v2  ;;  %v2308_v18 = vmul.f32 %v6309_v40, %v2288_v6  ;;  %v3730_v27 = vld [vmem:[%s7533_s2 + $0x42] ss:$8 sm:$0xf] }
 0x3bc   : > { %v6215_v58 = vpop.permute.xlu1 %2349  ;;  %v2191_v42 = vmul.f32 %v8115_v23, %v2170_v41  ;;  %v2289_v55 = vsel %vm966_vm15, %v8136_v2, %v6193_v44  ;;  %v2124_v54 = vadd.f32 %v2116_v29, %v2053_v51  ;;  %v2127_v50 = vadd.f32 %v2119_v3, %v2056_v48  ;;  %v8138_v48 = vld [vmem:[#allocation52_spill] sm:$0xff]  ;;  %v8139_v31 = vld [vmem:[#allocation57_spill] sm:$0xff] }
 0x3bd   : > { %v6251_v37 = vpop.permute.xlu2 %2414  ;;  %v2128_v30 = vadd.f32 %v2120_v32, %v2057_v21  ;;  %v2311_v22 = vmul.f32 %v6157_v0, %v2291_v61  ;;  %v2312_v23 = vmul.f32 %v6309_v40, %v2289_v55  ;;  %v2329_v60 = vmul.f32 %v6117_v52, %v2308_v18 }
 0x3be   : > { %v2198_v13 = vadd.f32 %v2190_v17, %v2127_v50  ;;  %v2195_v59 = vadd.f32 %v2187_v19, %v2124_v54  ;;  %v6347_v3 = vperm.slane %v3727_v28, 1  ;;  %v6349_v52 = vperm.slane %v3727_v28, 0 }
 0x3bf   : > { %v2199_v53 = vadd.f32 %v2191_v42, %v2128_v30  ;;  %v2332_v44 = vmul.f32 %v6189_v11, %v2311_v22  ;;  %v2333_v29 = vmul.f32 %v6189_v11, %v2312_v23  ;;  %v6351_v32 = vperm.slane %v3727_v28, 3 }
 0x3c0   : > { %v6224_v20 = vpop.permute.xlu0 %2390  ;;  %v2269_v35 = vadd.f32 %v8137_v10, %v2198_v13  ;;  %v2266_v6 = vadd.f32 %v8139_v31, %v2195_v59  ;;  %8140 = vst [vmem:[#allocation47_spill] sm:$0xff] %v6347_v3  ;;  %v2361_v21 = vsel %vm998_vm0, %v6207_v36, %v6205_v25  ;;  %v6357_v51 = vperm.slane %v3727_v28, 2 }
 0x3c1   : > { %v2270_v45 = vadd.f32 %v8138_v48, %v2199_v53  ;;  %8141 = vst [vmem:[#allocation46_spill] sm:$0xff] %v6349_v52  ;;  %v6359_v19 = vperm.slane %v3730_v27, 0  ;;  %v2363_v11 = vsel %vm998_vm0, %v6209_v38, %v6207_v36  ;;  %v2366_v18 = vsel %vm998_vm0, %v6213_v9, %v6183_v56 }
 0x3c2   : > { %8142 = vst [vmem:[#allocation42_spill] sm:$0xff] %v6351_v32  ;;  %v2337_v41 = vadd.f32 %v2329_v60, %v2266_v6  ;;  %v6361_v17 = vadd.f32 %v2332_v44, %v2269_v35  ;;  %v2360_v36 = vsel %vm998_vm0, %v6211_v7, %v6213_v9  ;;  %v2378_v55 = vmul.f32 %v6347_v3, %v2361_v21 }
 0x3c3   : > { %8143 = vst [vmem:[#allocation39_spill] sm:$0xff] %v6357_v51  ;;  %v6392_v54 = vperm.slane %v3730_v27, 3  ;;  %v6394_v50 = vperm.slane %v3730_v27, 2  ;;  %v2377_v9 = vmul.f32 %v6349_v52, %v2363_v11  ;;  %v2384_v53 = vmul.f32 %v6351_v32, %v2366_v18 }
 0x3c4   : > { %v6238_v16 = vpop.permute.xlu1 %2355  ;;  %8144 = vst [vmem:[#allocation83_spill] sm:$0xff] %v6359_v19  ;;  %v2399_v6 = vmul.f32 %v6224_v20, %v2378_v55 }
 0x3c5   : > { %v2421_v62 = vpop.permute.xlu2 %2420  ;;  %v2359_v42 = vsel %vm998_vm0, %v6205_v25, %v6238_v16  ;;  %v2365_v2 = vsel %vm998_vm0, %v6238_v16, %v6209_v38  ;;  %v2362_v25 = vsel %vm998_vm0, %v6215_v58, %v6211_v7  ;;  %v2364_v38 = vsel %vm998_vm0, %v6183_v56, %v6215_v58  ;;  %8145 = vst [vmem:[#allocation87_spill] sm:$0xff] %v6392_v54 }
 0x3c6   : > { %v2341_v16 = vadd.f32 %v2333_v29, %v2270_v45  ;;  %8146 = vst [vmem:[#allocation84_spill] sm:$0xff] %v6394_v50  ;;  %v2379_v22 = vmul.f32 %v6357_v51, %v2359_v42  ;;  %v2380_v23 = vmul.f32 %v6351_v32, %v2365_v2  ;;  %v6399_v7 = vperm.slane %v3730_v27, 1 }
 0x3c7   : > { %v2383_v56 = vmul.f32 %v6357_v51, %v2360_v36  ;;  %v2381_v58 = vmul.f32 %v6349_v52, %v2364_v38  ;;  %v2382_v59 = vmul.f32 %v6347_v3, %v2362_v25  ;;  %v2398_v31 = vmul.f32 %v6224_v20, %v2377_v9  ;;  %v8151_v51 = vld [vmem:[#allocation55_spill] sm:$0xff] }
 0x3c8   : > { %v6287_v14 = vpop.permute.xlu0 %2416  ;;  %8147 = vst [vmem:[#allocation85_spill] sm:$0xff] %v6399_v7  ;;  %v2400_v29 = vmul.f32 %v6224_v20, %v2379_v22 }
 0x3c9   : > { %v2435_v60 = vsel %vm1030_vm1, %v6287_v14, %v2421_v62 }
 0x3cc   : > { %v6304_v26 = vpop.permute.xlu1 %2395 }
 0x3cd   : > { %v2427_v61 = vpop.permute.xlu2 %2426  ;;  %v2404_v18 = vmul.f32 %v6304_v26, %v2383_v56  ;;  %v2405_v36 = vmul.f32 %v6304_v26, %v2384_v53 }
 0x3ce   : > { %v2436_v28 = vsel %vm1030_vm1, %v2427_v61, %v6251_v37 }
 0x3d0   : > { %v2423_v1 = vpop.permute.xlu0 %2422 }
 0x3d1   : > { %v2430_v44 = vsel %vm1030_vm1, %v2423_v1, %v2427_v61  ;;  %v2402_v61 = vmul.f32 %v6304_v26, %v2381_v58 }
 0x3d4   : > { %v2419_v46 = vpop.permute.xlu1 %2418 }
 0x3d5   : > { %v2434_v27 = vsel %vm1030_vm1, %v6251_v37, %v2419_v46  ;;  %v2432_v10 = vsel %vm1030_vm1, %v2419_v46, %v2423_v1  ;;  %v2401_v37 = vmul.f32 %v6224_v20, %v2380_v23  ;;  %v2452_v1 = vmul.f32 %v6359_v19, %v2435_v60  ;;  %v2467_v25 = vpop.permute.xlu2 %2466 }
 0x3d6   : > { %v2451_v46 = vmul.f32 %v6392_v54, %v2436_v28  ;;  %v2448_v21 = vmul.f32 %v6359_v19, %v2434_v27  ;;  %v2449_v11 = vmul.f32 %v6399_v7, %v2432_v10  ;;  %v2403_v20 = vmul.f32 %v6304_v26, %v2382_v59 }
 0x3d7   : > { %v2406_v23 = vadd.f32 %v2398_v31, %v6127_v49  ;;  %v2408_v60 = vadd.f32 %v2400_v29, %v2337_v41  ;;  %v2409_v28 = vadd.f32 %v2401_v37, %v6180_v4  ;;  %v2473_v58 = vmul.f32 %v2467_v25, %v2452_v1 }
 0x3d8   : > { %v2429_v13 = vpop.permute.xlu0 %2428  ;;  %v2413_v49 = vadd.f32 %v2405_v36, %v6203_v43  ;;  %v3789_v43 = vld [vmem:[%s7538_s7] sm:$0xff] }
 0x3d9   : > { %v2437_v35 = vsel %vm1030_vm1, %v2429_v13, %v6287_v14  ;;  %v2450_v14 = vmul.f32 %v6394_v50, %v2430_v44 }
 0x3dc   : > { %v2425_v30 = vpop.permute.xlu1 %2424 }
 0x3dd   : > { %v2431_v48 = vsel %vm1030_vm1, %v2425_v30, %v2429_v13  ;;  %v2433_v45 = vsel %vm1030_vm1, %v2421_v62, %v2425_v30  ;;  %v2455_v62 = vmul.f32 %v6392_v54, %v2437_v35  ;;  %v2407_v13 = vadd.f32 %v2399_v6, %v6187_v8  ;;  %v3758_v54 = vld [vmem:[%s7540_s9 + $0x58] sm:$0xff] }
 0x3de   : > { %v2453_v42 = vmul.f32 %v6399_v7, %v2433_v45  ;;  %v2454_v2 = vmul.f32 %v6394_v50, %v2431_v48  ;;  %v2410_v35 = vadd.f32 %v2402_v61, %v6195_v24  ;;  %v2411_v48 = vadd.f32 %v2403_v20, %v6361_v17  ;;  %v2516_v61 = vpop.permute.xlu2 %2515 }
 0x3df   : > { %v2476_v44 = vmul.f32 %v2467_v25, %v2455_v62  ;;  %v2412_v45 = vadd.f32 %v2404_v18, %v2341_v16 }
 0x3e0   : > { %v2474_v59 = vmul.f32 %v2467_v25, %v2453_v42  ;;  %v2475_v27 = vmul.f32 %v2467_v25, %v2454_v2  ;;  %v2490_v6 = vpop.permute.xlu0 %2489  ;;  %v2481_v4 = vadd.f32 %v2473_v58, %v2410_v35  ;;  %v2661_v58 = vld [vmem:[%s7540_s9] sm:$0xff]  ;;  %v3745_v35 = vld [vmem:[%s7540_s9 + $0x10] sm:$0xff] }
 0x3e1   : > { %v2484_v31 = vadd.f32 %v2476_v44, %v2413_v49  ;;  %v3746_v49 = vld [vmem:[%s7540_s9 + $0x18] sm:$0xff] }
 0x3e2   : > { %v2482_v8 = vadd.f32 %v2474_v59, %v2411_v48  ;;  %v2483_v41 = vadd.f32 %v2475_v27, %v2412_v45  ;;  %v2690_v27 = vld [vmem:[%s7542_s11 + $0x8] sm:$0xff]  ;;  %v3748_v48 = vld [vmem:[%s7542_s11 + $0x18] sm:$0xff]  ;;  %v3747_v45 = vld [vmem:[%s7542_s11 + $0x10] sm:$0xff] }
 0x3e4   : > { %v2462_v38 = vpop.permute.xlu1 %2461 }
 0x3e5   : > { %v2469_v55 = vmul.f32 %v2462_v38, %v2448_v21  ;;  %v2470_v30 = vmul.f32 %v2462_v38, %v2449_v11  ;;  %v2471_v9 = vmul.f32 %v2462_v38, %v2450_v14  ;;  %v2472_v22 = vmul.f32 %v2462_v38, %v2451_v46 }
 0x3e7   : > { %v2477_v56 = vadd.f32 %v2469_v55, %v2406_v23  ;;  %v2478_v10 = vadd.f32 %v2470_v30, %v2407_v13  ;;  %v2479_v26 = vadd.f32 %v2471_v9, %v2408_v60  ;;  %v2480_v53 = vadd.f32 %v2472_v22, %v2409_v28  ;;  %v2689_v23 = vld [vmem:[%s7542_s11] sm:$0xff]  ;;  %v2662_v28 = vld [vmem:[%s7540_s9 + $0x8] sm:$0xff] }
 0x3e8   : > { %v2521_v55 = vpop.permute.xlu0 %2520 }
 0x3e9   : > { %v2497_v37 = vadd.f32 %v2490_v6, %v2477_v56  ;;  %v2498_v1 = vadd.f32 %v2490_v6, %v2478_v10  ;;  %v2499_v46 = vadd.f32 %v2490_v6, %v2479_v26  ;;  %v2500_v14 = vadd.f32 %v2490_v6, %v2480_v53  ;;  %v6551_v6 = vpop.permute.xlu2 %2597 }
 0x3ec   : > { %v2495_v29 = vpop.permute.xlu1 %2494 }
 0x3ed   : > { %v2501_v21 = vadd.f32 %v2495_v29, %v2481_v4  ;;  %v2502_v11 = vadd.f32 %v2495_v29, %v2482_v8  ;;  %v2503_v62 = vadd.f32 %v2495_v29, %v2483_v41  ;;  %v2504_v42 = vadd.f32 %v2495_v29, %v2484_v31  ;;  %v3749_v31 = vld [vmem:[%s7540_s9 + $0x20] sm:$0xff]  ;;  %v3752_v8 = vld [vmem:[%s7542_s11 + $0x28] sm:$0xff] }
 0x3ee   : > { %v3751_v41 = vld [vmem:[%s7542_s11 + $0x20] sm:$0xff]  ;;  %v3750_v4 = vld [vmem:[%s7540_s9 + $0x28] sm:$0xff] }
 0x3ef   : > { %v2507_v24 = vpack.c.bf16 %v2501_v21, %v2497_v37  ;;  %v2508_v2 = vpack.c.bf16 %v2502_v11, %v2498_v1  ;;  %v2509_v17 = vpack.c.bf16 %v2503_v62, %v2499_v46  ;;  %v2510_v16 = vpack.c.bf16 %v2504_v42, %v2500_v14  ;;  %v3753_v21 = vld [vmem:[%s7540_s9 + $0x30] sm:$0xff] }
 0x3f0   : > { %v6572_v14 = vpop.permute.xlu0 %2613 }
 0x3f1   : > { %2538 = vmatpush.bf16.msra.mxu3 %v2507_v24  ;;  %2552 = vmatpush.bf16.msrb.mxu0 %v2508_v2 }
 0x3f2   : > { %2566 = vmatpush.bf16.msrb.mxu1 %v2509_v17  ;;  %v3756_v17 = vld [vmem:[%s7542_s11 + $0x38] sm:$0xff] }
 0x3f4   : > { %3737 = vmatmul.msk.bf16.vlgmr.msra.gmra.mxu3 %vm1725_vm12, %v3789_v43  ;;  %3738 = vmatmul.msk.bf16.vlgmr.msrb.gmra.mxu0 %vm1725_vm12, %v3789_v43  ;;  %v6556_v29 = vpop.permute.xlu1 %2592 }
 0x3f5   : > { %2580 = vmatpush.bf16.msrb.mxu3 %v2510_v16  ;;  %3739 = vmatmul.msk.bf16.vlgmr.msrb.gmra.mxu1 %vm1725_vm12, %v3789_v43  ;;  %v3755_v16 = vld [vmem:[%s7542_s11 + $0x30] sm:$0xff] }
 0x3fc   : > { %v6568_v1 = vpop.permute.xlu1 %2618 }
 0x404   : > { %3740 = vmatmul.msk.bf16.vlgmr.msrb.gmra.mxu3 %vm1725_vm12, %v3789_v43 }
 0x471   : > { %v2554_v20 = vpop.f32.mrf.mxu0 }
 0x472   : > { %v6454_v18 = vadd.f32 %v2554_v20, %v2516_v61  ;;  %v2568_v36 = vpop.f32.mrf.mxu1 }
 0x473   : > { %v6456_v25 = vadd.f32 %v2568_v36, %v2516_v61 }
 0x474   : > { %2633 = vrot.lane.b32.xlu1 %v6454_v18, %s7838_s20 }
 0x475   : > { %2637 = vrot.lane.b32.xlu0 %v6456_v25, %s7838_s20 }
 0x477   : > { %v2540_v38 = vpop.f32.mrf.mxu3 }
 0x478   : > { %v6483_v59 = vadd.f32 %v2540_v38, %v2516_v61 }
 0x479   : > { %v2556_v30 = vpop.f32.mrf.mxu0 }
 0x47a   : > { %v6462_v9 = vadd.f32 %v2556_v30, %v2521_v55  ;;  %v2570_v22 = vpop.f32.mrf.mxu1 }
 0x47b   : > { %v6467_v13 = vadd.f32 %v2570_v22, %v2521_v55 }
 0x47c   : > { %2635 = vrot.lane.b32.xlu2 %v6462_v9, %s7838_s20 }
 0x47d   : > { %2693 = vperm.xlu0 %3858, %v2689_v23   ;;  %2639 = vrot.lane.b32.xlu1 %v6467_v13, %s7838_s20  ;;  %v2606_v39 = vmul.f32 %v6551_v6, %v6467_v13 }
 0x47f   : > { %v2542_v60 = vpop.f32.mrf.mxu3 }
 0x480   : > { %v6479_v44 = vadd.f32 %v2542_v60, %v2521_v55  ;;  %v3754_v60 = vld [vmem:[%s7540_s9 + $0x38] sm:$0xff] }
 0x484   : > { %2670 = vperm.xlu2 %3857, %v2662_v28  }
 0x485   : > { %2665 = vperm.xlu1 %3859, %v2661_v58   ;;  %2631 = vrot.lane.b32.xlu0 %v6479_v44, %s7838_s20 }
 0x487   : > { %v2582_v56 = vpop.f32.mrf.mxu3 }
 0x488   : > { %v6506_v53 = vadd.f32 %v2582_v56, %v2516_v61 }
 0x48c   : > { %2629 = vrot.lane.b32.xlu2 %v6483_v59, %s7838_s20 }
 0x48d   : > { %2698 = vperm.xlu1 %3859, %v2690_v27   ;;  %2719 = vrot.lane.b32.xlu0 %v6479_v44, %s7843_s22 }
 0x48f   : > { %v2584_v10 = vpop.f32.mrf.mxu3 }
 0x490   : > { %v6498_v26 = vadd.f32 %v2584_v10, %v2521_v55 }
 0x494   : > { %2717 = vrot.lane.b32.xlu2 %v6483_v59, %s7843_s22 }
 0x495   : > { %2721 = vrot.lane.b32.xlu1 %v6454_v18, %s7843_s22  ;;  %2725 = vrot.lane.b32.xlu0 %v6456_v25, %s7843_s22 }
 0x49c   : > { %2723 = vrot.lane.b32.xlu2 %v6462_v9, %s7843_s22 }
 0x49d   : > { %2727 = vrot.lane.b32.xlu1 %v6467_v13, %s7843_s22  ;;  %2643 = vrot.lane.b32.xlu0 %v6498_v26, %s7838_s20 }
 0x4a4   : > { %2641 = vrot.lane.b32.xlu2 %v6506_v53, %s7838_s20  ;;  %s3790_s20 = sshll.u32 %s4077_s29, 5 }
 0x4a5   : > { %2754 = vperm.xlu1 %3859, %v3745_v35   ;;  %2731 = vrot.lane.b32.xlu0 %v6498_v26, %s7843_s22  ;;  %s3575_s17 = scalar_lea.hbm %s7544_s13, %s3790_s20 }
 0x4ac   : > { %2729 = vrot.lane.b32.xlu2 %v6506_v53, %s7843_s22 }
 0x4ad   : > { %2788 = vperm.xlu1 %3859, %v3748_v48   ;;  %2783 = vperm.xlu0 %3858, %v3747_v45  }
 0x4b4   : > { %2759 = vperm.xlu2 %3857, %v3746_v49  }
 0x4b5   : > { %2811 = vrot.lane.b32.xlu1 %v6454_v18, %s7848_s15  ;;  %2809 = vrot.lane.b32.xlu0 %v6479_v44, %s7848_s15 }
 0x4bc   : > { %2807 = vrot.lane.b32.xlu2 %v6483_v59, %s7848_s15 }
 0x4bd   : > { %2817 = vrot.lane.b32.xlu1 %v6467_v13, %s7848_s15  ;;  %2815 = vrot.lane.b32.xlu0 %v6456_v25, %s7848_s15 }
 0x4c4   : > { %2813 = vrot.lane.b32.xlu2 %v6462_v9, %s7848_s15 }
 0x4c5   : > { %2844 = vperm.xlu1 %3859, %v3749_v31   ;;  %2821 = vrot.lane.b32.xlu0 %v6498_v26, %s7848_s15 }
 0x4cc   : > { %2819 = vrot.lane.b32.xlu2 %v6506_v53, %s7848_s15 }
 0x4cd   : > { %2878 = vperm.xlu1 %3859, %v3752_v8   ;;  %2873 = vperm.xlu0 %3858, %v3751_v41  }
 0x4d4   : > { %2849 = vperm.xlu2 %3857, %v3750_v4  }
 0x4d5   : > { %2901 = vrot.lane.b32.xlu1 %v6454_v18, %s7860_s30  ;;  %2899 = vrot.lane.b32.xlu0 %v6479_v44, %s7860_s30 }
 0x4d6   : > { %v2636_v37 = vpop.permute.xlu2 %2635 }
 0x4dc   : > { %2897 = vrot.lane.b32.xlu2 %v6483_v59, %s7860_s30 }
 0x4dd   : > { %2907 = vrot.lane.b32.xlu1 %v6467_v13, %s7860_s30  ;;  %2905 = vrot.lane.b32.xlu0 %v6456_v25, %s7860_s30 }
 0x4de   : > { %v6570_v46 = vpop.permute.xlu2 %2670 }
 0x4e4   : > { %2903 = vrot.lane.b32.xlu2 %v6462_v9, %s7860_s30 }
 0x4e5   : > { %2934 = vperm.xlu1 %3859, %v3753_v21   ;;  %2911 = vrot.lane.b32.xlu0 %v6498_v26, %s7860_s30  ;;  %v8148_v21 = vld [vmem:[#allocation36_spill] sm:$0xff] }
 0x4e6   : > { %v2634_v11 = vpop.permute.xlu1 %2633  ;;  %v2630_v62 = vpop.permute.xlu2 %2629 }
 0x4e7   : > { %v2649_v42 = vsel %vm674_vm6, %v2630_v62, %v2634_v11  ;;  %v2638_v24 = vpop.permute.xlu0 %2637 }
 0x4e8   : > { %v2647_v2 = vsel %vm674_vm6, %v2634_v11, %v2638_v24  ;;  %v2654_v43 = vmul.f32 %v2649_v42, %v8125_v15  ;;  %v8149_v42 = vld [vmem:[#allocation32_spill] sm:$0xff] }
 0x4e9   : > { %v2655_v61 = vmul.f32 %v2647_v2, %v6218_v47 }
 0x4ec   : > { %2909 = vrot.lane.b32.xlu2 %v6506_v53, %s7860_s30  ;;  %s3576_s30 = sshll.u32 %s7452_s21, 4  ;;  %s3577_s30 = int_to_ptr.vmem [resolvable:$true] %s3576_s30 }
 0x4ed   : > { %2968 = vperm.xlu1 %3859, %v3756_v17   ;;  %2963 = vperm.xlu0 %3858, %v3755_v16  }
 0x4ee   : > { %v2718_v20 = vpop.permute.xlu2 %2717 }
 0x4ef   : > { %v2640_v36 = vpop.permute.xlu1 %2639  ;;  %v2694_v38 = vpop.permute.xlu0 %2693 }
 0x4f0   : > { %v2648_v55 = vsel %vm674_vm6, %v2636_v37, %v2640_v36  ;;  %v6597_v30 = vmul.f32 %v2694_v38, %v2654_v43  ;;  %v6599_v22 = vmul.f32 %v2694_v38, %v2655_v61 }
 0x4f1   : > { %v2659_v23 = vmul.f32 %v2648_v55, %v6218_v47 }
 0x4f3   : > { %v2679_v28 = vmul.f32 %v6570_v46, %v2659_v23 }
 0x4f4   : > { %2939 = vperm.xlu2 %3857, %v3754_v60  }
 0x4f5   : > { %2991 = vrot.lane.b32.xlu1 %v6454_v18, %s7876_s16  ;;  %2989 = vrot.lane.b32.xlu0 %v6479_v44, %s7876_s16 }
 0x4f6   : > { %v2724_v58 = vpop.permute.xlu2 %2723 }
 0x4f7   : > { %v2666_v27 = vpop.permute.xlu1 %2665  ;;  %v2632_v56 = vpop.permute.xlu0 %2631 }
 0x4f8   : > { %v6610_v10 = vmul.f32 %v2666_v27, %v2654_v43  ;;  %v6612_v35 = vmul.f32 %v2666_v27, %v2655_v61  ;;  %v2650_v47 = vsel %vm674_vm6, %v2632_v56, %v2636_v37 }
 0x4f9   : > { %v2658_v48 = vmul.f32 %v2650_v47, %v8125_v15 }
 0x4fb   : > { %v2678_v45 = vmul.f32 %v6570_v46, %v2658_v48 }
 0x4fc   : > { %2987 = vrot.lane.b32.xlu2 %v6483_v59, %s7876_s16 }
 0x4fd   : > { %2997 = vrot.lane.b32.xlu1 %v6467_v13, %s7876_s16  ;;  %2995 = vrot.lane.b32.xlu0 %v6456_v25, %s7876_s16 }
 0x4fe   : > { %v2642_v49 = vpop.permute.xlu2 %2641 }
 0x4ff   : > { %v2699_v31 = vpop.permute.xlu1 %2698  ;;  %v2645_v8 = vsel %vm674_vm6, %v2638_v24, %v2642_v49  ;;  %v2651_v41 = vsel %vm674_vm6, %v2642_v49, %v2630_v62  ;;  %v6628_v15 = vpop.permute.xlu0 %2719  ;;  %v3757_v62 = vld [vmem:[%s7540_s9 + $0x50] sm:$0xff]  ;;  %v3760_v49 = vld [vmem:[%s7542_s11 + $0x58] sm:$0xff] }
 0x500   : > { %v6630_v4 = vmul.f32 %v2699_v31, %v2658_v48  ;;  %v6632_v37 = vmul.f32 %v2699_v31, %v2659_v23  ;;  %v2653_v11 = vmul.f32 %v2651_v41, %v8148_v21  ;;  %v2656_v2 = vmul.f32 %v2645_v8, %v8149_v42  ;;  %v3759_v8 = vld [vmem:[%s7542_s11 + $0x50] sm:$0xff]  ;;  %v8150_v41 = vld [vmem:[#allocation33_spill] sm:$0xff] }
 0x501   : > { %v2738_v17 = vsel %vm706_vm7, %v6628_v15, %v2724_v58 }
 0x502   : > { %v2673_v16 = vmul.f32 %v2666_v27, %v2653_v11  ;;  %v2676_v43 = vmul.f32 %v2666_v27, %v2656_v2  ;;  %v6642_v24 = vmul.f32 %v2694_v38, %v2653_v11  ;;  %v6644_v61 = vmul.f32 %v2694_v38, %v2656_v2 }
 0x503   : > { %v6669_v11 = vmul.f32 %v2738_v17, %v8150_v41 }
 0x504   : > { %2993 = vrot.lane.b32.xlu2 %v6462_v9, %s7876_s16 }
 0x505   : > { %3024 = vperm.xlu1 %3859, %v3757_v62   ;;  %3001 = vrot.lane.b32.xlu0 %v6498_v26, %s7876_s16 }
 0x506   : > { %v2730_v55 = vpop.permute.xlu2 %2729 }
 0x507   : > { %v2722_v23 = vpop.permute.xlu1 %2721  ;;  %v2739_v60 = vsel %vm706_vm7, %v2730_v55, %v2718_v20  ;;  %v2726_v27 = vpop.permute.xlu0 %2725 }
 0x508   : > { %v2737_v47 = vsel %vm706_vm7, %v2718_v20, %v2722_v23  ;;  %v2733_v38 = vsel %vm706_vm7, %v2726_v27, %v2730_v55  ;;  %v2735_v48 = vsel %vm706_vm7, %v2722_v23, %v2726_v27  ;;  %v2605_v20 = vmul.f32 %v6551_v6, %v6462_v9 }
 0x509   : > { %v2742_v19 = vmul.f32 %v2737_v47, %v8150_v41  ;;  %v2741_v3 = vmul.f32 %v2739_v60, %v8151_v51 }
 0x50a   : > { %v2686_v62 = vadd.f32 %v2678_v45, %v2605_v20 }
 0x50c   : > { %2999 = vrot.lane.b32.xlu2 %v6506_v53, %s7876_s16 }
 0x50d   : > { %3058 = vperm.xlu1 %3859, %v3760_v49   ;;  %3053 = vperm.xlu0 %3858, %v3759_v8  }
 0x50e   : > { %v6671_v2 = vpop.permute.xlu2 %2759 }
 0x50f   : > { %v2728_v55 = vpop.permute.xlu1 %2727  ;;  %v2767_v23 = vmul.f32 %v6671_v2, %v6669_v11  ;;  %v2644_v27 = vpop.permute.xlu0 %2643 }
 0x510   : > { %v2736_v50 = vsel %vm706_vm7, %v2724_v58, %v2728_v55  ;;  %v2646_v17 = vsel %vm674_vm6, %v2640_v36, %v2644_v27  ;;  %v2652_v49 = vsel %vm674_vm6, %v2644_v27, %v2632_v56  ;;  %v2687_v58 = vadd.f32 %v2679_v28, %v2606_v39 }
 0x511   : > { %v6684_v8 = vmul.f32 %v2736_v50, %v6249_v33  ;;  %v6686_v45 = vadd.f32 %v2767_v23, %v2686_v62  ;;  %v2657_v20 = vmul.f32 %v2652_v49, %v8148_v21  ;;  %v2660_v7 = vmul.f32 %v2646_v17, %v8149_v42 }
 0x512   : > { %v2622_v36 = vmul.f32 %v6572_v14, %v6454_v18  ;;  %v2601_v56 = vmul.f32 %v6556_v29, %v6454_v18  ;;  %v2623_v42 = vmul.f32 %v6572_v14, %v6456_v25  ;;  %v2602_v39 = vmul.f32 %v6556_v29, %v6456_v25 }
 0x513   : > { %v2768_v50 = vmul.f32 %v6671_v2, %v6684_v8  ;;  %v2677_v62 = vmul.f32 %v6570_v46, %v2657_v20  ;;  %v2680_v21 = vmul.f32 %v6570_v46, %v2660_v7  ;;  %v2705_v23 = vmul.f32 %v2699_v31, %v2657_v20 }
 0x514   : > { %v2600_v28 = vmul.f32 %v6556_v29, %v6483_v59  ;;  %v2708_v27 = vmul.f32 %v2699_v31, %v2660_v7  ;;  %3029 = vperm.xlu2 %3857, %v3758_v54   ;;  %v2626_v17 = vmul.f32 %v6568_v1, %v6462_v9  ;;  %v2603_v49 = vmul.f32 %v6556_v29, %v6506_v53  ;;  %v8152_v7 = vld [vmem:[#allocation51_spill] sm:$0xff] }
 0x515   : > { %v2621_v46 = vmul.f32 %v6572_v14, %v6483_v59  ;;  %v6713_v20 = vadd.f32 %v2768_v50, %v2687_v58  ;;  %3081 = vrot.lane.b32.xlu1 %v6454_v18, %s7882_s23  ;;  %v2743_v54 = vmul.f32 %v2735_v48, %v6249_v33  ;;  %v2744_v31 = vmul.f32 %v2733_v38, %v8152_v7 }
 0x516   : > { %3079 = vrot.lane.b32.xlu0 %v6479_v44, %s7882_s23  ;;  %v6723_v29 = vpop.permute.xlu2 %2807  ;;  %v2682_v32 = vadd.f32 %v6610_v10, %v2601_v56  ;;  %v2683_v58 = vadd.f32 %v6612_v35, %v2602_v39  ;;  %v2681_v50 = vadd.f32 %v2673_v16, %v2600_v28  ;;  %v2684_v52 = vadd.f32 %v2676_v43, %v2603_v49 }
 0x517   : > { %v2755_v40 = vpop.permute.xlu1 %2754  ;;  %v2732_v0 = vpop.permute.xlu0 %2731  ;;  %v2627_v33 = vmul.f32 %v6568_v1, %v6467_v13  ;;  %v2604_v38 = vmul.f32 %v6551_v6, %v6479_v44  ;;  %v2607_v56 = vmul.f32 %v6551_v6, %v6498_v26  ;;  %v2625_v39 = vmul.f32 %v6568_v1, %v6479_v44 }
 0x518   : > { %v2762_v47 = vmul.f32 %v2755_v40, %v2741_v3  ;;  %v2763_v41 = vmul.f32 %v2755_v40, %v2742_v19  ;;  %v2764_v60 = vmul.f32 %v2755_v40, %v2743_v54  ;;  %v2765_v34 = vmul.f32 %v2755_v40, %v2744_v31 }
 0x519   : > { %v2734_v48 = vsel %vm706_vm7, %v2728_v55, %v2732_v0  ;;  %v2740_v10 = vsel %vm706_vm7, %v2732_v0, %v6628_v15  ;;  %v2710_v0 = vadd.f32 %v6597_v30, %v2622_v36  ;;  %v2711_v15 = vadd.f32 %v6599_v22, %v2623_v42 }
 0x51a   : > { %v6736_v35 = vadd.f32 %v2762_v47, %v2681_v50  ;;  %v6738_v16 = vadd.f32 %v2763_v41, %v2682_v32  ;;  %v6740_v43 = vadd.f32 %v2764_v60, %v2683_v58  ;;  %v6742_v40 = vadd.f32 %v2765_v34, %v2684_v52 }
 0x51b   : > { %v2745_v55 = vmul.f32 %v2740_v10, %v8151_v51  ;;  %v2748_v28 = vmul.f32 %v2734_v48, %v8152_v7  ;;  %v2624_v32 = vmul.f32 %v6572_v14, %v6506_v53  ;;  %v2628_v34 = vmul.f32 %v6568_v1, %v6498_v26 }
 0x51c   : > { %3077 = vrot.lane.b32.xlu2 %v6483_v59, %s7882_s23  ;;  %v2685_v52 = vadd.f32 %v2677_v62, %v2604_v38  ;;  %v2688_v6 = vadd.f32 %v2680_v21, %v2607_v56  ;;  %v2714_v30 = vadd.f32 %v6630_v4, %v2626_v17  ;;  %v2715_v22 = vadd.f32 %v6632_v37, %v2627_v33  ;;  %v3761_v33 = vld [vmem:[%s7540_s9 + $0x60] sm:$0xff] }
 0x51d   : > { %v2766_v49 = vmul.f32 %v6671_v2, %v2745_v55  ;;  %v2769_v51 = vmul.f32 %v6671_v2, %v2748_v28  ;;  %3087 = vrot.lane.b32.xlu1 %v6467_v13, %s7882_s23  ;;  %v2709_v14 = vadd.f32 %v6642_v24, %v2621_v46  ;;  %v2712_v1 = vadd.f32 %v6644_v61, %v2624_v32 }
 0x51e   : > { %3085 = vrot.lane.b32.xlu0 %v6456_v25, %s7882_s23  ;;  %v2814_v36 = vpop.permute.xlu2 %2813  ;;  %v2713_v62 = vadd.f32 %v2705_v23, %v2625_v39  ;;  %v2716_v21 = vadd.f32 %v2708_v27, %v2628_v34  ;;  %v3764_v39 = vld [vmem:[%s7542_s11 + $0x68] sm:$0xff] }
 0x51f   : > { %v6768_v42 = vadd.f32 %v2766_v49, %v2685_v52  ;;  %v6770_v2 = vadd.f32 %v2769_v51, %v2688_v6  ;;  %v2789_v7 = vpop.permute.xlu1 %2788  ;;  %v2784_v58 = vpop.permute.xlu0 %2783 }
 0x520   : > { %v2795_v50 = vmul.f32 %v2789_v7, %v2745_v55  ;;  %v2796_v4 = vmul.f32 %v2789_v7, %v6669_v11  ;;  %v2797_v37 = vmul.f32 %v2789_v7, %v6684_v8  ;;  %v2798_v24 = vmul.f32 %v2789_v7, %v2748_v28  ;;  %v3763_v55 = vld [vmem:[%s7542_s11 + $0x60] sm:$0xff] }
 0x521   : > { %v2791_v17 = vmul.f32 %v2784_v58, %v2741_v3  ;;  %v2792_v61 = vmul.f32 %v2784_v58, %v2742_v19  ;;  %v2793_v46 = vmul.f32 %v2784_v58, %v2743_v54  ;;  %v2794_v47 = vmul.f32 %v2784_v58, %v2744_v31 }
 0x522   : > { %v6774_v41 = vadd.f32 %v2795_v50, %v2713_v62  ;;  %v6776_v23 = vadd.f32 %v2796_v4, %v2714_v30  ;;  %v6778_v27 = vadd.f32 %v2797_v37, %v2715_v22  ;;  %v6780_v60 = vadd.f32 %v2798_v24, %v2716_v21  ;;  %v3762_v30 = vld [vmem:[%s7540_s9 + $0x68] sm:$0xff] }
 0x523   : > { %v6785_v11 = vadd.f32 %v2791_v17, %v2709_v14  ;;  %v6787_v8 = vadd.f32 %v2792_v61, %v2710_v0  ;;  %v6789_v3 = vadd.f32 %v2793_v46, %v2711_v15  ;;  %v6791_v19 = vadd.f32 %v2794_v47, %v2712_v1 }
 0x524   : > { %3083 = vrot.lane.b32.xlu2 %v6462_v9, %s7882_s23 }
 0x525   : > { %3114 = vperm.xlu1 %3859, %v3761_v33  }
 0x526   : > { %3091 = vrot.lane.b32.xlu0 %v6498_v26, %s7882_s23  ;;  %v2820_v54 = vpop.permute.xlu2 %2819 }
 0x527   : > { %v2812_v31 = vpop.permute.xlu1 %2811  ;;  %v2829_v38 = vsel %vm738_vm8, %v2820_v54, %v6723_v29  ;;  %v2810_v48 = vpop.permute.xlu0 %2809 }
 0x528   : > { %v2827_v10 = vsel %vm738_vm8, %v6723_v29, %v2812_v31  ;;  %v2828_v56 = vsel %vm738_vm8, %v2810_v48, %v2814_v36 }
 0x529   : > { %v2836_v28 = vmul.f32 %v2828_v56, %v8134_v57  ;;  %v2832_v1 = vmul.f32 %v2827_v10, %v8134_v57 }
 0x52c   : > { %3089 = vrot.lane.b32.xlu2 %v6506_v53, %s7882_s23  ;;  %s3578_s23 = sshll.u32 %s3575_s17, 4  ;;  %s3579_s23 = int_to_ptr.hbm [resolvable:$true] %s3578_s23 }
 0x52d   : > { %3148 = vperm.xlu1 %3859, %v3764_v39   ;;  %s3909_s19 = sshra.s32 %s3579_s23, 4  ;;  %s3910_s19 = int_to_ptr.hbm [resolvable:$true] %s3909_s19 }
 0x52e   : > { %3143 = vperm.xlu0 %3858, %v3763_v55   ;;  %v2850_v0 = vpop.permute.xlu2 %2849  ;;  %s3911_s27 = scalar_lea.hbm %s3910_s19, 64  ;;  %p3916_p0 = scmp.lt.s32.totalorder %s3910_s19, %s7544_s13 }
 0x52f   : > { %v2818_v29 = vpop.permute.xlu1 %2817  ;;  %v2857_v15 = vmul.f32 %v2850_v0, %v2836_v28  ;;  %v2816_v32 = vpop.permute.xlu0 %2815  ;;  %p3912_p11 = scmp.ne.s32.totalorder %s3910_s19, %s3911_s27 }
 0x530   : > { %v2826_v34 = vsel %vm738_vm8, %v2814_v36, %v2818_v29  ;;  %v2823_v52 = vsel %vm738_vm8, %v2816_v32, %v2820_v54  ;;  %v2825_v6 = vsel %vm738_vm8, %v2812_v31, %v2816_v32  ;;  %v8153_v36 = vld [vmem:[#allocation41_spill] sm:$0xff] }
 0x531   : > { %v2837_v49 = vmul.f32 %v2826_v34, %v6273_v5  ;;  %v6822_v51 = vadd.f32 %v2857_v15, %v6686_v45  ;;  %v2831_v62 = vmul.f32 %v2829_v38, %v8153_v36  ;;  %v2833_v21 = vmul.f32 %v2825_v6, %v6273_v5  ;;  %v8154_v45 = vld [vmem:[#allocation100_spill] sm:$0xff]  ;;  %p3913_p12 = pnand %p3912_p11, %p4094_p5 }
 0x532   : > { %v2834_v7 = vmul.f32 %v2823_v52, %v8154_v45 }
 0x533   : > { %v2858_v22 = vmul.f32 %v2850_v0, %v2837_v49  ;;  %p3914_p13 = pneg %p3913_p12 }
 0x534   : > { %3119 = vperm.xlu2 %3857, %v3762_v30  }
 0x535   : > { %v6828_v14 = vadd.f32 %v2858_v22, %v6713_v20  ;;  %3171 = vrot.lane.b32.xlu1 %v6454_v18, %s7887_s0  ;;  %v3767_v22 = vld [vmem:[%s7542_s11 + $0x70] sm:$0xff] }
 0x536   : > { %3169 = vrot.lane.b32.xlu0 %v6479_v44, %s7887_s0  ;;  %v2898_v58 = vpop.permute.xlu2 %2897 }
 0x537   : > { %v2845_v50 = vpop.permute.xlu1 %2844  ;;  %v2822_v4 = vpop.permute.xlu0 %2821 }
 0x538   : > { %v2852_v37 = vmul.f32 %v2845_v50, %v2831_v62  ;;  %v2853_v20 = vmul.f32 %v2845_v50, %v2832_v1  ;;  %v2854_v24 = vmul.f32 %v2845_v50, %v2833_v21  ;;  %v2855_v17 = vmul.f32 %v2845_v50, %v2834_v7 }
 0x539   : > { %v2824_v61 = vsel %vm738_vm8, %v2818_v29, %v2822_v4  ;;  %v2830_v57 = vsel %vm738_vm8, %v2822_v4, %v2810_v48  ;;  %v8155_v4 = vld [vmem:[#allocation89_spill] sm:$0xff] }
 0x53a   : > { %v6843_v5 = vadd.f32 %v2852_v37, %v6736_v35  ;;  %v6846_v46 = vadd.f32 %v2853_v20, %v6738_v16  ;;  %v6849_v47 = vadd.f32 %v2854_v24, %v6740_v43  ;;  %v6852_v33 = vadd.f32 %v2855_v17, %v6742_v40 }
 0x53b   : > { %v2835_v54 = vmul.f32 %v2830_v57, %v8153_v36  ;;  %v2838_v31 = vmul.f32 %v2824_v61, %v8154_v45  ;;  %v8156_v57 = vld [vmem:[#allocation56_spill] sm:$0xff] }
 0x53c   : > { %3167 = vrot.lane.b32.xlu2 %v6483_v59, %s7887_s0 }
 0x53d   : > { %v2856_v38 = vmul.f32 %v2850_v0, %v2835_v54  ;;  %v2859_v48 = vmul.f32 %v2850_v0, %v2838_v31  ;;  %3177 = vrot.lane.b32.xlu1 %v6467_v13, %s7887_s0 }
 0x53e   : > { %3175 = vrot.lane.b32.xlu0 %v6456_v25, %s7887_s0  ;;  %v2904_v35 = vpop.permute.xlu2 %2903 }
 0x53f   : > { %v6863_v16 = vadd.f32 %v2856_v38, %v6768_v42  ;;  %v6866_v43 = vadd.f32 %v2859_v48, %v6770_v2  ;;  %v2879_v40 = vpop.permute.xlu1 %2878  ;;  %v2874_v10 = vpop.permute.xlu0 %2873 }
 0x540   : > { %v2885_v56 = vmul.f32 %v2879_v40, %v2835_v54  ;;  %v2886_v39 = vmul.f32 %v2879_v40, %v2836_v28  ;;  %v2887_v55 = vmul.f32 %v2879_v40, %v2837_v49  ;;  %v2888_v29 = vmul.f32 %v2879_v40, %v2838_v31  ;;  %v3765_v28 = vld [vmem:[%s7540_s9 + $0x70] sm:$0xff] }
 0x541   : > { %v2881_v0 = vmul.f32 %v2874_v10, %v2831_v62  ;;  %v2882_v15 = vmul.f32 %v2874_v10, %v2832_v1  ;;  %v2883_v32 = vmul.f32 %v2874_v10, %v2833_v21  ;;  %v2884_v34 = vmul.f32 %v2874_v10, %v2834_v7 }
 0x542   : > { %v6869_v52 = vadd.f32 %v2885_v56, %v6774_v41  ;;  %v6872_v6 = vadd.f32 %v2886_v39, %v6776_v23  ;;  %v6875_v42 = vadd.f32 %v2887_v55, %v6778_v27  ;;  %v6878_v2 = vadd.f32 %v2888_v29, %v6780_v60 }
 0x543   : > { %v6884_v49 = vadd.f32 %v2881_v0, %v6785_v11  ;;  %v6887_v30 = vadd.f32 %v2882_v15, %v6787_v8  ;;  %v6890_v41 = vadd.f32 %v2883_v32, %v6789_v3  ;;  %v6893_v23 = vadd.f32 %v2884_v34, %v6791_v19 }
 0x544   : > { %3173 = vrot.lane.b32.xlu2 %v6462_v9, %s7887_s0 }
 0x545   : > { %3204 = vperm.xlu1 %3859, %v3765_v28  }
 0x546   : > { %3181 = vrot.lane.b32.xlu0 %v6498_v26, %s7887_s0  ;;  %v2910_v27 = vpop.permute.xlu2 %2909 }
 0x547   : > { %v2902_v60 = vpop.permute.xlu1 %2901  ;;  %v2919_v11 = vsel %vm834_vm11, %v2910_v27, %v2898_v58  ;;  %v2900_v8 = vpop.permute.xlu0 %2899 }
 0x548   : > { %v2917_v3 = vsel %vm834_vm11, %v2898_v58, %v2902_v60  ;;  %v2918_v19 = vsel %vm834_vm11, %v2900_v8, %v2904_v35  ;;  %v2921_v54 = vmul.f32 %v2919_v11, %v8156_v57 }
 0x549   : > { %v2926_v1 = vmul.f32 %v2918_v19, %v6104_v63  ;;  %v2922_v61 = vmul.f32 %v2917_v3, %v6104_v63 }
 0x54c   : > { %3179 = vrot.lane.b32.xlu2 %v6506_v53, %s7887_s0  ;;  %s3915_s0 = scalar_lea.hbm %s7544_s13, 128 }
 0x54d   : > { %3257 = vrot.lane.b32.xlu1 %v6483_v59, %s7891_s1  ;;  %v3766_v59 = vld [vmem:[%s7540_s9 + $0x78] sm:$0xff]  ;;  %p3917_p1 = scmp.lt.s32.totalorder %s3915_s0, %s3911_s27 }
 0x54e   : > { %3233 = vperm.xlu0 %3858, %v3767_v22   ;;  %v2940_v36 = vpop.permute.xlu2 %2939 }
 0x54f   : > { %v2908_v62 = vpop.permute.xlu1 %2907  ;;  %v2947_v21 = vmul.f32 %v2940_v36, %v2926_v1  ;;  %v2906_v45 = vpop.permute.xlu0 %2905  ;;  %p3918_p2 = por %p3917_p1, %p3916_p0 }
 0x550   : > { %v2916_v7 = vsel %vm834_vm11, %v2904_v35, %v2908_v62  ;;  %v2913_v58 = vsel %vm834_vm11, %v2906_v45, %v2910_v27  ;;  %v2915_v50 = vsel %vm834_vm11, %v2902_v60, %v2906_v45 }
 0x551   : > { %v2927_v37 = vmul.f32 %v2916_v7, %v8155_v4  ;;  %v6921_v20 = vadd.f32 %v2947_v21, %v6822_v51  ;;  %v2923_v31 = vmul.f32 %v2915_v50, %v8155_v4  ;;  %v8157_v51 = vld [vmem:[#allocation48_spill] sm:$0xff]  ;;  %v3368_v7 = vld [vmem:[%s7543_s12 + $0x8] sm:$0xff]  ;;  %p3919_p3 = pnand %p3918_p2, %p3914_p13 }
 0x552   : > { %v2924_v38 = vmul.f32 %v2913_v58, %v8157_v51  ;;  %v8158_v58 = vld [vmem:[#allocation20_spill] sm:$0xff] }
 0x553   : > { %v2948_v24 = vmul.f32 %v2940_v36, %v2927_v37 }
 0x554   : > { %3209 = vperm.xlu2 %3857, %v3766_v59  }
 0x555   : > { %v6927_v17 = vadd.f32 %v2948_v24, %v6828_v14  ;;  %3263 = vrot.lane.b32.xlu1 %v6462_v9, %s7891_s1 }
 0x556   : > { %3261 = vrot.lane.b32.xlu0 %v6454_v18, %s7891_s1  ;;  %v2988_v48 = vpop.permute.xlu2 %2987 }
 0x557   : > { %v2935_v35 = vpop.permute.xlu1 %2934  ;;  %v2912_v40 = vpop.permute.xlu0 %2911 }
 0x558   : > { %v2942_v10 = vmul.f32 %v2935_v35, %v2921_v54  ;;  %v2943_v14 = vmul.f32 %v2935_v35, %v2922_v61  ;;  %v2944_v56 = vmul.f32 %v2935_v35, %v2923_v31  ;;  %v2945_v39 = vmul.f32 %v2935_v35, %v2924_v38 }
 0x559   : > { %v2914_v9 = vsel %vm834_vm11, %v2908_v62, %v2912_v40  ;;  %v2920_v63 = vsel %vm834_vm11, %v2912_v40, %v2900_v8  ;;  %v3770_v40 = vld [vmem:[%s7540_s9 + $0x88] sm:$0xff] }
 0x55a   : > { %v6942_v55 = vadd.f32 %v2942_v10, %v6843_v5  ;;  %v6945_v29 = vadd.f32 %v2943_v14, %v6846_v46  ;;  %v6948_v18 = vadd.f32 %v2944_v56, %v6849_v47  ;;  %v6951_v0 = vadd.f32 %v2945_v39, %v6852_v33  ;;  %v8160_v56 = vld [vmem:[#allocation53_spill] sm:$0xff] }
 0x55b   : > { %v2925_v15 = vmul.f32 %v2920_v63, %v8156_v57  ;;  %v2928_v32 = vmul.f32 %v2914_v9, %v8157_v51  ;;  %v8161_v63 = vld [vmem:[#allocation62_spill] sm:$0xff] }
 0x55c   : > { %3259 = vrot.lane.b32.xlu2 %v6479_v44, %s7891_s1 }
 0x55d   : > { %v2946_v34 = vmul.f32 %v2940_v36, %v2925_v15  ;;  %v2949_v28 = vmul.f32 %v2940_v36, %v2928_v32  ;;  %3269 = vrot.lane.b32.xlu1 %v6506_v53, %s7891_s1 }
 0x55e   : > { %3267 = vrot.lane.b32.xlu0 %v6467_v13, %s7891_s1  ;;  %v2994_v5 = vpop.permute.xlu2 %2993 }
 0x55f   : > { %v2954_v46 = vadd.f32 %v2946_v34, %v6863_v16  ;;  %v6963_v47 = vadd.f32 %v2949_v28, %v6866_v43  ;;  %v2969_v33 = vpop.permute.xlu1 %2968  ;;  %v2964_v27 = vpop.permute.xlu0 %2963 }
 0x560   : > { %v2975_v60 = vmul.f32 %v2969_v33, %v2925_v15  ;;  %v2976_v11 = vmul.f32 %v2969_v33, %v2926_v1  ;;  %v2977_v8 = vmul.f32 %v2969_v33, %v2927_v37  ;;  %v2978_v44 = vmul.f32 %v2969_v33, %v2928_v32  ;;  %v3771_v1 = vld [vmem:[%s7542_s11 + $0x80] sm:$0xff] }
 0x561   : > { %v2971_v3 = vmul.f32 %v2964_v27, %v2921_v54  ;;  %v2972_v19 = vmul.f32 %v2964_v27, %v2922_v61  ;;  %v2973_v22 = vmul.f32 %v2964_v27, %v2923_v31  ;;  %v2974_v36 = vmul.f32 %v2964_v27, %v2924_v38  ;;  %v8159_v31 = vld [vmem:[#allocation60_spill] sm:$0xff]  ;;  %v3772_v38 = vld [vmem:[%s7542_s11 + $0x88] sm:$0xff] }
 0x562   : > { %v6966_v53 = vadd.f32 %v2975_v60, %v6869_v52  ;;  %v6969_v13 = vadd.f32 %v2976_v11, %v6872_v6  ;;  %v6972_v16 = vadd.f32 %v2977_v8, %v6875_v42  ;;  %v6975_v43 = vadd.f32 %v2978_v44, %v6878_v2  ;;  %v3768_v42 = vld [vmem:[%s7542_s11 + $0x78] sm:$0xff]  ;;  %v3769_v11 = vld [vmem:[%s7540_s9 + $0x80] sm:$0xff] }
 0x563   : > { %v6981_v62 = vadd.f32 %v2971_v3, %v6884_v49  ;;  %v6984_v21 = vadd.f32 %v2972_v19, %v6887_v30  ;;  %v6987_v52 = vadd.f32 %v2973_v22, %v6890_v41  ;;  %v6990_v6 = vadd.f32 %v2974_v36, %v6893_v23 }
 0x564   : > { %3265 = vrot.lane.b32.xlu2 %v6456_v25, %s7891_s1  ;;  %v3367_v25 = vld [vmem:[%s7543_s12] sm:$0xff] }
 0x565   : > { %3323 = vperm.xlu1 %3859, %v3771_v1  }
 0x566   : > { %3238 = vperm.xlu0 %3858, %v3768_v42   ;;  %v3000_v2 = vpop.permute.xlu2 %2999 }
 0x567   : > { %v2992_v49 = vpop.permute.xlu1 %2991  ;;  %v3009_v30 = vsel %vm870_vm14, %v3000_v2, %v2988_v48  ;;  %v2990_v45 = vpop.permute.xlu0 %2989 }
 0x568   : > { %v3007_v41 = vsel %vm870_vm14, %v2988_v48, %v2992_v49  ;;  %v3008_v23 = vsel %vm870_vm14, %v2990_v45, %v2994_v5  ;;  %v3347_v48 = vld [vmem:[%s7541_s10] sm:$0xff]  ;;  %v3014_v39 = vmul.f32 %v3009_v30, %v8160_v56 }
 0x569   : > { %v3015_v50 = vmul.f32 %v3008_v23, %v8158_v58  ;;  %v3011_v14 = vmul.f32 %v3007_v41, %v8158_v58 }
 0x56c   : > { %3271 = vrot.lane.b32.xlu2 %v6498_v26, %s7891_s1 }
 0x56d   : > { %3376 = vperm.xlu1 %3859, %v3368_v7  }
 0x56e   : > { %3371 = vperm.xlu0 %3858, %v3367_v25   ;;  %v3030_v4 = vpop.permute.xlu2 %3029 }
 0x56f   : > { %v2998_v37 = vpop.permute.xlu1 %2997  ;;  %v3036_v59 = vmul.f32 %v3030_v4, %v3015_v50  ;;  %v2996_v24 = vpop.permute.xlu0 %2995 }
 0x570   : > { %v3006_v61 = vsel %vm870_vm14, %v2994_v5, %v2998_v37  ;;  %v3003_v57 = vsel %vm870_vm14, %v2996_v24, %v3000_v2  ;;  %v3005_v54 = vsel %vm870_vm14, %v2992_v49, %v2996_v24 }
 0x571   : > { %v3016_v51 = vmul.f32 %v3006_v61, %v8159_v31  ;;  %v7019_v26 = vadd.f32 %v3036_v59, %v2954_v46  ;;  %v3012_v9 = vmul.f32 %v3005_v54, %v8159_v31  ;;  %v3013_v15 = vmul.f32 %v3003_v57, %v8161_v63 }
 0x573   : > { %v3037_v35 = vmul.f32 %v3030_v4, %v3016_v51 }
 0x574   : > { %3328 = vperm.xlu2 %3857, %v3772_v38  }
 0x575   : > { %v7031_v10 = vadd.f32 %v3037_v35, %v6921_v20  ;;  %3351 = vperm.xlu1 %3859, %v3347_v48  }
 0x576   : > { %3299 = vperm.xlu0 %3858, %v3770_v40   ;;  %v3078_v32 = vpop.permute.xlu2 %3077 }
 0x577   : > { %v3025_v34 = vpop.permute.xlu1 %3024  ;;  %v3002_v28 = vpop.permute.xlu0 %3001 }
 0x578   : > { %v3032_v5 = vmul.f32 %v3025_v34, %v3011_v14  ;;  %v3033_v46 = vmul.f32 %v3025_v34, %v3012_v9  ;;  %v3034_v33 = vmul.f32 %v3025_v34, %v3013_v15  ;;  %v3035_v27 = vmul.f32 %v3025_v34, %v3014_v39  ;;  %v8164_v34 = vld [vmem:[#allocation45_spill] sm:$0xff] }
 0x579   : > { %v3004_v20 = vsel %vm870_vm14, %v2998_v37, %v3002_v28  ;;  %v3010_v60 = vsel %vm870_vm14, %v3002_v28, %v2990_v45  ;;  %v3348_v37 = vld [vmem:[%s7541_s10 + $0x8] sm:$0xff] }
 0x57a   : > { %v7045_v8 = vadd.f32 %v3032_v5, %v6942_v55  ;;  %v7048_v44 = vadd.f32 %v3033_v46, %v6945_v29  ;;  %v7051_v3 = vadd.f32 %v3034_v33, %v6948_v18  ;;  %v7054_v19 = vadd.f32 %v3035_v27, %v6951_v0  ;;  %v8165_v5 = vld [vmem:[#allocation86_spill] sm:$0xff] }
 0x57b   : > { %v3017_v22 = vmul.f32 %v3004_v20, %v8161_v63  ;;  %v3018_v36 = vmul.f32 %v3010_v60, %v8160_v56 }
 0x57c   : > { %3294 = vperm.xlu2 %3857, %v3769_v11  }
 0x57d   : > { %v3038_v1 = vmul.f32 %v3030_v4, %v3017_v22  ;;  %v3039_v42 = vmul.f32 %v3030_v4, %v3018_v36 }
 0x57e   : > { %v3084_v2 = vpop.permute.xlu2 %3083 }
 0x57f   : > { %v3046_v55 = vadd.f32 %v3038_v1, %v6927_v17  ;;  %v3047_v49 = vadd.f32 %v3039_v42, %v6963_v47  ;;  %v3059_v29 = vpop.permute.xlu1 %3058  ;;  %v3054_v30 = vpop.permute.xlu0 %3053 }
 0x580   : > { %v3065_v45 = vmul.f32 %v3059_v29, %v3015_v50  ;;  %v3066_v18 = vmul.f32 %v3059_v29, %v3016_v51  ;;  %v3067_v41 = vmul.f32 %v3059_v29, %v3017_v22  ;;  %v3068_v23 = vmul.f32 %v3059_v29, %v3018_v36 }
 0x581   : > { %v3061_v0 = vmul.f32 %v3054_v30, %v3011_v14  ;;  %v3062_v7 = vmul.f32 %v3054_v30, %v3012_v9  ;;  %v3063_v25 = vmul.f32 %v3054_v30, %v3013_v15  ;;  %v3064_v58 = vmul.f32 %v3054_v30, %v3014_v39 }
 0x582   : > { %v3073_v4 = vadd.f32 %v3065_v45, %v6966_v53  ;;  %v3074_v17 = vadd.f32 %v3066_v18, %v6969_v13  ;;  %v3075_v47 = vadd.f32 %v3067_v41, %v6972_v16  ;;  %v3076_v59 = vadd.f32 %v3068_v23, %v6975_v43  ;;  %v8162_v16 = vld [vmem:[#allocation49_spill] sm:$0xff] }
 0x583   : > { %v3069_v50 = vadd.f32 %v3061_v0, %v6981_v62  ;;  %v3070_v24 = vadd.f32 %v3062_v7, %v6984_v21  ;;  %v3071_v61 = vadd.f32 %v3063_v25, %v6987_v52  ;;  %v3072_v57 = vadd.f32 %v3064_v58, %v6990_v6  ;;  %v8163_v6 = vld [vmem:[#allocation44_spill] sm:$0xff] }
 0x584   : > { %3356 = vperm.xlu2 %3857, %v3348_v37  }
 0x586   : > { %v3090_v54 = vpop.permute.xlu2 %3089 }
 0x587   : > { %v3082_v31 = vpop.permute.xlu1 %3081  ;;  %v3099_v56 = vsel %vm966_vm15, %v3090_v54, %v3078_v32 }
 0x588   : > { %v3097_v53 = vsel %vm966_vm15, %v3078_v32, %v3082_v31  ;;  %v3080_v51 = vpop.permute.xlu0 %3079  ;;  %v3104_v28 = vmul.f32 %v3099_v56, %v8164_v34 }
 0x589   : > { %v3098_v13 = vsel %vm966_vm15, %v3080_v51, %v3084_v2  ;;  %v3101_v15 = vmul.f32 %v3097_v53, %v8162_v16 }
 0x58a   : > { %v3105_v43 = vmul.f32 %v3098_v13, %v8162_v16 }
 0x58e   : > { %v3120_v38 = vpop.permute.xlu2 %3119 }
 0x58f   : > { %v3088_v62 = vpop.permute.xlu1 %3087  ;;  %v3126_v48 = vmul.f32 %v3120_v38, %v3105_v43 }
 0x590   : > { %v3096_v21 = vsel %vm966_vm15, %v3084_v2, %v3088_v62  ;;  %v3086_v52 = vpop.permute.xlu0 %3085 }
 0x591   : > { %v3106_v35 = vmul.f32 %v3096_v21, %v8163_v6  ;;  %v7080_v40 = vadd.f32 %v3126_v48, %v7019_v26  ;;  %v3095_v14 = vsel %vm966_vm15, %v3082_v31, %v3086_v52  ;;  %v3093_v9 = vsel %vm966_vm15, %v3086_v52, %v3090_v54 }
 0x592   : > { %v3102_v26 = vmul.f32 %v3095_v14, %v8163_v6  ;;  %v3103_v46 = vmul.f32 %v3093_v9, %v8165_v5 }
 0x593   : > { %v3127_v39 = vmul.f32 %v3120_v38, %v3106_v35 }
 0x595   : > { %v7089_v63 = vadd.f32 %v3127_v39, %v7031_v10 }
 0x596   : > { %v3168_v33 = vpop.permute.xlu2 %3167 }
 0x597   : > { %v3115_v27 = vpop.permute.xlu1 %3114 }
 0x598   : > { %v3122_v20 = vmul.f32 %v3115_v27, %v3101_v15  ;;  %v3123_v60 = vmul.f32 %v3115_v27, %v3102_v26  ;;  %v3124_v32 = vmul.f32 %v3115_v27, %v3103_v46  ;;  %v3125_v11 = vmul.f32 %v3115_v27, %v3104_v28  ;;  %v3092_v22 = vpop.permute.xlu0 %3091 }
 0x599   : > { %v3094_v36 = vsel %vm966_vm15, %v3088_v62, %v3092_v22  ;;  %v3100_v10 = vsel %vm966_vm15, %v3092_v22, %v3080_v51 }
 0x59a   : > { %v7100_v1 = vadd.f32 %v3122_v20, %v7045_v8  ;;  %v7103_v42 = vadd.f32 %v3123_v60, %v7048_v44  ;;  %v7106_v2 = vadd.f32 %v3124_v32, %v7051_v3  ;;  %v7109_v29 = vadd.f32 %v3125_v11, %v7054_v19  ;;  %v8167_v11 = vld [vmem:[#allocation42_spill] sm:$0xff] }
 0x59b   : > { %v3107_v30 = vmul.f32 %v3094_v36, %v8165_v5  ;;  %v3108_v45 = vmul.f32 %v3100_v10, %v8164_v34  ;;  %v8168_v10 = vld [vmem:[#allocation47_spill] sm:$0xff] }
 0x59d   : > { %v3128_v18 = vmul.f32 %v3120_v38, %v3107_v30  ;;  %v3129_v41 = vmul.f32 %v3120_v38, %v3108_v45 }
 0x59e   : > { %v3174_v23 = vpop.permute.xlu2 %3173 }
 0x59f   : > { %v7113_v0 = vadd.f32 %v3128_v18, %v3046_v55  ;;  %v7115_v8 = vadd.f32 %v3129_v41, %v3047_v49  ;;  %v3149_v7 = vpop.permute.xlu1 %3148  ;;  %v8169_v18 = vld [vmem:[#allocation39_spill] sm:$0xff] }
 0x5a0   : > { %v3155_v44 = vmul.f32 %v3149_v7, %v3105_v43  ;;  %v3156_v25 = vmul.f32 %v3149_v7, %v3106_v35  ;;  %v3157_v58 = vmul.f32 %v3149_v7, %v3107_v30  ;;  %v3158_v3 = vmul.f32 %v3149_v7, %v3108_v45  ;;  %v3144_v37 = vpop.permute.xlu0 %3143 }
 0x5a1   : > { %v3151_v54 = vmul.f32 %v3144_v37, %v3101_v15  ;;  %v3152_v19 = vmul.f32 %v3144_v37, %v3102_v26  ;;  %v3153_v31 = vmul.f32 %v3144_v37, %v3103_v46  ;;  %v3154_v53 = vmul.f32 %v3144_v37, %v3104_v28  ;;  %v8166_v15 = vld [vmem:[#allocation46_spill] sm:$0xff] }
 0x5a2   : > { %v7117_v51 = vadd.f32 %v3155_v44, %v3073_v4  ;;  %v7119_v13 = vadd.f32 %v3156_v25, %v3074_v17  ;;  %v7121_v16 = vadd.f32 %v3157_v58, %v3075_v47  ;;  %v7123_v55 = vadd.f32 %v3158_v3, %v3076_v59 }
 0x5a3   : > { %v7125_v49 = vadd.f32 %v3151_v54, %v3069_v50  ;;  %v7127_v38 = vadd.f32 %v3152_v19, %v3070_v24  ;;  %v7129_v43 = vadd.f32 %v3153_v31, %v3071_v61  ;;  %v7131_v62 = vadd.f32 %v3154_v53, %v3072_v57 }
 0x5a6   : > { %v3180_v21 = vpop.permute.xlu2 %3179 }
 0x5a7   : > { %v3172_v48 = vpop.permute.xlu1 %3171  ;;  %v3189_v9 = vsel %vm998_vm0, %v3180_v21, %v3168_v33 }
 0x5a8   : > { %v3170_v52 = vpop.permute.xlu0 %3169  ;;  %v3187_v57 = vsel %vm998_vm0, %v3168_v33, %v3172_v48  ;;  %v7158_v22 = vmul.f32 %v3189_v9, %v8167_v11 }
 0x5a9   : > { %v3188_v61 = vsel %vm998_vm0, %v3170_v52, %v3174_v23  ;;  %v7155_v32 = vmul.f32 %v3187_v57, %v8166_v15  ;;  %v8173_v57 = vld [vmem:[#allocation84_spill] sm:$0xff] }
 0x5aa   : > { %v3195_v34 = vmul.f32 %v3188_v61, %v8166_v15 }
 0x5ae   : > { %v7133_v35 = vpop.permute.xlu2 %3209 }
 0x5af   : > { %v3178_v6 = vpop.permute.xlu1 %3177  ;;  %v7161_v36 = vmul.f32 %v7133_v35, %v3195_v34 }
 0x5b0   : > { %v3176_v4 = vpop.permute.xlu0 %3175  ;;  %v3186_v5 = vsel %vm998_vm0, %v3174_v23, %v3178_v6 }
 0x5b1   : > { %v3183_v46 = vsel %vm998_vm0, %v3176_v4, %v3180_v21  ;;  %v3185_v27 = vsel %vm998_vm0, %v3172_v48, %v3176_v4  ;;  %v7164_v30 = vmul.f32 %v3186_v5, %v8168_v10  ;;  %v8171_v4 = vld [vmem:[#allocation87_spill] sm:$0xff] }
 0x5b2   : > { %v7167_v45 = vmul.f32 %v3185_v27, %v8168_v10  ;;  %v7170_v41 = vmul.f32 %v3183_v46, %v8169_v18 }
 0x5b6   : > { %v3260_v59 = vpop.permute.xlu2 %3259 }
 0x5b7   : > { %v7135_v17 = vpop.permute.xlu1 %3204 }
 0x5b8   : > { %v3182_v47 = vpop.permute.xlu0 %3181 }
 0x5b9   : > { %v3184_v20 = vsel %vm998_vm0, %v3178_v6, %v3182_v47  ;;  %v3190_v33 = vsel %vm998_vm0, %v3182_v47, %v3170_v52  ;;  %v8170_v52 = vld [vmem:[#allocation83_spill] sm:$0xff] }
 0x5ba   : > { %v7173_v23 = vmul.f32 %v3184_v20, %v8169_v18  ;;  %v7176_v7 = vmul.f32 %v3190_v33, %v8167_v11 }
 0x5be   : > { %v3266_v56 = vpop.permute.xlu2 %3265 }
 0x5bf   : > { %v3258_v14 = vpop.permute.xlu1 %3257 }
 0x5c0   : > { %v3234_v50 = vpop.permute.xlu0 %3233 }
 0x5c1   : > { %v3241_v31 = vmul.f32 %v3234_v50, %v7155_v32  ;;  %v3242_v53 = vmul.f32 %v3234_v50, %v7167_v45  ;;  %v3243_v48 = vmul.f32 %v3234_v50, %v7170_v41  ;;  %v3244_v21 = vmul.f32 %v3234_v50, %v7158_v22 }
 0x5c6   : > { %v3272_v28 = vpop.permute.xlu2 %3271 }
 0x5c7   : > { %v3264_v24 = vpop.permute.xlu1 %3263  ;;  %v3280_v25 = vsel %vm1030_vm1, %v3272_v28, %v3260_v59 }
 0x5c8   : > { %v3262_v39 = vpop.permute.xlu0 %3261  ;;  %v3278_v44 = vsel %vm1030_vm1, %v3260_v59, %v3264_v24  ;;  %v7200_v47 = vmul.f32 %v3280_v25, %v8171_v4 }
 0x5c9   : > { %v3277_v58 = vsel %vm1030_vm1, %v3258_v14, %v3262_v39  ;;  %v3275_v3 = vsel %vm1030_vm1, %v3262_v39, %v3266_v56  ;;  %v7197_v6 = vmul.f32 %v3278_v44, %v8170_v52  ;;  %v8172_v39 = vld [vmem:[#allocation85_spill] sm:$0xff] }
 0x5ca   : > { %v7203_v59 = vmul.f32 %v3277_v58, %v8170_v52  ;;  %v7208_v61 = vmul.f32 %v3275_v3, %v8172_v39 }
 0x5ce   : > { %v3329_v5 = vpop.permute.xlu2 %3328 }
 0x5cf   : > { %v3270_v26 = vpop.permute.xlu1 %3269  ;;  %v3335_v44 = vmul.f32 %v3329_v5, %v7197_v6  ;;  %v3338_v25 = vmul.f32 %v3329_v5, %v7200_v47 }
 0x5d0   : > { %v3268_v60 = vpop.permute.xlu0 %3267  ;;  %v3273_v37 = vsel %vm1030_vm1, %v3266_v56, %v3270_v26  ;;  %v3279_v56 = vsel %vm1030_vm1, %v3270_v26, %v3258_v14 }
 0x5d1   : > { %v3274_v54 = vsel %vm1030_vm1, %v3268_v60, %v3272_v28  ;;  %v3276_v19 = vsel %vm1030_vm1, %v3264_v24, %v3268_v60  ;;  %v7211_v9 = vmul.f32 %v3273_v37, %v8173_v57  ;;  %v3284_v26 = vmul.f32 %v3279_v56, %v8171_v4 }
 0x5d2   : > { %v7214_v50 = vmul.f32 %v3276_v19, %v8172_v39  ;;  %v7217_v15 = vmul.f32 %v3274_v54, %v8173_v57  ;;  %v3249_v37 = vadd.f32 %v3241_v31, %v7125_v49  ;;  %v3250_v54 = vadd.f32 %v3242_v53, %v7127_v38 }
 0x5d4   : > { %v3336_v58 = vmul.f32 %v3329_v5, %v7214_v50  ;;  %v3337_v3 = vmul.f32 %v3329_v5, %v7217_v15 }
 0x5d7   : > { %v3324_v24 = vpop.permute.xlu1 %3323 }
 0x5d8   : > { %v3239_v28 = vpop.permute.xlu0 %3238  ;;  %v3331_v20 = vmul.f32 %v3324_v24, %v7203_v59  ;;  %v3332_v60 = vmul.f32 %v3324_v24, %v7208_v61  ;;  %v3333_v33 = vmul.f32 %v3324_v24, %v7211_v9  ;;  %v3334_v19 = vmul.f32 %v3324_v24, %v3284_v26 }
 0x5d9   : > { %v3245_v46 = vmul.f32 %v3239_v28, %v3195_v34  ;;  %v3246_v27 = vmul.f32 %v3239_v28, %v7164_v30  ;;  %v3247_v12 = vmul.f32 %v3239_v28, %v7173_v23  ;;  %v3248_v14 = vmul.f32 %v3239_v28, %v7176_v7 }
 0x5da   : > { %v3339_v39 = vadd.f32 %v3331_v20, %v3249_v37  ;;  %v3340_v57 = vadd.f32 %v3332_v60, %v3250_v54  ;;  %v3212_v20 = vmul.f32 %v7135_v17, %v7155_v32  ;;  %v3295_v60 = vpop.permute.xlu2 %3294  ;;  %v3219_v32 = vmul.f32 %v7133_v35, %v7176_v7 }
 0x5db   : > { %v3253_v11 = vadd.f32 %v3245_v46, %v7117_v51  ;;  %v3254_v10 = vadd.f32 %v3246_v27, %v7119_v13  ;;  %v3255_v34 = vadd.f32 %v3247_v12, %v7121_v16  ;;  %v3256_v18 = vadd.f32 %v3248_v14, %v7123_v55 }
 0x5dc   : > { %v3251_v51 = vadd.f32 %v3243_v48, %v7129_v43  ;;  %v3252_v55 = vadd.f32 %v3244_v21, %v7131_v62  ;;  %v7240_v43 = vadd.f32 %v7161_v36, %v7080_v40  ;;  %v3217_v21 = vmul.f32 %v7133_v35, %v7164_v30 }
 0x5dd   : > { %v3343_v13 = vadd.f32 %v3335_v44, %v3253_v11  ;;  %v3344_v52 = vadd.f32 %v3336_v58, %v3254_v10  ;;  %v3345_v16 = vadd.f32 %v3337_v3, %v3255_v34  ;;  %v3346_v4 = vadd.f32 %v3338_v25, %v3256_v18 }
 0x5de   : > { %v3341_v28 = vadd.f32 %v3333_v33, %v3251_v51  ;;  %v3342_v31 = vadd.f32 %v3334_v19, %v3252_v55  ;;  %v3213_v10 = vmul.f32 %v7135_v17, %v7167_v45  ;;  %v3214_v40 = vmul.f32 %v7135_v17, %v7170_v41 }
 0x5df   : > { %v3377_v56 = vpop.permute.xlu1 %3376  ;;  %v3215_v34 = vmul.f32 %v7135_v17, %v7158_v22  ;;  %v3218_v30 = vmul.f32 %v7133_v35, %v7173_v23  ;;  %v3302_v44 = vmul.f32 %v3295_v60, %v7203_v59  ;;  %v3303_v25 = vmul.f32 %v3295_v60, %v7208_v61 }
 0x5e0   : > { %v3383_v46 = vadd.f32 %v3377_v56, %v3343_v13  ;;  %v3384_v27 = vadd.f32 %v3377_v56, %v3344_v52  ;;  %v3385_v5 = vadd.f32 %v3377_v56, %v3345_v16  ;;  %v3386_v12 = vadd.f32 %v3377_v56, %v3346_v4  ;;  %v3372_v49 = vpop.permute.xlu0 %3371 }
 0x5e1   : > { %v3379_v38 = vadd.f32 %v3372_v49, %v3339_v39  ;;  %v3380_v53 = vadd.f32 %v3372_v49, %v3340_v57  ;;  %v3381_v62 = vadd.f32 %v3372_v49, %v3341_v28  ;;  %v3382_v11 = vadd.f32 %v3372_v49, %v3342_v31 }
 0x5e2   : > { %v3777_v48 = vmul.f32 -1.442695, %v3383_v46  ;;  %v3778_v24 = vmul.f32 -1.442695, %v3384_v27  ;;  %v3779_v14 = vmul.f32 -1.442695, %v3385_v5  ;;  %v3304_v41 = vmul.f32 %v3295_v60, %v7211_v9 }
 0x5e3   : > { %v3780_v33 = vmul.f32 -1.442695, %v3386_v12  ;;  %v3773_v36 = vmul.f32 -1.442695, %v3379_v38  ;;  %v3774_v18 = vmul.f32 -1.442695, %v3380_v53  ;;  %v3305_v3 = vmul.f32 %v3295_v60, %v3284_v26 }
 0x5e4   : > { %3860 = vpow2.f32 %v3777_v48  ;;  %v3775_v45 = vmul.f32 -1.442695, %v3381_v62  ;;  %v3776_v58 = vmul.f32 -1.442695, %v3382_v11  ;;  %v3220_v17 = vadd.f32 %v3212_v20, %v7100_v1 }
 0x5e5   : > { %3862 = vpow2.f32 %v3778_v24  ;;  %v3225_v22 = vadd.f32 %v3217_v21, %v7089_v63  ;;  %v3221_v35 = vadd.f32 %v3213_v10, %v7103_v42  ;;  %v3222_v7 = vadd.f32 %v3214_v40, %v7106_v2 }
 0x5e6   : > { %3864 = vpow2.f32 %v3779_v14  ;;  %v3223_v59 = vadd.f32 %v3215_v34, %v7109_v29  ;;  %v3226_v9 = vadd.f32 %v3218_v30, %v7113_v0  ;;  %v3227_v54 = vadd.f32 %v3219_v32, %v7115_v8 }
 0x5e7   : > { %3866 = vpow2.f32 %v3780_v33  ;;  %v3352_v23 = vpop.permute.xlu1 %3351  ;;  %v3310_v26 = vadd.f32 %v3302_v44, %v3220_v17  ;;  %v3311_v63 = vadd.f32 %v3303_v25, %v3221_v35  ;;  %v3312_v19 = vadd.f32 %v3304_v41, %v3222_v7  ;;  %v8197_v7 = vld [vmem:[#allocation81_spill] sm:$0xff] }
 0x5e8   : > { %3868 = vpow2.f32 %v3773_v36  ;;  %v3300_v37 = vpop.permute.xlu0 %3299  ;;  %v3313_v2 = vadd.f32 %v3305_v3, %v3223_v59 }
 0x5e9   : > { %3870 = vpow2.f32 %v3774_v18  ;;  %v7270_v52 = vadd.f32 %v3352_v23, %v3310_v26  ;;  %v3306_v29 = vmul.f32 %v3300_v37, %v7197_v6  ;;  %v3307_v8 = vmul.f32 %v3300_v37, %v7214_v50 }
 0x5ea   : > { %v3861_v61 = vpop.eup %3860  ;;  %3872 = vpow2.f32 %v3775_v45  ;;  %v3308_v4 = vmul.f32 %v3300_v37, %v7217_v15  ;;  %v7281_v39 = vadd.f32 %v3352_v23, %v3311_v63  ;;  %v3309_v57 = vmul.f32 %v3300_v37, %v7200_v47 }
 0x5eb   : > { %v3863_v51 = vpop.eup %3862  ;;  %v7266_v1 = vadd.f32 1.0, %v3861_v61  ;;  %3874 = vpow2.f32 %v3776_v58  ;;  %v7287_v46 = vadd.f32 %v3352_v23, %v3312_v19  ;;  %v7289_v27 = vadd.f32 %v3352_v23, %v3313_v2  ;;  %v8202_v19 = vld [vmem:[#allocation105_spill] sm:$0xff] }
 0x5ec   : > { %v3865_v13 = vpop.eup %3864  ;;  %v7268_v42 = vadd.f32 1.0, %v3863_v51  ;;  %v7296_v12 = vadd.f32 %v3306_v29, %v7240_v43  ;;  %v7301_v31 = vadd.f32 %v3307_v8, %v3225_v22  ;;  %v7303_v38 = vadd.f32 %v3308_v4, %v3226_v9 }
 0x5ed   : > { %v3867_v16 = vpop.eup %3866  ;;  %v7273_v0 = vadd.f32 1.0, %v3865_v13  ;;  %3876 = vrcp.f32 %v7266_v1  ;;  %v3490_v5 = vand.u32 2147483648, %v7266_v1  ;;  %v7309_v24 = vadd.f32 %v3309_v57, %v3227_v54 }
 0x5ee   : > { %v3869_v55 = vpop.eup %3868  ;;  %v7278_v56 = vadd.f32 1.0, %v3867_v16  ;;  %3878 = vrcp.f32 %v7268_v42  ;;  %v3488_v62 = vand.u32 2147483647, %v7266_v1  ;;  %v3503_v21 = vand.u32 2147483647, %v7268_v42 }
 0x5ef   : > { %v3871_v28 = vpop.eup %3870  ;;  %3880 = vrcp.f32 %v7273_v0  ;;  %v7285_v6 = vadd.f32 1.0, %v3869_v55  ;;  %v7323_v11 = vor.u32 1.1754944e-38, %v3490_v5  ;;  %v3505_v36 = vand.u32 2147483648, %v7268_v42 }
 0x5f0   : > { %v3873_v50 = vpop.eup %3872  ;;  %3882 = vrcp.f32 %v7278_v56  ;;  %v7292_v15 = vadd.f32 1.0, %v3871_v28  ;;  %vm3484_vm8 = vweird.f32 %v7266_v1  ;;  %vm7380_vm1 = vcmp.eq.f32.partialorder %v3488_v62, 8.507059e+37 }
 0x5f1   : > { %v3875_v47 = vpop.eup %3874  ;;  %v7298_v49 = vadd.f32 1.0, %v3873_v50  ;;  %3884 = vrcp.f32 %v7285_v6  ;;  %v3430_v48 = vand.u32 2147483648, %v7285_v6  ;;  %v3428_v33 = vand.u32 2147483647, %v7285_v6 }
 0x5f2   : > { %v7305_v53 = vadd.f32 1.0, %v3875_v47  ;;  %3886 = vrcp.f32 %v7292_v15  ;;  %v3445_v43 = vand.u32 2147483648, %v7292_v15  ;;  %vm3424_vm6 = vweird.f32 %v7285_v6 }
 0x5f3   : > { %v7311_v14 = vpop.eup %3876  ;;  %3888 = vrcp.f32 %v7298_v49  ;;  %vm3439_vm7 = vweird.f32 %v7292_v15  ;;  %v3443_v40 = vand.u32 2147483647, %v7292_v15  ;;  %v3431_v18 = vor.u32 1.1754944e-38, %v3430_v48 }
 0x5f4   : > { %v7317_v20 = vpop.eup %3878  ;;  %v3480_v60 = vmul.f32 %v7311_v14, %v7266_v1  ;;  %3890 = vrcp.f32 %v7305_v53  ;;  %v3458_v32 = vand.u32 2147483647, %v7298_v49  ;;  %v3460_v44 = vand.u32 2147483648, %v7298_v49 }
 0x5f5   : > { %v7325_v10 = vpop.eup %3880  ;;  %v3495_v30 = vmul.f32 %v7317_v20, %v7268_v42  ;;  %v3446_v25 = vor.u32 1.1754944e-38, %v3445_v43  ;;  %v3473_v41 = vand.u32 2147483647, %v7305_v53  ;;  %v3475_v58 = vand.u32 2147483648, %v7305_v53 }
 0x5f6   : > { %v7331_v34 = vpop.eup %3882  ;;  %v3481_v3 = vsub.f32 1.0, %v3480_v60  ;;  %v3510_v22 = vmul.f32 %v7325_v10, %v7273_v0  ;;  %vm7348_vm13 = vcmp.eq.f32.partialorder %v3428_v33, 8.507059e+37  ;;  %vm7354_vm0 = vcmp.eq.f32.partialorder %v3443_v40, 8.507059e+37  ;;  %v8205_v33 = vld [vmem:[#allocation104_spill] sm:$0xff] }
 0x5f7   : > { %v3885_v45 = vpop.eup %3884  ;;  %v7345_v23 = vmul.f32 %v7331_v34, %v7278_v56  ;;  %v3461_v9 = vor.u32 1.1754944e-38, %v3460_v44  ;;  %vm7361_vm3 = vcmp.eq.f32.partialorder %v3458_v32, 8.507059e+37  ;;  %v3476_v13 = vor.u32 1.1754944e-38, %v3475_v58 }
 0x5f8   : > { %v3887_v17 = vpop.eup %3886  ;;  %v3420_v35 = vmul.f32 %v3885_v45, %v7285_v6  ;;  %vm3425_vm15 = vweird.f32 %v3885_v45  ;;  %v3482_v54 = vmul.f32 %v7311_v14, %v3481_v3  ;;  %vm7366_vm5 = vcmp.eq.f32.partialorder %v3473_v41, 8.507059e+37 }
 0x5f9   : > { %v3889_v59 = vpop.eup %3888  ;;  %v3435_v37 = vmul.f32 %v3887_v17, %v7292_v15  ;;  %vm3440_vm2 = vweird.f32 %v3887_v17  ;;  %vm3485_vm9 = vweird.f32 %v7311_v14  ;;  %v3496_v57 = vsub.f32 1.0, %v3495_v30  ;;  %vm7376_vm10 = vmor %vm3424_vm6, %vm3425_vm15  ;;  %v8207_v30 = vld [vmem:[#allocation92_spill] sm:$0xff] }
 0x5fa   : > { %v3891_v26 = vpop.eup %3890  ;;  %v3421_v51 = vsub.f32 1.0, %v3420_v35  ;;  %v3450_v63 = vmul.f32 %v3889_v59, %v7298_v49  ;;  %vm3455_vm4 = vweird.f32 %v3889_v59  ;;  %v3483_v55 = vadd.f32 %v7311_v14, %v3482_v54  ;;  %vm7388_vm11 = vmor %vm3439_vm7, %vm3440_vm2  ;;  %v8198_v54 = vld [vmem:[#allocation79_spill] sm:$0xff] }
 0x5fb   : > { %v3436_v2 = vsub.f32 1.0, %v3435_v37  ;;  %v3465_v29 = vmul.f32 %v3891_v26, %v7305_v53  ;;  %vm3470_vm12 = vweird.f32 %v3891_v26  ;;  %vm3500_vm14 = vweird.f32 %v7317_v20  ;;  %vm7401_vm15 = vmor %vm3484_vm8, %vm3485_vm9 }
 0x5fc   : > { %v3422_v8 = vmul.f32 %v3885_v45, %v3421_v51  ;;  %v3451_v4 = vsub.f32 1.0, %v3450_v63  ;;  %v3497_v60 = vmul.f32 %v7317_v20, %v3496_v57  ;;  %vm7393_vm6 = vcmp.eq.f32.partialorder %v3503_v21, 8.507059e+37 }
 0x5fd   : > { %v3437_v50 = vmul.f32 %v3887_v17, %v3436_v2  ;;  %v3466_v5 = vsub.f32 1.0, %v3465_v29  ;;  %v3506_v15 = vor.u32 1.1754944e-38, %v3505_v36  ;;  %v3511_v32 = vsub.f32 1.0, %v3510_v22  ;;  %v3357_v29 = vpop.permute.xlu2 %3356 }
 0x5fe   : > { %v3423_v48 = vadd.f32 %v3885_v45, %v3422_v8  ;;  %v3452_v43 = vmul.f32 %v3889_v59, %v3451_v4  ;;  %vm8192_vm7 = vweird.f32 %v7298_v49  ;;  %v3487_v1 = vsel %vm7401_vm15, %v7311_v14, %v3483_v55 }
 0x5ff   : > { %v3438_v62 = vadd.f32 %v3887_v17, %v3437_v50  ;;  %v3467_v40 = vmul.f32 %v3891_v26, %v3466_v5  ;;  %vm3456_vm2 = vmor %vm8192_vm7, %vm3455_vm4  ;;  %v3498_v41 = vadd.f32 %v7317_v20, %v3497_v60  ;;  %vm8193_vm8 = vweird.f32 %v7305_v53 }
 0x600   : > { %v3427_v21 = vsel %vm7376_vm10, %v3885_v45, %v3423_v48  ;;  %v3453_v44 = vadd.f32 %v3889_v59, %v3452_v43  ;;  %vm3471_vm9 = vmor %vm8193_vm8, %vm3470_vm12  ;;  %v3512_v49 = vmul.f32 %v7325_v10, %v3511_v32  ;;  %v3520_v51 = vand.u32 2147483648, %v7273_v0  ;;  %v8203_v48 = vld [vmem:[#allocation23_spill] sm:$0xff]  ;;  %v8204_v43 = vld [vmem:[#allocation80_spill] sm:$0xff] }
 0x601   : > { %v3432_v36 = vsel %vm7348_vm13, %v3431_v18, %v3427_v21  ;;  %v3442_v58 = vsel %vm7388_vm11, %v3887_v17, %v3438_v62  ;;  %v3468_v3 = vadd.f32 %v3891_v26, %v3467_v40  ;;  %vm8194_vm13 = vweird.f32 %v7268_v42 }
 0x602   : > { %v3447_v45 = vsel %vm7354_vm0, %v3446_v25, %v3442_v58  ;;  %v3457_v22 = vsel %vm3456_vm2, %v3889_v59, %v3453_v44  ;;  %v3539_v14 = vmul.f32 %v3432_v36, %v7270_v52  ;;  %vm7431_vm4 = vmor %vm8194_vm13, %vm3500_vm14  ;;  %vm3514_vm11 = vweird.f32 %v7273_v0 }
 0x603   : > { %v3462_v53 = vsel %vm7361_vm3, %v3461_v9, %v3457_v22  ;;  %v3472_v17 = vsel %vm3471_vm9, %v3891_v26, %v3468_v3  ;;  %v3540_v35 = vmul.f32 %v3447_v45, %v7281_v39  ;;  %v3502_v52 = vsel %vm7431_vm4, %v7317_v20, %v3498_v41  ;;  %v8199_v26 = vld [vmem:[#allocation93_spill] sm:$0xff] }
 0x604   : > { %v3477_v25 = vsel %vm7366_vm5, %v3476_v13, %v3472_v17  ;;  %v3541_v42 = vmul.f32 %v3462_v53, %v7287_v46  ;;  %v3547_v59 = vadd.f32 %v3539_v14, %v8197_v7  ;;  %v3513_v37 = vadd.f32 %v7325_v10, %v3512_v49 }
 0x605   : > { %v3542_v61 = vmul.f32 %v3477_v25, %v7289_v27  ;;  %v3548_v9 = vadd.f32 %v3540_v35, %v8198_v54  ;;  %vm3515_vm14 = vweird.f32 %v7325_v10  ;;  %v3518_v39 = vand.u32 2147483647, %v7273_v0 }
 0x606   : > { %v3549_v20 = vadd.f32 %v3541_v42, %v8199_v26  ;;  %3555 = vst [vmem:[%s7452_s21] sm:$0xff] %v3547_v59  ;;  %v3492_v46 = vsel %vm7380_vm1, %v7323_v11, %v3487_v1  ;;  %vm7460_vm0 = vmor %vm3514_vm11, %vm3515_vm14  ;;  %v3526_v63 = vsub.f32 1.0, %v7345_v23  ;;  %v3507_v2 = vsel %vm7393_vm6, %v3506_v15, %v3502_v52 }
 0x607   : > { %v3550_v13 = vadd.f32 %v3542_v61, %v8202_v19  ;;  %3556 = vst [vmem:[%s7452_s21 + $0x8] sm:$0xff] %v3548_v9  ;;  %v3517_v11 = vsel %vm7460_vm0, %v7325_v10, %v3513_v37  ;;  %vm3530_vm1 = vweird.f32 %v7331_v34  ;;  %v3521_v16 = vor.u32 1.1754944e-38, %v3520_v51 }
 0x608   : > { %3557 = vst [vmem:[%s7452_s21 + $0x10] sm:$0xff] %v3549_v20  ;;  %v3527_v0 = vmul.f32 %v7331_v34, %v3526_v63  ;;  %v3533_v23 = vand.u32 2147483647, %v7278_v56  ;;  %v3535_v8 = vand.u32 2147483648, %v7278_v56  ;;  %vm3519_vm3 = vcmp.eq.f32.partialorder %v3518_v39, 8.507059e+37 }
 0x609   : > { %3558 = vst [vmem:[%s7452_s21 + $0x18] sm:$0xff] %v3550_v13  ;;  %v3363_v4 = vadd.f32 %v3357_v29, %v7296_v12  ;;  %v3364_v55 = vadd.f32 %v3357_v29, %v7301_v31  ;;  %v3365_v10 = vadd.f32 %v3357_v29, %v7303_v38  ;;  %v3522_v57 = vsel %vm3519_vm3, %v3521_v16, %v3517_v11 }
 0x60a   : > { %v3528_v28 = vadd.f32 %v7331_v34, %v3527_v0  ;;  %vm3529_vm5 = vweird.f32 %v7278_v56  ;;  %v3536_v50 = vor.u32 1.1754944e-38, %v3535_v8  ;;  %vm3534_vm12 = vcmp.eq.f32.partialorder %v3533_v23, 8.507059e+37 }
 0x60b   : > { %vm3531_vm10 = vmor %vm3529_vm5, %vm3530_vm1  ;;  %v3543_v5 = vmul.f32 %v3492_v46, %v3363_v4  ;;  %v3544_v12 = vmul.f32 %v3507_v2, %v3364_v55  ;;  %v3545_v31 = vmul.f32 %v3522_v57, %v3365_v10  ;;  %v3366_v56 = vadd.f32 %v3357_v29, %v7309_v24 }
 0x60c   : > { %v3532_v38 = vsel %vm3531_vm10, %v7331_v34, %v3528_v28 }
 0x60d   : > { %v3537_v47 = vsel %vm3534_vm12, %v3536_v50, %v3532_v38  ;;  %v3551_v6 = vadd.f32 %v3543_v5, %v8203_v48  ;;  %v3552_v60 = vadd.f32 %v3544_v12, %v8204_v43  ;;  %v3553_v62 = vadd.f32 %v3545_v31, %v8205_v33 }
 0x60e   : > { %v3546_v40 = vmul.f32 %v3537_v47, %v3366_v56 }
 0x60f   : > { %3559 = vst [vmem:[%s7452_s21 + $0x20] sm:$0xff] %v3551_v6 }
 0x610   : > { %v3554_v34 = vadd.f32 %v3546_v40, %v8207_v30  ;;  %3560 = vst [vmem:[%s7452_s21 + $0x28] sm:$0xff] %v3552_v60 }
 0x611   : > { %3561 = vst [vmem:[%s7452_s21 + $0x30] sm:$0xff] %v3553_v62 }
 0x612   : > { %3562 = vst [vmem:[%s7452_s21 + $0x38] sm:$0xff] %v3554_v34 }
 0x613   : > { %3922 = shalt.err (!%p3919_p3)
}
 0x614   : > { %s3984_s24 = smov 512   ;;  %s3985_s14 = smov 1024  }
 0x615   : > { %s8208_s21 = smov 32  }
 0x616   : > { %3791 = dma.vmem_to_hbm [thread:$0]  (%p4094_p5), %s3577_s30, 1024, %s3579_s23, %s3564_s18, %s3984_s24, %s3985_s14, %s8208_s21  }
 0x617 PF: > { %s8209_s20 = sld [smem:[#allocation8_spill]] }
 0x618   : > { %s8210_s29 = sld [smem:[#allocation6_spill]] }
 0x61d   : > { %p3797_p4 = scmp.ge.s32.totalorder %s8209_s20, 2 }
 0x61e   : > { %s3593_s17 = sand.u32 1, %s8210_s29  }
 0x61f   : > { %p3794_p7 = pnand %p3797_p4, %p4098_p6  ;;  %s3594_s19 = scalar_lea.sflag [#allocation4], %s3593_s17 }
 0x621   : > { %p3795_p8 = pneg %p3794_p7 }
 0x623   : > { %3940 = dma.done.wait (%p3795_p8), %s3594_s19, 1024  }
 0x624   : > { %3942 = vsyncadd (%p3795_p8), %s3594_s19, 4294966272  ;;  %s8212_s28 = sld [smem:[#allocation9_spill]]  ;;  %s8215_s25 = smov %s3949_s26 }
 0x625   : > { %s8213_s27 = sld [smem:[#allocation7_spill]] }
 0x626   : > { %s8214_s0 = sld [smem:[#allocation10_spill]] }
 0x62a   : > { %p23_p9 = scmp.ge.s32.totalorder %s8212_s28, 4  }
 0x62b   : > { %s8216_s26 = smov %s8213_s27 }
 0x62c   : > { %s8217_s27 = smov %s8214_s0  ;;  %25 = sbr.rel (!%p23_p9) target bundleno = 6 (0x6), region = 157 }
 0x631   :  { %3600 = vsyncpa [#allocation4], 1 }
 0x632   :  { %3602 = vsyncpa [#allocation4 + $0x1], 1 }

</bundles_post_ra>
